<compile_context>
chip_gen: v7x
topology: tpu7x:2x2x1
jax: 0.10.0
libtpu: 0.0.40
codegen_flags: <defaults>
</compile_context>

<pallas_src>
import functools

import jax
import jax.numpy as jnp
from jax.experimental import pallas as pl
from jax.experimental.pallas import tpu as pltpu

NEG_SLOPE = 0.2  # LeakyReLU negative slope used by DecBlock


def _leaky_relu(x):
    return jnp.where(x > 0, x, NEG_SLOPE * x)


def _cdiv(a, b):
    return -(-a // b)


# ---------------------------------------------------------------------------
# Static (trace-time) polyphase plans.
# ---------------------------------------------------------------------------
def _deconv_axis_plan(size_in, size_out, stride, K, pad):
    """Polyphase plan for one axis of a ConvTranspose.

    For output index o = q*stride + r:
        out[o] = sum_t w_flip[t*stride + (K-1-pad) - r] * x[q + t]
    over taps t whose (flipped-)kernel index lands in [0, K).
    Returns (phases, halo_lo, halo_hi) where halo_* is the zero padding the
    un-dilated input needs on this axis.
    """
    plo = K - 1 - pad
    phases = []
    for r in range(stride):
        n_out = _cdiv(size_out - r, stride)          # #outputs of this phase
        t_lo = _cdiv(r - plo, stride)
        t_hi = (K - 1 + r - plo) // stride
        taps = [(t, t * stride + plo - r) for t in range(t_lo, t_hi + 1)]
        assert taps, "kernel smaller than stride is not supported"
        phases.append({"r": r, "n_out": n_out, "taps": taps})
    lo = max(0, -min(t for ph in phases for t, _ in ph["taps"]))
    hi = max(0, max(ph["n_out"] - 1 + max(t for t, _ in ph["taps"])
                    for ph in phases) - (size_in - 1))
    return phases, lo, hi


def _conv_on_phases_axis_plan(phase_stride, K, pad, size_full):
    """Plan for one axis of the stride-1 deconv2 applied to an input stored
    phase-separated with phase stride `phase_stride`.

    Output index o = u*phase_stride + a:
        z[o] = sum_k w_flip[k] * y[o + k - (K-1-pad)]
    and y[m] lives in phase buffer (m mod phase_stride), row (m div phase_stride).
    """
    plo = K - 1 - pad
    plans, deltas = [], [0]
    for a in range(phase_stride):
        n_out = _cdiv(size_full - a, phase_stride)
        taps = []
        for k in range(K):
            m = a + k - plo
            taps.append((k, m % phase_stride, m // phase_stride))
            deltas.append(m // phase_stride)
        plans.append({"a": a, "n_out": n_out, "taps": taps})
    guard = max(0, -min(deltas), max(deltas))
    return plans, guard


# ---------------------------------------------------------------------------
# Fused Pallas kernel: deconv1 + lrelu + deconv2 + lrelu for one batch tile.
# ---------------------------------------------------------------------------
def _dec_block_kernel(x_ref, w1_ref, b1_ref, w2_ref, b2_ref, o_ref, ybuf_ref,
                      *, cfg):
    # x_ref   : (1, Hx, Wx, Cin)             halo-padded input tile (NHWC)
    # w1_ref  : (K*K*Cin, C1)                phase-major deconv1 weight slabs
    # b1_ref  : (1, C1)
    # w2_ref  : (K*K*C1, C2)                 tap-major deconv2 im2col weights
    # b2_ref  : (1, C2)
    # o_ref   : (1, nph, Hqm, Wqm, C2)       phase-separated block output
    # ybuf_ref: (nph, Hqm+2Gh, Wqm+2Gw, C1)  deconv1 activation (VMEM only)
    Cin, C1, C2 = cfg["Cin"], cfg["C1"], cfg["C2"]
    Gh, Gw = cfg["Gh"], cfg["Gw"]
    hlo, wlo = cfg["halo_lo_h"], cfg["halo_lo_w"]
    h_phases, w_phases = cfg["h_phases"], cfg["w_phases"]
    h_plans, w_plans = cfg["h2_plans"], cfg["w2_plans"]
    n_wp = len(w_phases)

    # Zero the guard ring / unused tails of the phase buffers.  (Done every
    # grid step so it is correct under megacore grid sharding.)
    ybuf_ref[...] = jnp.zeros(ybuf_ref.shape, ybuf_ref.dtype)

    # ---- deconv1 + bias + LeakyReLU: ONE MXU matmul per output phase -------
    b1 = b1_ref[...].astype(jnp.float32)                    # (1, C1)
    w_off = 0
    for ph in h_phases:
        for pw in w_phases:
            Hq, Wq = ph["n_out"], pw["n_out"]
            pieces = []
            for th, _ in ph["taps"]:
                for tw, _ in pw["taps"]:
                    pieces.append(x_ref[0,
                                        hlo + th:hlo + th + Hq,
                                        wlo + tw:wlo + tw + Wq, :])
            ntap = len(pieces)
            patch = jnp.concatenate(pieces, axis=-1).reshape(Hq * Wq,
                                                             ntap * Cin)
            slab = w1_ref[w_off:w_off + ntap * Cin, :]
            w_off += ntap * Cin
            acc = jnp.dot(patch, slab, preferred_element_type=jnp.float32)
            y = _leaky_relu(acc + b1).astype(ybuf_ref.dtype)
            p = ph["r"] * n_wp + pw["r"]
            ybuf_ref[p, Gh:Gh + Hq, Gw:Gw + Wq, :] = y.reshape(Hq, Wq, C1)

    # ---- deconv2 + bias + LeakyReLU: one contraction-K*K*C1 matmul/phase ----
    b2 = b2_ref[...].astype(jnp.float32)                    # (1, C2)
    w2_all = w2_ref[...]                                    # (K*K*C1, C2)
    for za in h_plans:
        for zb in w_plans:
            Zh, Zw = za["n_out"], zb["n_out"]
            pieces = []
            for _, ph_h, dh in za["taps"]:
                for _, ph_w, dw in zb["taps"]:
                    p = ph_h * n_wp + ph_w
                    pieces.append(ybuf_ref[p,
                                           Gh + dh:Gh + dh + Zh,
                                           Gw + dw:Gw + dw + Zw, :])
            patch = jnp.concatenate(pieces, axis=-1).reshape(
                Zh * Zw, len(pieces) * C1)
            acc = jnp.dot(patch, w2_all, preferred_element_type=jnp.float32)
            z = _leaky_relu(acc + b2).astype(o_ref.dtype)
            o_ref[0, za["a"] * n_wp + zb["a"], :Zh, :Zw, :] = (
                z.reshape(Zh, Zw, C2))


# ---------------------------------------------------------------------------
# Wrapper: weight prep (cheap glue), pallas_call, phase interleave -> NCHW.
# ---------------------------------------------------------------------------
def _fused_dec_block(x_nchw, w1, b1, w2, b2, *, stride, kernel, out_size,
                     compute_dtype):
    N, Cin, H, W = x_nchw.shape
    C1 = w1.shape[1]                       # ConvTranspose2d: (Cin, Cout, K, K)
    C2 = w2.shape[1]
    K = kernel
    pad = K // 2
    sh, sw = stride
    H1, W1 = out_size

    # output_padding implied by output_size (PyTorch requires 0 <= op < stride)
    op_h = H1 - ((H - 1) * sh - 2 * pad + K)
    op_w = W1 - ((W - 1) * sw - 2 * pad + K)
    assert 0 <= op_h < sh, f"out_size[0]={H1} incompatible with stride {sh}"
    assert 0 <= op_w < sw, f"out_size[1]={W1} incompatible with stride {sw}"

    h_phases, hlo, hhi = _deconv_axis_plan(H, H1, sh, K, pad)
    w_phases, wlo, whi = _deconv_axis_plan(W, W1, sw, K, pad)
    h2_plans, Gh = _conv_on_phases_axis_plan(sh, K, pad, H1)
    w2_plans, Gw = _conv_on_phases_axis_plan(sw, K, pad, W1)
    Hqm = max(ph["n_out"] for ph in h_phases)
    Wqm = max(pw["n_out"] for pw in w_phases)
    nph = sh * sw

    # Cheap glue on the small, pre-upsample input: layout + 1-pixel halo only.
    x_nhwc = jnp.transpose(x_nchw, (0, 2, 3, 1))
    x_halo = jnp.pad(x_nhwc, ((0, 0), (hlo, hhi), (wlo, whi), (0, 0)))
    x_halo = x_halo.astype(compute_dtype)

    # Flip to "forward conv" orientation: (K, K, Cin, Cout).
    w1f = jnp.flip(w1, axis=(2, 3)).transpose(2, 3, 0, 1)
    w2f = jnp.flip(w2, axis=(2, 3)).transpose(2, 3, 0, 1)
    # deconv1: phase-major polyphase slabs -> (K*K*Cin, C1)
    slabs = []
    for ph in h_phases:
        for pw in w_phases:
            for _, kh in ph["taps"]:
                for _, kw in pw["taps"]:
                    slabs.append(w1f[kh, kw])
    w1_cat = jnp.concatenate(slabs, axis=0).astype(compute_dtype)
    # deconv2: plain tap-major im2col weights -> (K*K*C1, C2)
    w2_cat = w2f.reshape(K * K * C1, C2).astype(compute_dtype)
    b1_2d = b1.reshape(1, C1).astype(jnp.float32)
    b2_2d = b2.reshape(1, C2).astype(jnp.float32)

    cfg = dict(Cin=Cin, C1=C1, C2=C2, Gh=Gh, Gw=Gw,
               halo_lo_h=hlo, halo_lo_w=wlo,
               h_phases=h_phases, w_phases=w_phases,
               h2_plans=h2_plans, w2_plans=w2_plans)

    Hx, Wx = H + hlo + hhi, W + wlo + whi
    out_dtype = x_nchw.dtype

    out = pl.pallas_call(
        functools.partial(_dec_block_kernel, cfg=cfg),
        out_shape=jax.ShapeDtypeStruct((N, nph, Hqm, Wqm, C2), out_dtype),
        grid_spec=pltpu.PrefetchScalarGridSpec(
            num_scalar_prefetch=0,
            grid=(N,),
            in_specs=[
                pl.BlockSpec((1, Hx, Wx, Cin), lambda n: (n, 0, 0, 0)),
                pl.BlockSpec((K * K * Cin, C1), lambda n: (0, 0)),
                pl.BlockSpec((1, C1), lambda n: (0, 0)),
                pl.BlockSpec((K * K * C1, C2), lambda n: (0, 0)),
                pl.BlockSpec((1, C2), lambda n: (0, 0)),
            ],
            out_specs=pl.BlockSpec((1, nph, Hqm, Wqm, C2),
                                   lambda n: (n, 0, 0, 0, 0)),
            scratch_shapes=[
                pltpu.VMEM((nph, Hqm + 2 * Gh, Wqm + 2 * Gw, C1),
                           compute_dtype),
            ],
        ),
        compiler_params=pltpu.CompilerParams(
            dimension_semantics=("parallel",),
            vmem_limit_bytes=32 * 1024 * 1024,
        ),
    )(x_halo, w1_cat, b1_2d, w2_cat, b2_2d)

    # Interleave output phases straight into NCHW (single transpose; replaces
    # the NHWC->NCHW transpose an unfused implementation needs anyway).
    z = out.reshape(N, sh, sw, Hqm, Wqm, C2)
    z = jnp.transpose(z, (0, 5, 3, 1, 4, 2))        # (N, C2, Hqm, sh, Wqm, sw)
    z = z.reshape(N, C2, Hqm * sh, Wqm * sw)
    return z[:, :, :H1, :W1]


def dec_block_forward(params, x_nchw, out_size, upsample=True, kernel=3,
                      compute_dtype=jnp.float32):
    """JAX/Pallas equivalent of DecBlock.forward(input, out_size), NCHW I/O."""
    stride1 = (2, 2) if upsample else (2, 1)
    return _fused_dec_block(x_nchw, params["w1"], params["b1"],
                            params["w2"], params["b2"],
                            stride=stride1, kernel=kernel,
                            out_size=tuple(out_size),
                            compute_dtype=compute_dtype)


# ---------------------------------------------------------------------------
# Pure-JAX reference (for correctness checks of the fused kernel).
# ---------------------------------------------------------------------------
def _ref_deconv_lrelu(x_nhwc, w_pt, b, stride, padding, output_padding):
    K = w_pt.shape[2]
    w_hwio = jnp.flip(w_pt, axis=(2, 3)).transpose(2, 3, 0, 1)
    p = K - 1 - padding
    y = jax.lax.conv_general_dilated(
        x_nhwc, w_hwio, window_strides=(1, 1),
        padding=((p, p + output_padding[0]), (p, p + output_padding[1])),
        lhs_dilation=stride,
        dimension_numbers=("NHWC", "HWIO", "NHWC"))
    y = y + b[None, None, None, :]
    return jnp.where(y > 0, y, NEG_SLOPE * y)


def dec_block_forward_ref(params, x_nchw, out_size, upsample=True, kernel=3):
    padding = kernel // 2
    stride1 = (2, 2) if upsample else (2, 1)
    x = jnp.transpose(x_nchw, (0, 2, 3, 1))
    _, H, W, _ = x.shape
    op_h = out_size[0] - ((H - 1) * stride1[0] - 2 * padding + kernel)
    op_w = out_size[1] - ((W - 1) * stride1[1] - 2 * padding + kernel)
    y = _ref_deconv_lrelu(x, params["w1"], params["b1"], stride1, padding,
                          (op_h, op_w))
    y = _ref_deconv_lrelu(y, params["w2"], params["b2"], (1, 1), padding,
                          (0, 0))
    return jnp.transpose(y, (0, 3, 1, 2))


# ---------------------------------------------------------------------------
# Main
# ---------------------------------------------------------------------------
if __name__ == "__main__":
    nin, nout, kernel = 4, 8, 3
    batch, H, W = 2, 8, 8

    key = jax.random.PRNGKey(0)
    k1, k2, k3, k4, kx = jax.random.split(key, 5)
    params = {
        # ConvTranspose2d weight layout: (in_channels, out_channels, kH, kW)
        "w1": 0.1 * jax.random.normal(k1, (nin, nout, kernel, kernel), jnp.float32),
        "b1": 0.1 * jax.random.normal(k2, (nout,), jnp.float32),
        "w2": 0.1 * jax.random.normal(k3, (nout, nout, kernel, kernel), jnp.float32),
        "b2": 0.1 * jax.random.normal(k4, (nout,), jnp.float32),
    }
    x = jax.random.normal(kx, (batch, nin, H, W), jnp.float32)

    cases = [
        # (upsample, out_size, compute_dtype, tolerance)
        (True,  (2 * H, 2 * W),         jnp.float32,  1e-4),  # standard 2x
        (True,  (2 * H - 1, 2 * W - 1), jnp.float32,  1e-4),  # output_padding=0
        (False, (2 * H, W),             jnp.float32,  1e-4),  # stride (2, 1)
        (True,  (2 * H, 2 * W),         jnp.bfloat16, 5e-2),  # bf16 MXU inputs
    ]
    for upsample, out_size, cdt, tol in cases:
        out = dec_block_forward(params, x, out_size, upsample=upsample,
                                kernel=kernel, compute_dtype=cdt)
        out = jax.block_until_ready(out)
        ref = jax.block_until_ready(
            dec_block_forward_ref(params, x, out_size, upsample=upsample,
                                  kernel=kernel))
        assert out.shape == (batch, nout, out_size[0], out_size[1]), out.shape
        ok = jnp.allclose(out.astype(jnp.float32), ref, rtol=tol, atol=tol)
        assert bool(ok), (upsample, out_size, str(cdt),
                          float(jnp.max(jnp.abs(out.astype(jnp.float32) - ref))))

    print("KERNEL_OK")
</pallas_src>

<mosaic_0001>
module attributes {stable_mosaic.version = 11 : i64} {
  func.func @_dec_block_kernel(%arg0: i32, %arg1: memref<1x9x9x4xf32, #tpu.memory_space<vmem>>, %arg2: memref<36x8xf32, #tpu.memory_space<vmem>>, %arg3: memref<1x8xf32, #tpu.memory_space<vmem>>, %arg4: memref<72x8xf32, #tpu.memory_space<vmem>>, %arg5: memref<1x8xf32, #tpu.memory_space<vmem>>, %arg6: memref<1x4x8x8x8xf32, #tpu.memory_space<vmem>>, %arg7: memref<4x10x10x8xf32, #tpu.memory_space<vmem>>) attributes {dimension_semantics = [#tpu.dimension_semantics<parallel>], iteration_bounds = array<i64: 2>, scalar_prefetch = 0 : i64, scratch_operands = 1 : i64, tpu.core_type = #tpu.core_type<tc>, window_params = [{transform_indices = @transform_0, window_bounds = array<i64: 1, 9, 9, 4>}, {pipeline_mode = #tpu.pipeline_mode<synchronous>, transform_indices = @transform_1, window_bounds = array<i64: 36, 8>}, {pipeline_mode = #tpu.pipeline_mode<synchronous>, transform_indices = @transform_2, window_bounds = array<i64: 1, 8>}, {pipeline_mode = #tpu.pipeline_mode<synchronous>, transform_indices = @transform_3, window_bounds = array<i64: 72, 8>}, {pipeline_mode = #tpu.pipeline_mode<synchronous>, transform_indices = @transform_4, window_bounds = array<i64: 1, 8>}, {transform_indices = @transform_5, window_bounds = array<i64: 1, 4, 8, 8, 8>}]} {
    %cst = arith.constant 0.000000e+00 : f32
    %0 = vector.broadcast %cst : f32 to vector<4x10x10x8xf32>
    %c0 = arith.constant 0 : index
    %c0_0 = arith.constant 0 : index
    %c0_1 = arith.constant 0 : index
    %c0_2 = arith.constant 0 : index
    %1 = vector.load %arg7[%c0, %c0_0, %c0_1, %c0_2] : memref<4x10x10x8xf32, #tpu.memory_space<vmem>>, vector<4x10x10x8xf32>
    tpu.vector_store %arg7[%c0, %c0_0, %c0_1, %c0_2], %0 {strides = array<i32>} : memref<4x10x10x8xf32, #tpu.memory_space<vmem>>, vector<4x10x10x8xf32>,
    %c0_3 = arith.constant 0 : index
    %c0_4 = arith.constant 0 : index
    %2 = vector.load %arg3[%c0_3, %c0_4] : memref<1x8xf32, #tpu.memory_space<vmem>>, vector<1x8xf32>
    %c0_5 = arith.constant 0 : index
    %c0_6 = arith.constant 0 : index
    %c0_7 = arith.constant 0 : index
    %c0_8 = arith.constant 0 : index
    %3 = vector.load %arg1[%c0_5, %c0_6, %c0_7, %c0_8] : memref<1x9x9x4xf32, #tpu.memory_space<vmem>>, vector<1x8x8x4xf32>
    %4 = vector.shape_cast %3 : vector<1x8x8x4xf32> to vector<8x8x4xf32>
    %5 = vector.shape_cast %4 : vector<8x8x4xf32> to vector<64x4xf32>
    %c0_9 = arith.constant 0 : index
    %c0_10 = arith.constant 0 : index
    %6 = vector.load %arg2[%c0_9, %c0_10] : memref<36x8xf32, #tpu.memory_space<vmem>>, vector<4x8xf32>
    %cst_11 = arith.constant dense<0.000000e+00> : vector<64x8xf32>
    %7 = tpu.matmul %5, %6, %cst_11 {dimension_numbers = #tpu.dot_dimension_numbers<[1], [0], [0], [1], [0, 0, 1, 1], [], []>} : vector<64x4xf32>, vector<4x8xf32>, vector<64x8xf32> -> vector<64x8xf32>
    %8 = vector.broadcast %2 : vector<1x8xf32> to vector<64x8xf32>
    %9 = arith.addf %7, %8 : vector<64x8xf32>
    %cst_12 = arith.constant 0.000000e+00 : f32
    %10 = vector.broadcast %cst_12 : f32 to vector<64x8xf32>
    %11 = arith.cmpf ogt, %9, %10 : vector<64x8xf32>
    %cst_13 = arith.constant 2.000000e-01 : f32
    %12 = vector.broadcast %cst_13 : f32 to vector<64x8xf32>
    %13 = arith.mulf %12, %9 : vector<64x8xf32>
    %14 = arith.select %11, %9, %13 : vector<64x8xi1>, vector<64x8xf32>
    %15 = vector.shape_cast %14 : vector<64x8xf32> to vector<8x8x8xf32>
    %c0_14 = arith.constant 0 : index
    %c1 = arith.constant 1 : index
    %c1_15 = arith.constant 1 : index
    %c0_16 = arith.constant 0 : index
    %16 = vector.load %arg7[%c0_14, %c1, %c1_15, %c0_16] : memref<4x10x10x8xf32, #tpu.memory_space<vmem>>, vector<1x8x8x8xf32>
    %17 = vector.shape_cast %16 : vector<1x8x8x8xf32> to vector<8x8x8xf32>
    %18 = vector.shape_cast %15 : vector<8x8x8xf32> to vector<1x8x8x8xf32>
    tpu.vector_store %arg7[%c0_14, %c1, %c1_15, %c0_16], %18 {strides = array<i32>} : memref<4x10x10x8xf32, #tpu.memory_space<vmem>>, vector<1x8x8x8xf32>,
    %c0_17 = arith.constant 0 : index
    %c0_18 = arith.constant 0 : index
    %c0_19 = arith.constant 0 : index
    %c0_20 = arith.constant 0 : index
    %19 = vector.load %arg1[%c0_17, %c0_18, %c0_19, %c0_20] : memref<1x9x9x4xf32, #tpu.memory_space<vmem>>, vector<1x8x8x4xf32>
    %20 = vector.shape_cast %19 : vector<1x8x8x4xf32> to vector<8x8x4xf32>
    %c0_21 = arith.constant 0 : index
    %c0_22 = arith.constant 0 : index
    %c1_23 = arith.constant 1 : index
    %c0_24 = arith.constant 0 : index
    %21 = vector.load %arg1[%c0_21, %c0_22, %c1_23, %c0_24] : memref<1x9x9x4xf32, #tpu.memory_space<vmem>>, vector<1x8x8x4xf32>
    %22 = vector.shape_cast %21 : vector<1x8x8x4xf32> to vector<8x8x4xf32>
    %23 = tpu.concatenate %20, %22 in 2 : vector<8x8x4xf32>, vector<8x8x4xf32> -> vector<8x8x8xf32>
    %24 = vector.shape_cast %23 : vector<8x8x8xf32> to vector<64x8xf32>
    %c4 = arith.constant 4 : index
    %c0_25 = arith.constant 0 : index
    %25 = vector.load %arg2[%c4, %c0_25] : memref<36x8xf32, #tpu.memory_space<vmem>>, vector<8x8xf32>
    %cst_26 = arith.constant dense<0.000000e+00> : vector<64x8xf32>
    %26 = tpu.matmul %24, %25, %cst_26 {dimension_numbers = #tpu.dot_dimension_numbers<[1], [0], [0], [1], [0, 0, 1, 1], [], []>} : vector<64x8xf32>, vector<8x8xf32>, vector<64x8xf32> -> vector<64x8xf32>
    %27 = vector.broadcast %2 : vector<1x8xf32> to vector<64x8xf32>
    %28 = arith.addf %26, %27 : vector<64x8xf32>
    %cst_27 = arith.constant 0.000000e+00 : f32
    %29 = vector.broadcast %cst_27 : f32 to vector<64x8xf32>
    %30 = arith.cmpf ogt, %28, %29 : vector<64x8xf32>
    %cst_28 = arith.constant 2.000000e-01 : f32
    %31 = vector.broadcast %cst_28 : f32 to vector<64x8xf32>
    %32 = arith.mulf %31, %28 : vector<64x8xf32>
    %33 = arith.select %30, %28, %32 : vector<64x8xi1>, vector<64x8xf32>
    %34 = vector.shape_cast %33 : vector<64x8xf32> to vector<8x8x8xf32>
    %c1_29 = arith.constant 1 : index
    %c1_30 = arith.constant 1 : index
    %c1_31 = arith.constant 1 : index
    %c0_32 = arith.constant 0 : index
    %35 = vector.load %arg7[%c1_29, %c1_30, %c1_31, %c0_32] : memref<4x10x10x8xf32, #tpu.memory_space<vmem>>, vector<1x8x8x8xf32>
    %36 = vector.shape_cast %35 : vector<1x8x8x8xf32> to vector<8x8x8xf32>
    %37 = vector.shape_cast %34 : vector<8x8x8xf32> to vector<1x8x8x8xf32>
    tpu.vector_store %arg7[%c1_29, %c1_30, %c1_31, %c0_32], %37 {strides = array<i32>} : memref<4x10x10x8xf32, #tpu.memory_space<vmem>>, vector<1x8x8x8xf32>,
    %c0_33 = arith.constant 0 : index
    %c0_34 = arith.constant 0 : index
    %c0_35 = arith.constant 0 : index
    %c0_36 = arith.constant 0 : index
    %38 = vector.load %arg1[%c0_33, %c0_34, %c0_35, %c0_36] : memref<1x9x9x4xf32, #tpu.memory_space<vmem>>, vector<1x8x8x4xf32>
    %39 = vector.shape_cast %38 : vector<1x8x8x4xf32> to vector<8x8x4xf32>
    %c0_37 = arith.constant 0 : index
    %c1_38 = arith.constant 1 : index
    %c0_39 = arith.constant 0 : index
    %c0_40 = arith.constant 0 : index
    %40 = vector.load %arg1[%c0_37, %c1_38, %c0_39, %c0_40] : memref<1x9x9x4xf32, #tpu.memory_space<vmem>>, vector<1x8x8x4xf32>
    %41 = vector.shape_cast %40 : vector<1x8x8x4xf32> to vector<8x8x4xf32>
    %42 = tpu.concatenate %39, %41 in 2 : vector<8x8x4xf32>, vector<8x8x4xf32> -> vector<8x8x8xf32>
    %43 = vector.shape_cast %42 : vector<8x8x8xf32> to vector<64x8xf32>
    %c12 = arith.constant 12 : index
    %c0_41 = arith.constant 0 : index
    %44 = vector.load %arg2[%c12, %c0_41] : memref<36x8xf32, #tpu.memory_space<vmem>>, vector<8x8xf32>
    %cst_42 = arith.constant dense<0.000000e+00> : vector<64x8xf32>
    %45 = tpu.matmul %43, %44, %cst_42 {dimension_numbers = #tpu.dot_dimension_numbers<[1], [0], [0], [1], [0, 0, 1, 1], [], []>} : vector<64x8xf32>, vector<8x8xf32>, vector<64x8xf32> -> vector<64x8xf32>
    %46 = vector.broadcast %2 : vector<1x8xf32> to vector<64x8xf32>
    %47 = arith.addf %45, %46 : vector<64x8xf32>
    %cst_43 = arith.constant 0.000000e+00 : f32
    %48 = vector.broadcast %cst_43 : f32 to vector<64x8xf32>
    %49 = arith.cmpf ogt, %47, %48 : vector<64x8xf32>
    %cst_44 = arith.constant 2.000000e-01 : f32
    %50 = vector.broadcast %cst_44 : f32 to vector<64x8xf32>
    %51 = arith.mulf %50, %47 : vector<64x8xf32>
    %52 = arith.select %49, %47, %51 : vector<64x8xi1>, vector<64x8xf32>
    %53 = vector.shape_cast %52 : vector<64x8xf32> to vector<8x8x8xf32>
    %c2 = arith.constant 2 : index
    %c1_45 = arith.constant 1 : index
    %c1_46 = arith.constant 1 : index
    %c0_47 = arith.constant 0 : index
    %54 = vector.load %arg7[%c2, %c1_45, %c1_46, %c0_47] : memref<4x10x10x8xf32, #tpu.memory_space<vmem>>, vector<1x8x8x8xf32>
    %55 = vector.shape_cast %54 : vector<1x8x8x8xf32> to vector<8x8x8xf32>
    %56 = vector.shape_cast %53 : vector<8x8x8xf32> to vector<1x8x8x8xf32>
    tpu.vector_store %arg7[%c2, %c1_45, %c1_46, %c0_47], %56 {strides = array<i32>} : memref<4x10x10x8xf32, #tpu.memory_space<vmem>>, vector<1x8x8x8xf32>,
    %c0_48 = arith.constant 0 : index
    %c0_49 = arith.constant 0 : index
    %c0_50 = arith.constant 0 : index
    %c0_51 = arith.constant 0 : index
    %57 = vector.load %arg1[%c0_48, %c0_49, %c0_50, %c0_51] : memref<1x9x9x4xf32, #tpu.memory_space<vmem>>, vector<1x8x8x4xf32>
    %58 = vector.shape_cast %57 : vector<1x8x8x4xf32> to vector<8x8x4xf32>
    %c0_52 = arith.constant 0 : index
    %c0_53 = arith.constant 0 : index
    %c1_54 = arith.constant 1 : index
    %c0_55 = arith.constant 0 : index
    %59 = vector.load %arg1[%c0_52, %c0_53, %c1_54, %c0_55] : memref<1x9x9x4xf32, #tpu.memory_space<vmem>>, vector<1x8x8x4xf32>
    %60 = vector.shape_cast %59 : vector<1x8x8x4xf32> to vector<8x8x4xf32>
    %c0_56 = arith.constant 0 : index
    %c1_57 = arith.constant 1 : index
    %c0_58 = arith.constant 0 : index
    %c0_59 = arith.constant 0 : index
    %61 = vector.load %arg1[%c0_56, %c1_57, %c0_58, %c0_59] : memref<1x9x9x4xf32, #tpu.memory_space<vmem>>, vector<1x8x8x4xf32>
    %62 = vector.shape_cast %61 : vector<1x8x8x4xf32> to vector<8x8x4xf32>
    %c0_60 = arith.constant 0 : index
    %c1_61 = arith.constant 1 : index
    %c1_62 = arith.constant 1 : index
    %c0_63 = arith.constant 0 : index
    %63 = vector.load %arg1[%c0_60, %c1_61, %c1_62, %c0_63] : memref<1x9x9x4xf32, #tpu.memory_space<vmem>>, vector<1x8x8x4xf32>
    %64 = vector.shape_cast %63 : vector<1x8x8x4xf32> to vector<8x8x4xf32>
    %65 = tpu.concatenate %58, %60, %62, %64 in 2 : vector<8x8x4xf32>, vector<8x8x4xf32>, vector<8x8x4xf32>, vector<8x8x4xf32> -> vector<8x8x16xf32>
    %66 = vector.shape_cast %65 : vector<8x8x16xf32> to vector<64x16xf32>
    %c20 = arith.constant 20 : index
    %c0_64 = arith.constant 0 : index
    %67 = vector.load %arg2[%c20, %c0_64] : memref<36x8xf32, #tpu.memory_space<vmem>>, vector<16x8xf32>
    %cst_65 = arith.constant dense<0.000000e+00> : vector<64x8xf32>
    %68 = tpu.matmul %66, %67, %cst_65 {dimension_numbers = #tpu.dot_dimension_numbers<[1], [0], [0], [1], [0, 0, 1, 1], [], []>} : vector<64x16xf32>, vector<16x8xf32>, vector<64x8xf32> -> vector<64x8xf32>
    %69 = vector.broadcast %2 : vector<1x8xf32> to vector<64x8xf32>
    %70 = arith.addf %68, %69 : vector<64x8xf32>
    %cst_66 = arith.constant 0.000000e+00 : f32
    %71 = vector.broadcast %cst_66 : f32 to vector<64x8xf32>
    %72 = arith.cmpf ogt, %70, %71 : vector<64x8xf32>
    %cst_67 = arith.constant 2.000000e-01 : f32
    %73 = vector.broadcast %cst_67 : f32 to vector<64x8xf32>
    %74 = arith.mulf %73, %70 : vector<64x8xf32>
    %75 = arith.select %72, %70, %74 : vector<64x8xi1>, vector<64x8xf32>
    %76 = vector.shape_cast %75 : vector<64x8xf32> to vector<8x8x8xf32>
    %c3 = arith.constant 3 : index
    %c1_68 = arith.constant 1 : index
    %c1_69 = arith.constant 1 : index
    %c0_70 = arith.constant 0 : index
    %77 = vector.load %arg7[%c3, %c1_68, %c1_69, %c0_70] : memref<4x10x10x8xf32, #tpu.memory_space<vmem>>, vector<1x8x8x8xf32>
    %78 = vector.shape_cast %77 : vector<1x8x8x8xf32> to vector<8x8x8xf32>
    %79 = vector.shape_cast %76 : vector<8x8x8xf32> to vector<1x8x8x8xf32>
    tpu.vector_store %arg7[%c3, %c1_68, %c1_69, %c0_70], %79 {strides = array<i32>} : memref<4x10x10x8xf32, #tpu.memory_space<vmem>>, vector<1x8x8x8xf32>,
    %c0_71 = arith.constant 0 : index
    %c0_72 = arith.constant 0 : index
    %80 = vector.load %arg5[%c0_71, %c0_72] : memref<1x8xf32, #tpu.memory_space<vmem>>, vector<1x8xf32>
    %c0_73 = arith.constant 0 : index
    %c0_74 = arith.constant 0 : index
    %81 = vector.load %arg4[%c0_73, %c0_74] : memref<72x8xf32, #tpu.memory_space<vmem>>, vector<72x8xf32>
    %c3_75 = arith.constant 3 : index
    %c0_76 = arith.constant 0 : index
    %c0_77 = arith.constant 0 : index
    %c0_78 = arith.constant 0 : index
    %82 = vector.load %arg7[%c3_75, %c0_76, %c0_77, %c0_78] : memref<4x10x10x8xf32, #tpu.memory_space<vmem>>, vector<1x8x8x8xf32>
    %83 = vector.shape_cast %82 : vector<1x8x8x8xf32> to vector<8x8x8xf32>
    %c2_79 = arith.constant 2 : index
    %c0_80 = arith.constant 0 : index
    %c1_81 = arith.constant 1 : index
    %c0_82 = arith.constant 0 : index
    %84 = vector.load %arg7[%c2_79, %c0_80, %c1_81, %c0_82] : memref<4x10x10x8xf32, #tpu.memory_space<vmem>>, vector<1x8x8x8xf32>
    %85 = vector.shape_cast %84 : vector<1x8x8x8xf32> to vector<8x8x8xf32>
    %c3_83 = arith.constant 3 : index
    %c0_84 = arith.constant 0 : index
    %c1_85 = arith.constant 1 : index
    %c0_86 = arith.constant 0 : index
    %86 = vector.load %arg7[%c3_83, %c0_84, %c1_85, %c0_86] : memref<4x10x10x8xf32, #tpu.memory_space<vmem>>, vector<1x8x8x8xf32>
    %87 = vector.shape_cast %86 : vector<1x8x8x8xf32> to vector<8x8x8xf32>
    %c1_87 = arith.constant 1 : index
    %c1_88 = arith.constant 1 : index
    %c0_89 = arith.constant 0 : index
    %c0_90 = arith.constant 0 : index
    %88 = vector.load %arg7[%c1_87, %c1_88, %c0_89, %c0_90] : memref<4x10x10x8xf32, #tpu.memory_space<vmem>>, vector<1x8x8x8xf32>
    %89 = vector.shape_cast %88 : vector<1x8x8x8xf32> to vector<8x8x8xf32>
    %c0_91 = arith.constant 0 : index
    %c1_92 = arith.constant 1 : index
    %c1_93 = arith.constant 1 : index
    %c0_94 = arith.constant 0 : index
    %90 = vector.load %arg7[%c0_91, %c1_92, %c1_93, %c0_94] : memref<4x10x10x8xf32, #tpu.memory_space<vmem>>, vector<1x8x8x8xf32>
    %91 = vector.shape_cast %90 : vector<1x8x8x8xf32> to vector<8x8x8xf32>
    %c1_95 = arith.constant 1 : index
    %c1_96 = arith.constant 1 : index
    %c1_97 = arith.constant 1 : index
    %c0_98 = arith.constant 0 : index
    %92 = vector.load %arg7[%c1_95, %c1_96, %c1_97, %c0_98] : memref<4x10x10x8xf32, #tpu.memory_space<vmem>>, vector<1x8x8x8xf32>
    %93 = vector.shape_cast %92 : vector<1x8x8x8xf32> to vector<8x8x8xf32>
    %c3_99 = arith.constant 3 : index
    %c1_100 = arith.constant 1 : index
    %c0_101 = arith.constant 0 : index
    %c0_102 = arith.constant 0 : index
    %94 = vector.load %arg7[%c3_99, %c1_100, %c0_101, %c0_102] : memref<4x10x10x8xf32, #tpu.memory_space<vmem>>, vector<1x8x8x8xf32>
    %95 = vector.shape_cast %94 : vector<1x8x8x8xf32> to vector<8x8x8xf32>
    %c2_103 = arith.constant 2 : index
    %c1_104 = arith.constant 1 : index
    %c1_105 = arith.constant 1 : index
    %c0_106 = arith.constant 0 : index
    %96 = vector.load %arg7[%c2_103, %c1_104, %c1_105, %c0_106] : memref<4x10x10x8xf32, #tpu.memory_space<vmem>>, vector<1x8x8x8xf32>
    %97 = vector.shape_cast %96 : vector<1x8x8x8xf32> to vector<8x8x8xf32>
    %c3_107 = arith.constant 3 : index
    %c1_108 = arith.constant 1 : index
    %c1_109 = arith.constant 1 : index
    %c0_110 = arith.constant 0 : index
    %98 = vector.load %arg7[%c3_107, %c1_108, %c1_109, %c0_110] : memref<4x10x10x8xf32, #tpu.memory_space<vmem>>, vector<1x8x8x8xf32>
    %99 = vector.shape_cast %98 : vector<1x8x8x8xf32> to vector<8x8x8xf32>
    %100 = tpu.concatenate %83, %85, %87, %89, %91, %93, %95, %97, %99 in 2 : vector<8x8x8xf32>, vector<8x8x8xf32>, vector<8x8x8xf32>, vector<8x8x8xf32>, vector<8x8x8xf32>, vector<8x8x8xf32>, vector<8x8x8xf32>, vector<8x8x8xf32>, vector<8x8x8xf32> -> vector<8x8x72xf32>
    %101 = vector.shape_cast %100 : vector<8x8x72xf32> to vector<64x72xf32>
    %cst_111 = arith.constant dense<0.000000e+00> : vector<64x8xf32>
    %102 = tpu.matmul %101, %81, %cst_111 {dimension_numbers = #tpu.dot_dimension_numbers<[1], [0], [0], [1], [0, 0, 1, 1], [], []>} : vector<64x72xf32>, vector<72x8xf32>, vector<64x8xf32> -> vector<64x8xf32>
    %103 = vector.broadcast %80 : vector<1x8xf32> to vector<64x8xf32>
    %104 = arith.addf %102, %103 : vector<64x8xf32>
    %cst_112 = arith.constant 0.000000e+00 : f32
    %105 = vector.broadcast %cst_112 : f32 to vector<64x8xf32>
    %106 = arith.cmpf ogt, %104, %105 : vector<64x8xf32>
    %cst_113 = arith.constant 2.000000e-01 : f32
    %107 = vector.broadcast %cst_113 : f32 to vector<64x8xf32>
    %108 = arith.mulf %107, %104 : vector<64x8xf32>
    %109 = arith.select %106, %104, %108 : vector<64x8xi1>, vector<64x8xf32>
    %110 = vector.shape_cast %109 : vector<64x8xf32> to vector<8x8x8xf32>
    %c0_114 = arith.constant 0 : index
    %c0_115 = arith.constant 0 : index
    %c0_116 = arith.constant 0 : index
    %c0_117 = arith.constant 0 : index
    %c0_118 = arith.constant 0 : index
    %111 = vector.load %arg6[%c0_114, %c0_115, %c0_116, %c0_117, %c0_118] : memref<1x4x8x8x8xf32, #tpu.memory_space<vmem>>, vector<1x1x8x8x8xf32>
    %112 = vector.shape_cast %111 : vector<1x1x8x8x8xf32> to vector<8x8x8xf32>
    %113 = vector.shape_cast %110 : vector<8x8x8xf32> to vector<1x1x8x8x8xf32>
    tpu.vector_store %arg6[%c0_114, %c0_115, %c0_116, %c0_117, %c0_118], %113 {strides = array<i32>} : memref<1x4x8x8x8xf32, #tpu.memory_space<vmem>>, vector<1x1x8x8x8xf32>,
    %c2_119 = arith.constant 2 : index
    %c0_120 = arith.constant 0 : index
    %c1_121 = arith.constant 1 : index
    %c0_122 = arith.constant 0 : index
    %114 = vector.load %arg7[%c2_119, %c0_120, %c1_121, %c0_122] : memref<4x10x10x8xf32, #tpu.memory_space<vmem>>, vector<1x8x8x8xf32>
    %115 = vector.shape_cast %114 : vector<1x8x8x8xf32> to vector<8x8x8xf32>
    %c3_123 = arith.constant 3 : index
    %c0_124 = arith.constant 0 : index
    %c1_125 = arith.constant 1 : index
    %c0_126 = arith.constant 0 : index
    %116 = vector.load %arg7[%c3_123, %c0_124, %c1_125, %c0_126] : memref<4x10x10x8xf32, #tpu.memory_space<vmem>>, vector<1x8x8x8xf32>
    %117 = vector.shape_cast %116 : vector<1x8x8x8xf32> to vector<8x8x8xf32>
    %c2_127 = arith.constant 2 : index
    %c0_128 = arith.constant 0 : index
    %c2_129 = arith.constant 2 : index
    %c0_130 = arith.constant 0 : index
    %118 = vector.load %arg7[%c2_127, %c0_128, %c2_129, %c0_130] : memref<4x10x10x8xf32, #tpu.memory_space<vmem>>, vector<1x8x8x8xf32>
    %119 = vector.shape_cast %118 : vector<1x8x8x8xf32> to vector<8x8x8xf32>
    %c0_131 = arith.constant 0 : index
    %c1_132 = arith.constant 1 : index
    %c1_133 = arith.constant 1 : index
    %c0_134 = arith.constant 0 : index
    %120 = vector.load %arg7[%c0_131, %c1_132, %c1_133, %c0_134] : memref<4x10x10x8xf32, #tpu.memory_space<vmem>>, vector<1x8x8x8xf32>
    %121 = vector.shape_cast %120 : vector<1x8x8x8xf32> to vector<8x8x8xf32>
    %c1_135 = arith.constant 1 : index
    %c1_136 = arith.constant 1 : index
    %c1_137 = arith.constant 1 : index
    %c0_138 = arith.constant 0 : index
    %122 = vector.load %arg7[%c1_135, %c1_136, %c1_137, %c0_138] : memref<4x10x10x8xf32, #tpu.memory_space<vmem>>, vector<1x8x8x8xf32>
    %123 = vector.shape_cast %122 : vector<1x8x8x8xf32> to vector<8x8x8xf32>
    %c0_139 = arith.constant 0 : index
    %c1_140 = arith.constant 1 : index
    %c2_141 = arith.constant 2 : index
    %c0_142 = arith.constant 0 : index
    %124 = vector.load %arg7[%c0_139, %c1_140, %c2_141, %c0_142] : memref<4x10x10x8xf32, #tpu.memory_space<vmem>>, vector<1x8x8x8xf32>
    %125 = vector.shape_cast %124 : vector<1x8x8x8xf32> to vector<8x8x8xf32>
    %c2_143 = arith.constant 2 : index
    %c1_144 = arith.constant 1 : index
    %c1_145 = arith.constant 1 : index
    %c0_146 = arith.constant 0 : index
    %126 = vector.load %arg7[%c2_143, %c1_144, %c1_145, %c0_146] : memref<4x10x10x8xf32, #tpu.memory_space<vmem>>, vector<1x8x8x8xf32>
    %127 = vector.shape_cast %126 : vector<1x8x8x8xf32> to vector<8x8x8xf32>
    %c3_147 = arith.constant 3 : index
    %c1_148 = arith.constant 1 : index
    %c1_149 = arith.constant 1 : index
    %c0_150 = arith.constant 0 : index
    %128 = vector.load %arg7[%c3_147, %c1_148, %c1_149, %c0_150] : memref<4x10x10x8xf32, #tpu.memory_space<vmem>>, vector<1x8x8x8xf32>
    %129 = vector.shape_cast %128 : vector<1x8x8x8xf32> to vector<8x8x8xf32>
    %c2_151 = arith.constant 2 : index
    %c1_152 = arith.constant 1 : index
    %c2_153 = arith.constant 2 : index
    %c0_154 = arith.constant 0 : index
    %130 = vector.load %arg7[%c2_151, %c1_152, %c2_153, %c0_154] : memref<4x10x10x8xf32, #tpu.memory_space<vmem>>, vector<1x8x8x8xf32>
    %131 = vector.shape_cast %130 : vector<1x8x8x8xf32> to vector<8x8x8xf32>
    %132 = tpu.concatenate %115, %117, %119, %121, %123, %125, %127, %129, %131 in 2 : vector<8x8x8xf32>, vector<8x8x8xf32>, vector<8x8x8xf32>, vector<8x8x8xf32>, vector<8x8x8xf32>, vector<8x8x8xf32>, vector<8x8x8xf32>, vector<8x8x8xf32>, vector<8x8x8xf32> -> vector<8x8x72xf32>
    %133 = vector.shape_cast %132 : vector<8x8x72xf32> to vector<64x72xf32>
    %cst_155 = arith.constant dense<0.000000e+00> : vector<64x8xf32>
    %134 = tpu.matmul %133, %81, %cst_155 {dimension_numbers = #tpu.dot_dimension_numbers<[1], [0], [0], [1], [0, 0, 1, 1], [], []>} : vector<64x72xf32>, vector<72x8xf32>, vector<64x8xf32> -> vector<64x8xf32>
    %135 = vector.broadcast %80 : vector<1x8xf32> to vector<64x8xf32>
    %136 = arith.addf %134, %135 : vector<64x8xf32>
    %cst_156 = arith.constant 0.000000e+00 : f32
    %137 = vector.broadcast %cst_156 : f32 to vector<64x8xf32>
    %138 = arith.cmpf ogt, %136, %137 : vector<64x8xf32>
    %cst_157 = arith.constant 2.000000e-01 : f32
    %139 = vector.broadcast %cst_157 : f32 to vector<64x8xf32>
    %140 = arith.mulf %139, %136 : vector<64x8xf32>
    %141 = arith.select %138, %136, %140 : vector<64x8xi1>, vector<64x8xf32>
    %142 = vector.shape_cast %141 : vector<64x8xf32> to vector<8x8x8xf32>
    %c0_158 = arith.constant 0 : index
    %c1_159 = arith.constant 1 : index
    %c0_160 = arith.constant 0 : index
    %c0_161 = arith.constant 0 : index
    %c0_162 = arith.constant 0 : index
    %143 = vector.load %arg6[%c0_158, %c1_159, %c0_160, %c0_161, %c0_162] : memref<1x4x8x8x8xf32, #tpu.memory_space<vmem>>, vector<1x1x8x8x8xf32>
    %144 = vector.shape_cast %143 : vector<1x1x8x8x8xf32> to vector<8x8x8xf32>
    %145 = vector.shape_cast %142 : vector<8x8x8xf32> to vector<1x1x8x8x8xf32>
    tpu.vector_store %arg6[%c0_158, %c1_159, %c0_160, %c0_161, %c0_162], %145 {strides = array<i32>} : memref<1x4x8x8x8xf32, #tpu.memory_space<vmem>>, vector<1x1x8x8x8xf32>,
    %c1_163 = arith.constant 1 : index
    %c1_164 = arith.constant 1 : index
    %c0_165 = arith.constant 0 : index
    %c0_166 = arith.constant 0 : index
    %146 = vector.load %arg7[%c1_163, %c1_164, %c0_165, %c0_166] : memref<4x10x10x8xf32, #tpu.memory_space<vmem>>, vector<1x8x8x8xf32>
    %147 = vector.shape_cast %146 : vector<1x8x8x8xf32> to vector<8x8x8xf32>
    %c0_167 = arith.constant 0 : index
    %c1_168 = arith.constant 1 : index
    %c1_169 = arith.constant 1 : index
    %c0_170 = arith.constant 0 : index
    %148 = vector.load %arg7[%c0_167, %c1_168, %c1_169, %c0_170] : memref<4x10x10x8xf32, #tpu.memory_space<vmem>>, vector<1x8x8x8xf32>
    %149 = vector.shape_cast %148 : vector<1x8x8x8xf32> to vector<8x8x8xf32>
    %c1_171 = arith.constant 1 : index
    %c1_172 = arith.constant 1 : index
    %c1_173 = arith.constant 1 : index
    %c0_174 = arith.constant 0 : index
    %150 = vector.load %arg7[%c1_171, %c1_172, %c1_173, %c0_174] : memref<4x10x10x8xf32, #tpu.memory_space<vmem>>, vector<1x8x8x8xf32>
    %151 = vector.shape_cast %150 : vector<1x8x8x8xf32> to vector<8x8x8xf32>
    %c3_175 = arith.constant 3 : index
    %c1_176 = arith.constant 1 : index
    %c0_177 = arith.constant 0 : index
    %c0_178 = arith.constant 0 : index
    %152 = vector.load %arg7[%c3_175, %c1_176, %c0_177, %c0_178] : memref<4x10x10x8xf32, #tpu.memory_space<vmem>>, vector<1x8x8x8xf32>
    %153 = vector.shape_cast %152 : vector<1x8x8x8xf32> to vector<8x8x8xf32>
    %c2_179 = arith.constant 2 : index
    %c1_180 = arith.constant 1 : index
    %c1_181 = arith.constant 1 : index
    %c0_182 = arith.constant 0 : index
    %154 = vector.load %arg7[%c2_179, %c1_180, %c1_181, %c0_182] : memref<4x10x10x8xf32, #tpu.memory_space<vmem>>, vector<1x8x8x8xf32>
    %155 = vector.shape_cast %154 : vector<1x8x8x8xf32> to vector<8x8x8xf32>
    %c3_183 = arith.constant 3 : index
    %c1_184 = arith.constant 1 : index
    %c1_185 = arith.constant 1 : index
    %c0_186 = arith.constant 0 : index
    %156 = vector.load %arg7[%c3_183, %c1_184, %c1_185, %c0_186] : memref<4x10x10x8xf32, #tpu.memory_space<vmem>>, vector<1x8x8x8xf32>
    %157 = vector.shape_cast %156 : vector<1x8x8x8xf32> to vector<8x8x8xf32>
    %c1_187 = arith.constant 1 : index
    %c2_188 = arith.constant 2 : index
    %c0_189 = arith.constant 0 : index
    %c0_190 = arith.constant 0 : index
    %158 = vector.load %arg7[%c1_187, %c2_188, %c0_189, %c0_190] : memref<4x10x10x8xf32, #tpu.memory_space<vmem>>, vector<1x8x8x8xf32>
    %159 = vector.shape_cast %158 : vector<1x8x8x8xf32> to vector<8x8x8xf32>
    %c0_191 = arith.constant 0 : index
    %c2_192 = arith.constant 2 : index
    %c1_193 = arith.constant 1 : index
    %c0_194 = arith.constant 0 : index
    %160 = vector.load %arg7[%c0_191, %c2_192, %c1_193, %c0_194] : memref<4x10x10x8xf32, #tpu.memory_space<vmem>>, vector<1x8x8x8xf32>
    %161 = vector.shape_cast %160 : vector<1x8x8x8xf32> to vector<8x8x8xf32>
    %c1_195 = arith.constant 1 : index
    %c2_196 = arith.constant 2 : index
    %c1_197 = arith.constant 1 : index
    %c0_198 = arith.constant 0 : index
    %162 = vector.load %arg7[%c1_195, %c2_196, %c1_197, %c0_198] : memref<4x10x10x8xf32, #tpu.memory_space<vmem>>, vector<1x8x8x8xf32>
    %163 = vector.shape_cast %162 : vector<1x8x8x8xf32> to vector<8x8x8xf32>
    %164 = tpu.concatenate %147, %149, %151, %153, %155, %157, %159, %161, %163 in 2 : vector<8x8x8xf32>, vector<8x8x8xf32>, vector<8x8x8xf32>, vector<8x8x8xf32>, vector<8x8x8xf32>, vector<8x8x8xf32>, vector<8x8x8xf32>, vector<8x8x8xf32>, vector<8x8x8xf32> -> vector<8x8x72xf32>
    %165 = vector.shape_cast %164 : vector<8x8x72xf32> to vector<64x72xf32>
    %cst_199 = arith.constant dense<0.000000e+00> : vector<64x8xf32>
    %166 = tpu.matmul %165, %81, %cst_199 {dimension_numbers = #tpu.dot_dimension_numbers<[1], [0], [0], [1], [0, 0, 1, 1], [], []>} : vector<64x72xf32>, vector<72x8xf32>, vector<64x8xf32> -> vector<64x8xf32>
    %167 = vector.broadcast %80 : vector<1x8xf32> to vector<64x8xf32>
    %168 = arith.addf %166, %167 : vector<64x8xf32>
    %cst_200 = arith.constant 0.000000e+00 : f32
    %169 = vector.broadcast %cst_200 : f32 to vector<64x8xf32>
    %170 = arith.cmpf ogt, %168, %169 : vector<64x8xf32>
    %cst_201 = arith.constant 2.000000e-01 : f32
    %171 = vector.broadcast %cst_201 : f32 to vector<64x8xf32>
    %172 = arith.mulf %171, %168 : vector<64x8xf32>
    %173 = arith.select %170, %168, %172 : vector<64x8xi1>, vector<64x8xf32>
    %174 = vector.shape_cast %173 : vector<64x8xf32> to vector<8x8x8xf32>
    %c0_202 = arith.constant 0 : index
    %c2_203 = arith.constant 2 : index
    %c0_204 = arith.constant 0 : index
    %c0_205 = arith.constant 0 : index
    %c0_206 = arith.constant 0 : index
    %175 = vector.load %arg6[%c0_202, %c2_203, %c0_204, %c0_205, %c0_206] : memref<1x4x8x8x8xf32, #tpu.memory_space<vmem>>, vector<1x1x8x8x8xf32>
    %176 = vector.shape_cast %175 : vector<1x1x8x8x8xf32> to vector<8x8x8xf32>
    %177 = vector.shape_cast %174 : vector<8x8x8xf32> to vector<1x1x8x8x8xf32>
    tpu.vector_store %arg6[%c0_202, %c2_203, %c0_204, %c0_205, %c0_206], %177 {strides = array<i32>} : memref<1x4x8x8x8xf32, #tpu.memory_space<vmem>>, vector<1x1x8x8x8xf32>,
    %c0_207 = arith.constant 0 : index
    %c1_208 = arith.constant 1 : index
    %c1_209 = arith.constant 1 : index
    %c0_210 = arith.constant 0 : index
    %178 = vector.load %arg7[%c0_207, %c1_208, %c1_209, %c0_210] : memref<4x10x10x8xf32, #tpu.memory_space<vmem>>, vector<1x8x8x8xf32>
    %179 = vector.shape_cast %178 : vector<1x8x8x8xf32> to vector<8x8x8xf32>
    %c1_211 = arith.constant 1 : index
    %c1_212 = arith.constant 1 : index
    %c1_213 = arith.constant 1 : index
    %c0_214 = arith.constant 0 : index
    %180 = vector.load %arg7[%c1_211, %c1_212, %c1_213, %c0_214] : memref<4x10x10x8xf32, #tpu.memory_space<vmem>>, vector<1x8x8x8xf32>
    %181 = vector.shape_cast %180 : vector<1x8x8x8xf32> to vector<8x8x8xf32>
    %c0_215 = arith.constant 0 : index
    %c1_216 = arith.constant 1 : index
    %c2_217 = arith.constant 2 : index
    %c0_218 = arith.constant 0 : index
    %182 = vector.load %arg7[%c0_215, %c1_216, %c2_217, %c0_218] : memref<4x10x10x8xf32, #tpu.memory_space<vmem>>, vector<1x8x8x8xf32>
    %183 = vector.shape_cast %182 : vector<1x8x8x8xf32> to vector<8x8x8xf32>
    %c2_219 = arith.constant 2 : index
    %c1_220 = arith.constant 1 : index
    %c1_221 = arith.constant 1 : index
    %c0_222 = arith.constant 0 : index
    %184 = vector.load %arg7[%c2_219, %c1_220, %c1_221, %c0_222] : memref<4x10x10x8xf32, #tpu.memory_space<vmem>>, vector<1x8x8x8xf32>
    %185 = vector.shape_cast %184 : vector<1x8x8x8xf32> to vector<8x8x8xf32>
    %c3_223 = arith.constant 3 : index
    %c1_224 = arith.constant 1 : index
    %c1_225 = arith.constant 1 : index
    %c0_226 = arith.constant 0 : index
    %186 = vector.load %arg7[%c3_223, %c1_224, %c1_225, %c0_226] : memref<4x10x10x8xf32, #tpu.memory_space<vmem>>, vector<1x8x8x8xf32>
    %187 = vector.shape_cast %186 : vector<1x8x8x8xf32> to vector<8x8x8xf32>
    %c2_227 = arith.constant 2 : index
    %c1_228 = arith.constant 1 : index
    %c2_229 = arith.constant 2 : index
    %c0_230 = arith.constant 0 : index
    %188 = vector.load %arg7[%c2_227, %c1_228, %c2_229, %c0_230] : memref<4x10x10x8xf32, #tpu.memory_space<vmem>>, vector<1x8x8x8xf32>
    %189 = vector.shape_cast %188 : vector<1x8x8x8xf32> to vector<8x8x8xf32>
    %c0_231 = arith.constant 0 : index
    %c2_232 = arith.constant 2 : index
    %c1_233 = arith.constant 1 : index
    %c0_234 = arith.constant 0 : index
    %190 = vector.load %arg7[%c0_231, %c2_232, %c1_233, %c0_234] : memref<4x10x10x8xf32, #tpu.memory_space<vmem>>, vector<1x8x8x8xf32>
    %191 = vector.shape_cast %190 : vector<1x8x8x8xf32> to vector<8x8x8xf32>
    %c1_235 = arith.constant 1 : index
    %c2_236 = arith.constant 2 : index
    %c1_237 = arith.constant 1 : index
    %c0_238 = arith.constant 0 : index
    %192 = vector.load %arg7[%c1_235, %c2_236, %c1_237, %c0_238] : memref<4x10x10x8xf32, #tpu.memory_space<vmem>>, vector<1x8x8x8xf32>
    %193 = vector.shape_cast %192 : vector<1x8x8x8xf32> to vector<8x8x8xf32>
    %c0_239 = arith.constant 0 : index
    %c2_240 = arith.constant 2 : index
    %c2_241 = arith.constant 2 : index
    %c0_242 = arith.constant 0 : index
    %194 = vector.load %arg7[%c0_239, %c2_240, %c2_241, %c0_242] : memref<4x10x10x8xf32, #tpu.memory_space<vmem>>, vector<1x8x8x8xf32>
    %195 = vector.shape_cast %194 : vector<1x8x8x8xf32> to vector<8x8x8xf32>
    %196 = tpu.concatenate %179, %181, %183, %185, %187, %189, %191, %193, %195 in 2 : vector<8x8x8xf32>, vector<8x8x8xf32>, vector<8x8x8xf32>, vector<8x8x8xf32>, vector<8x8x8xf32>, vector<8x8x8xf32>, vector<8x8x8xf32>, vector<8x8x8xf32>, vector<8x8x8xf32> -> vector<8x8x72xf32>
    %197 = vector.shape_cast %196 : vector<8x8x72xf32> to vector<64x72xf32>
    %cst_243 = arith.constant dense<0.000000e+00> : vector<64x8xf32>
    %198 = tpu.matmul %197, %81, %cst_243 {dimension_numbers = #tpu.dot_dimension_numbers<[1], [0], [0], [1], [0, 0, 1, 1], [], []>} : vector<64x72xf32>, vector<72x8xf32>, vector<64x8xf32> -> vector<64x8xf32>
    %199 = vector.broadcast %80 : vector<1x8xf32> to vector<64x8xf32>
    %200 = arith.addf %198, %199 : vector<64x8xf32>
    %cst_244 = arith.constant 0.000000e+00 : f32
    %201 = vector.broadcast %cst_244 : f32 to vector<64x8xf32>
    %202 = arith.cmpf ogt, %200, %201 : vector<64x8xf32>
    %cst_245 = arith.constant 2.000000e-01 : f32
    %203 = vector.broadcast %cst_245 : f32 to vector<64x8xf32>
    %204 = arith.mulf %203, %200 : vector<64x8xf32>
    %205 = arith.select %202, %200, %204 : vector<64x8xi1>, vector<64x8xf32>
    %206 = vector.shape_cast %205 : vector<64x8xf32> to vector<8x8x8xf32>
    %c0_246 = arith.constant 0 : index
    %c3_247 = arith.constant 3 : index
    %c0_248 = arith.constant 0 : index
    %c0_249 = arith.constant 0 : index
    %c0_250 = arith.constant 0 : index
    %207 = vector.load %arg6[%c0_246, %c3_247, %c0_248, %c0_249, %c0_250] : memref<1x4x8x8x8xf32, #tpu.memory_space<vmem>>, vector<1x1x8x8x8xf32>
    %208 = vector.shape_cast %207 : vector<1x1x8x8x8xf32> to vector<8x8x8xf32>
    %209 = vector.shape_cast %206 : vector<8x8x8xf32> to vector<1x1x8x8x8xf32>
    tpu.vector_store %arg6[%c0_246, %c3_247, %c0_248, %c0_249, %c0_250], %209 {strides = array<i32>} : memref<1x4x8x8x8xf32, #tpu.memory_space<vmem>>, vector<1x1x8x8x8xf32>,
    return
  }
  func.func @transform_0(%arg0: i32) -> (i32, i32, i32, i32) {
    %c0_i32 = arith.constant 0 : i32
    %c0_i32_0 = arith.constant 0 : i32
    %c0_i32_1 = arith.constant 0 : i32
    %c0_i32_2 = arith.constant 0 : i32
    return %arg0, %c0_i32, %c0_i32_0, %c0_i32_1 : i32, i32, i32, i32
  }
  func.func @transform_1(%arg0: i32) -> (i32, i32) {
    %c0_i32 = arith.constant 0 : i32
    %c0_i32_0 = arith.constant 0 : i32
    %c0_i32_1 = arith.constant 0 : i32
    return %c0_i32, %c0_i32_0 : i32, i32
  }
  func.func @transform_2(%arg0: i32) -> (i32, i32) {
    %c0_i32 = arith.constant 0 : i32
    %c0_i32_0 = arith.constant 0 : i32
    %c0_i32_1 = arith.constant 0 : i32
    return %c0_i32, %c0_i32_0 : i32, i32
  }
  func.func @transform_3(%arg0: i32) -> (i32, i32) {
    %c0_i32 = arith.constant 0 : i32
    %c0_i32_0 = arith.constant 0 : i32
    %c0_i32_1 = arith.constant 0 : i32
    return %c0_i32, %c0_i32_0 : i32, i32
  }
  func.func @transform_4(%arg0: i32) -> (i32, i32) {
    %c0_i32 = arith.constant 0 : i32
    %c0_i32_0 = arith.constant 0 : i32
    %c0_i32_1 = arith.constant 0 : i32
    return %c0_i32, %c0_i32_0 : i32, i32
  }
  func.func @transform_5(%arg0: i32) -> (i32, i32, i32, i32, i32) {
    %c0_i32 = arith.constant 0 : i32
    %c0_i32_0 = arith.constant 0 : i32
    %c0_i32_1 = arith.constant 0 : i32
    %c0_i32_2 = arith.constant 0 : i32
    %c0_i32_3 = arith.constant 0 : i32
    return %arg0, %c0_i32, %c0_i32_0, %c0_i32_1, %c0_i32_2 : i32, i32, i32, i32, i32
  }
}

</mosaic_0001>

<bundles_post_ra>
// kernel: tpu_custom_call.1
= control target key start
LH: loop header
LB: loop body
LE: loop exit
PB: predicated region body
PF: predicated region fallthrough
CT: control target
= control target key end

     0   :  { %10 = vsyncpa [#allocation4], 0  ;;  %s6220_s0 = inlined_call_operand.vmem [shape: f32[2,9,9,4], index: 0, kind: input, shape index: {}]   ;;  %s6221_s1 = inlined_call_operand.vmem [shape: f32[36,8], index: 1, kind: input, shape index: {}]   ;;  %s6222_s2 = inlined_call_operand.vmem [shape: f32[1,8], index: 2, kind: input, shape index: {}]   ;;  %s6223_s3 = inlined_call_operand.vmem [shape: f32[72,8], index: 3, kind: input, shape index: {}]   ;;  %s6224_s4 = inlined_call_operand.vmem [shape: f32[1,8], index: 4, kind: input, shape index: {}]   ;;  %s6225_s5 = inlined_call_operand.hbm [shape: f32[2,4,8,8,8], index: 5, kind: output, shape index: {}]  }
   0x1   :  { %12 = vsyncpa [#allocation4 + $0x1], 0  ;;  %s4207_s18 = smov 0   ;;  %s4209_s19 = smov 0  }
   0x2   :  { %s4211_s20 = smov 0   ;;  %s4213_s21 = smov 0  }
   0x3 LB: > { %s4228_s22 = sadd.s32 4294967295, %s4162_s21   ;;  %s3563_s23 = sadd.s32 4294967294, %s4162_s21   ;;  %s4162_s21 = sphi %s4213_s21, %s6430_s21   ;;  %s4158_s20 = sphi %s4211_s20, %s6429_s20   ;;  %s4154_s19 = sphi %s4209_s19, %s6428_s19   ;;  %s4150_s18 = sphi %s4207_s18, %s6427_s18  }
   0x4   : > { %s4232_s24 = sadd.s32 1, %s4162_s21   ;;  %s135_s25 = sadd.s32 1, %s4158_s20 }
   0x5   : > { %s132_s26 = ssub.s32 %s4162_s21, %s4232_s24  ;;  %p145_p0 = scmp.ne.s32.totalorder %s4158_s20, %s4154_s19 }
   0x6   : > { %p133_p1 = scmp.eq.s32.totalorder %s132_s26, 0  ;;  %p146_p2 = scmp.eq.s32.totalorder %s4228_s22, 1 }
   0x7   : > { %p151_p3 = scmp.ne.s32.totalorder %s4154_s19, %s4150_s18  ;;  %p152_p4 = scmp.eq.s32.totalorder %s3563_s23, 1 }
   0x8   : > { %s4243_s27 = scalar_select %p133_p1, %s4158_s20, %s135_s25  }
   0x9   : > { %p4245_p5 = por %p146_p2, %p145_p0  ;;  %p4249_p6 = por %p152_p4, %p151_p3 }
   0xa   : > { %p3566_p7 = scmp.ge.s32.totalorder %s4162_s21, 1  ;;  %p190_p8 = scmp.lt.s32.totalorder %s4162_s21, 3 }
   0xc   : > { %p191_p9 = pnand %p3566_p7, %p190_p8 }
   0xe   : > { %194 = sbr.rel (%p191_p9) target bundleno = 1185 (0x4a1), region = 40 }
  0x15   : > { %v314_v0 = vld [vmem:[%s6221_s1] sm:$0xf]  ;;  %vm346_vm0 = vcmask 1043456   ;;  %p218_p10 = scmp.lt.s32.totalorder %s4228_s22, 1  ;;  %v544_v1 = vld [vmem:[%s6221_s1 + $0x4] sm:$0xff]  ;;  %vm321_vm1 = vcmask 31744  }
  0x16   : > { %3795 = vmatprep.subr.msk.mxu0 %vm346_vm0, %v314_v0  ;;  %3809 = vmatprep.subr.mxu1 %v544_v1  ;;  %s4164_s14 = smov 4   ;;  %v764_v12 = vld [vmem:[%s6221_s1 + $0xc] sm:$0xff]  ;;  %v1080_v18 = vld [vmem:[%s6221_s1 + $0x14] sm:$0xff]  ;;  %v1081_v19 = vld [vmem:[%s6221_s1 + $0x1c] sm:$0xff]  ;;  %s4165_s30 = smov 8   ;;  %vm223_vm2 = vcmask 64512  }
  0x17   : > { %3796 = vmatpush3.msk.msra.mxu0 %vm346_vm0, %v314_v0  ;;  %s219_s9 = scalar_select %p218_p10, %s4228_s22, 1  ;;  %3810 = vmatpush3.msra.mxu1 %v544_v1  ;;  %v4339_v21 = vpack.c.bf16 %v1081_v19, %v1080_v18  ;;  %vm225_vm3 = vcmask 58368   ;;  %v4167_v22 = vmov 0.0   ;;  %vm1071_vm4 = vcmask 97280  }
  0x18   : > { %3823 = vmatprep.subr.mxu0 %v764_v12  ;;  %s4166_s6 = smov 12   ;;  %265 = vst.msk [vmem:[#allocation2 + $0x140] sm:$0xff] %vm223_vm2, %v4167_v22  ;;  %227 = vst.msk [vmem:[#allocation2 + $0x10] sm:$0xff] %vm223_vm2, %v4167_v22  ;;  %s4168_s7 = smov 16   ;;  %vm1082_vm5 = vcmask 130048  }
  0x19   : > { %s4041_s10 = smul.u32 144, %s219_s9  ;;  %3974 = vmatprep.subr.bf16.mxu1 %v4339_v21  ;;  %266 = vst.msk [vmem:[#allocation2 + $0x148] sm:$0x3] %vm225_vm3, %v4167_v22  ;;  %228 = vst.msk [vmem:[#allocation2 + $0x18] sm:$0x3] %vm225_vm3, %v4167_v22  ;;  %s4170_s11 = smov 24  }
  0x1a   : > { %229 = vst.msk [vmem:[#allocation2 + $0x20] sm:$0xff] %vm223_vm2, %v4167_v22  ;;  %231 = vst.msk [vmem:[#allocation2 + $0x30] sm:$0xff] %vm223_vm2, %v4167_v22  ;;  %s4171_s12 = smov 40   ;;  %s4174_s15 = smov 64  }
  0x1b   : > { %s4266_s13 = scalar_lea.vmem %s6220_s0, %s4041_s10  ;;  %230 = vst.msk [vmem:[#allocation2 + $0x28] sm:$0x3] %vm225_vm3, %v4167_v22  ;;  %232 = vst.msk [vmem:[#allocation2 + $0x38] sm:$0x3] %vm225_vm3, %v4167_v22  ;;  %s4169_s10 = smov 32  }
  0x1c   : > { %v498_v2 = vld [vmem:[%s4266_s13 + $0x21] sm:$0xff]  ;;  %v4276_v5 = vld [vmem:[%s4266_s13 + $0x10] sm:$0xff]  ;;  %233 = vst.msk [vmem:[#allocation2 + $0x40] sm:$0xff] %vm223_vm2, %v4167_v22  ;;  %235 = vst.msk [vmem:[#allocation2 + $0x50] sm:$0xff] %vm223_vm2, %v4167_v22  ;;  %s4175_s8 = smov [#allocation3]  }
  0x1d   : > { %v496_v3 = vld [vmem:[%s4266_s13 + $0x1] sm:$0xff]  ;;  %516 = vrot.lane.b32.xlu1 %v498_v2, %s4164_s14  ;;  %v499_v6 = vld [vmem:[%s4266_s13 + $0x31] sm:$0xff]  ;;  %234 = vst.msk [vmem:[#allocation2 + $0x48] sm:$0x3] %vm225_vm3, %v4167_v22  ;;  %236 = vst.msk [vmem:[#allocation2 + $0x58] sm:$0x3] %vm225_vm3, %v4167_v22 }
  0x1e   : > { %v4271_v4 = vld [vmem:[%s4266_s13] sm:$0xff]  ;;  %512 = vrot.lane.b32.xlu0 %v496_v3, %s4164_s14  ;;  %v497_v7 = vld [vmem:[%s4266_s13 + $0x11] sm:$0xff]  ;;  %237 = vst.msk [vmem:[#allocation2 + $0x60] sm:$0xff] %vm223_vm2, %v4167_v22  ;;  %239 = vst.msk [vmem:[#allocation2 + $0x70] sm:$0xff] %vm223_vm2, %v4167_v22  ;;  %s4104_s9 = sshll.u32 %s4175_s8, 4  ;;  %s4105_s9 = int_to_ptr.vmem [resolvable:$false] %s4104_s9 }
  0x1f   : > { %3797 = vmatprep.mubr.msk.f32.mxu0 %vm321_vm1, %v4271_v4  ;;  %v4285_v8 = vld [vmem:[%s4266_s13 + $0x20] sm:$0xff]  ;;  %v4290_v9 = vld [vmem:[%s4266_s13 + $0x30] sm:$0xff]  ;;  %238 = vst.msk [vmem:[#allocation2 + $0x68] sm:$0x3] %vm225_vm3, %v4167_v22  ;;  %240 = vst.msk [vmem:[#allocation2 + $0x78] sm:$0x3] %vm225_vm3, %v4167_v22 }
  0x20   : > { %3798 = vmatmul.mubr.msk.f32.vlgmr.msra.gmra.mrb[0].mxu0 %vm321_vm1, %v4276_v5  ;;  %v4295_v10 = vld [vmem:[%s4266_s13 + $0x51] sm:$0xff]  ;;  %v4298_v11 = vld [vmem:[%s4266_s13 + $0x41] sm:$0xff]  ;;  %241 = vst.msk [vmem:[#allocation2 + $0x80] sm:$0xff] %vm223_vm2, %v4167_v22  ;;  %243 = vst.msk [vmem:[#allocation2 + $0x90] sm:$0xff] %vm223_vm2, %v4167_v22  ;;  %s4106_s16 = scalar_lea.vmem %s4105_s9, 8192 }
  0x21   : > { %3800 = vmatprep.mubr.msk.f32.mxu0 %vm321_vm1, %v4285_v8  ;;  %518 = vrot.lane.b32.xlu1 %v499_v6, %s4164_s14  ;;  %v4306_v13 = vld [vmem:[%s4266_s13 + $0x40] sm:$0xff]  ;;  %v4311_v14 = vld [vmem:[%s4266_s13 + $0x50] sm:$0xff]  ;;  %242 = vst.msk [vmem:[#allocation2 + $0x88] sm:$0x3] %vm225_vm3, %v4167_v22  ;;  %244 = vst.msk [vmem:[#allocation2 + $0x98] sm:$0x3] %vm225_vm3, %v4167_v22 }
  0x22   : > { %514 = vrot.lane.b32.xlu0 %v497_v7, %s4164_s14  ;;  %3824 = vmatpush3.msra.mxu0 %v764_v12  ;;  %v4318_v15 = vld [vmem:[%s4266_s13 + $0x71] sm:$0xff]  ;;  %v4321_v16 = vld [vmem:[%s4266_s13 + $0x61] sm:$0xff]  ;;  %247 = vst.msk [vmem:[#allocation2 + $0xb0] sm:$0xff] %vm223_vm2, %v4167_v22  ;;  %249 = vst.msk [vmem:[#allocation2 + $0xc0] sm:$0xff] %vm223_vm2, %v4167_v22 }
  0x23   : > { %v4326_v17 = vld [vmem:[%s4266_s13 + $0x60] sm:$0xff]  ;;  %v4337_v20 = vld [vmem:[%s4266_s13 + $0x70] sm:$0xff]  ;;  %248 = vst.msk [vmem:[#allocation2 + $0xb8] sm:$0x3] %vm225_vm3, %v4167_v22  ;;  %250 = vst.msk [vmem:[#allocation2 + $0xc8] sm:$0x3] %vm225_vm3, %v4167_v22 }
  0x24   : > { %3801 = vmatmul.mubr.msk.f32.gmra.mrb[2].mxu0 %vm321_vm1, %v4290_v9  ;;  %251 = vst.msk [vmem:[#allocation2 + $0xd0] sm:$0xff] %vm223_vm2, %v4167_v22  ;;  %253 = vst.msk [vmem:[#allocation2 + $0xe0] sm:$0xff] %vm223_vm2, %v4167_v22  ;;  %v3610_v23 = vld [vmem:[%s4266_s13 + $0x80] sm:$0xff] }
  0x25   : > { %3803 = vmatprep.mubr.msk.f32.mxu0 %vm321_vm1, %v4306_v13  ;;  %522 = vrot.lane.b32.xlu1 %v4295_v10, %s4164_s14  ;;  %252 = vst.msk [vmem:[#allocation2 + $0xd8] sm:$0x3] %vm225_vm3, %v4167_v22  ;;  %254 = vst.msk [vmem:[#allocation2 + $0xe8] sm:$0x3] %vm225_vm3, %v4167_v22  ;;  %v3618_v24 = vld [vmem:[%s4266_s13 + $0x81] sm:$0xff]  ;;  %s4172_s13 = smov 56  }
  0x26   : > { %520 = vrot.lane.b32.xlu0 %v4298_v11, %s4164_s14  ;;  %255 = vst.msk [vmem:[#allocation2 + $0xf0] sm:$0xff] %vm223_vm2, %v4167_v22  ;;  %257 = vst.msk [vmem:[#allocation2 + $0x100] sm:$0xff] %vm223_vm2, %v4167_v22  ;;  %v1265_v25 = vld [vmem:[#allocation2 + $0x141] sm:$0xff] }
  0x27   : > { %256 = vst.msk [vmem:[#allocation2 + $0xf8] sm:$0x3] %vm225_vm3, %v4167_v22  ;;  %258 = vst.msk [vmem:[#allocation2 + $0x108] sm:$0x3] %vm225_vm3, %v4167_v22  ;;  %v1839_v27 = vld [vmem:[#allocation2 + $0x142] sm:$0xff] }
  0x28   : > { %3804 = vmatmul.mubr.msk.f32.gmra.mrb[4].mxu0 %vm321_vm1, %v4311_v14  ;;  %259 = vst.msk [vmem:[#allocation2 + $0x110] sm:$0xff] %vm223_vm2, %v4167_v22  ;;  %261 = vst.msk [vmem:[#allocation2 + $0x120] sm:$0xff] %vm223_vm2, %v4167_v22 }
  0x29   : > { %3806 = vmatprep.mubr.msk.f32.mxu0 %vm321_vm1, %v4326_v17  ;;  %526 = vrot.lane.b32.xlu1 %v4318_v15, %s4164_s14  ;;  %260 = vst.msk [vmem:[#allocation2 + $0x118] sm:$0x3] %vm225_vm3, %v4167_v22  ;;  %262 = vst.msk [vmem:[#allocation2 + $0x128] sm:$0x3] %vm225_vm3, %v4167_v22 }
  0x2a   : > { %524 = vrot.lane.b32.xlu0 %v4321_v16, %s4164_s14  ;;  %263 = vst.msk [vmem:[#allocation2 + $0x130] sm:$0xff] %vm223_vm2, %v4167_v22  ;;  %267 = vst.msk [vmem:[#allocation2 + $0x150] sm:$0xff] %vm223_vm2, %v4167_v22 }
  0x2b   : > { %264 = vst.msk [vmem:[#allocation2 + $0x138] sm:$0x3] %vm225_vm3, %v4167_v22  ;;  %268 = vst.msk [vmem:[#allocation2 + $0x158] sm:$0x3] %vm225_vm3, %v4167_v22 }
  0x2c   : > { %3807 = vmatmul.mubr.msk.f32.gmra.mrb[6].mxu0 %vm321_vm1, %v4337_v20  ;;  %269 = vst.msk [vmem:[#allocation2 + $0x160] sm:$0xff] %vm223_vm2, %v4167_v22  ;;  %271 = vst.msk [vmem:[#allocation2 + $0x170] sm:$0xff] %vm223_vm2, %v4167_v22 }
  0x2d   : > { %969 = vrot.lane.b32.xlu1 %v497_v7, %s4164_s14  ;;  %270 = vst.msk [vmem:[#allocation2 + $0x168] sm:$0x3] %vm225_vm3, %v4167_v22  ;;  %272 = vst.msk [vmem:[#allocation2 + $0x178] sm:$0x3] %vm225_vm3, %v4167_v22 }
  0x2e   : > { %967 = vrot.lane.b32.xlu0 %v496_v3, %s4164_s14  ;;  %273 = vst.msk [vmem:[#allocation2 + $0x180] sm:$0xff] %vm223_vm2, %v4167_v22  ;;  %275 = vst.msk [vmem:[#allocation2 + $0x190] sm:$0xff] %vm223_vm2, %v4167_v22 }
  0x2f   : > { %274 = vst.msk [vmem:[#allocation2 + $0x188] sm:$0x3] %vm225_vm3, %v4167_v22  ;;  %276 = vst.msk [vmem:[#allocation2 + $0x198] sm:$0x3] %vm225_vm3, %v4167_v22 }
  0x30   : > { %277 = vst.msk [vmem:[#allocation2 + $0x1a0] sm:$0xff] %vm223_vm2, %v4167_v22  ;;  %279 = vst.msk [vmem:[#allocation2 + $0x1b0] sm:$0xff] %vm223_vm2, %v4167_v22 }
  0x31   : > { %732 = vrot.lane.b32.xlu1 %v4276_v5, %s4164_s14  ;;  %278 = vst.msk [vmem:[#allocation2 + $0x1a8] sm:$0x3] %vm225_vm3, %v4167_v22  ;;  %280 = vst.msk [vmem:[#allocation2 + $0x1b8] sm:$0x3] %vm225_vm3, %v4167_v22 }
  0x32   : > { %999 = vrot.lane.b32.xlu0 %v4276_v5, %s4165_s30  ;;  %281 = vst.msk [vmem:[#allocation2 + $0x1c0] sm:$0xff] %vm223_vm2, %v4167_v22  ;;  %285 = vst.msk [vmem:[#allocation2 + $0x1e0] sm:$0xff] %vm223_vm2, %v4167_v22 }
  0x33   : > { %282 = vst.msk [vmem:[#allocation2 + $0x1c8] sm:$0x3] %vm225_vm3, %v4167_v22  ;;  %286 = vst.msk [vmem:[#allocation2 + $0x1e8] sm:$0x3] %vm225_vm3, %v4167_v22 }
  0x34   : > { %287 = vst.msk [vmem:[#allocation2 + $0x1f0] sm:$0xff] %vm223_vm2, %v4167_v22  ;;  %289 = vst.msk [vmem:[#allocation2 + $0x200] sm:$0xff] %vm223_vm2, %v4167_v22 }
  0x35   : > { %1031 = vrot.lane.b32.xlu1 %v497_v7, %s4166_s6  ;;  %288 = vst.msk [vmem:[#allocation2 + $0x1f8] sm:$0x3] %vm225_vm3, %v4167_v22  ;;  %290 = vst.msk [vmem:[#allocation2 + $0x208] sm:$0x3] %vm225_vm3, %v4167_v22 }
  0x36   : > { %1001 = vrot.lane.b32.xlu0 %v4285_v8, %s4165_s30  ;;  %291 = vst.msk [vmem:[#allocation2 + $0x210] sm:$0xff] %vm223_vm2, %v4167_v22  ;;  %293 = vst.msk [vmem:[#allocation2 + $0x220] sm:$0xff] %vm223_vm2, %v4167_v22 }
  0x37   : > { %292 = vst.msk [vmem:[#allocation2 + $0x218] sm:$0x3] %vm225_vm3, %v4167_v22  ;;  %294 = vst.msk [vmem:[#allocation2 + $0x228] sm:$0x3] %vm225_vm3, %v4167_v22 }
  0x38   : > { %295 = vst.msk [vmem:[#allocation2 + $0x230] sm:$0xff] %vm223_vm2, %v4167_v22  ;;  %297 = vst.msk [vmem:[#allocation2 + $0x240] sm:$0xff] %vm223_vm2, %v4167_v22 }
  0x39   : > { %1033 = vrot.lane.b32.xlu1 %v498_v2, %s4166_s6  ;;  %296 = vst.msk [vmem:[#allocation2 + $0x238] sm:$0x3] %vm225_vm3, %v4167_v22  ;;  %298 = vst.msk [vmem:[#allocation2 + $0x248] sm:$0x3] %vm225_vm3, %v4167_v22 }
  0x3a   : > { %734 = vrot.lane.b32.xlu0 %v4285_v8, %s4164_s14  ;;  %299 = vst.msk [vmem:[#allocation2 + $0x250] sm:$0xff] %vm223_vm2, %v4167_v22  ;;  %301 = vst.msk [vmem:[#allocation2 + $0x260] sm:$0xff] %vm223_vm2, %v4167_v22  ;;  %v1273_v26 = vld [vmem:[#allocation2 + $0x1e1] sm:$0xff] }
  0x3b   : > { %300 = vst.msk [vmem:[#allocation2 + $0x258] sm:$0x3] %vm225_vm3, %v4167_v22  ;;  %302 = vst.msk [vmem:[#allocation2 + $0x268] sm:$0x3] %vm225_vm3, %v4167_v22 }
  0x3d   : > { %973 = vrot.lane.b32.xlu1 %v499_v6, %s4164_s14 }
  0x3e   : > { %971 = vrot.lane.b32.xlu0 %v498_v2, %s4164_s14 }
  0x41   : > { %736 = vrot.lane.b32.xlu1 %v4290_v9, %s4164_s14 }
  0x42   : > { %1003 = vrot.lane.b32.xlu0 %v4290_v9, %s4165_s30 }
  0x45   : > { %1035 = vrot.lane.b32.xlu1 %v499_v6, %s4166_s6 }
  0x46   : > { %1005 = vrot.lane.b32.xlu0 %v4306_v13, %s4165_s30 }
  0x49   : > { %1037 = vrot.lane.b32.xlu1 %v4298_v11, %s4166_s6 }
  0x4a   : > { %738 = vrot.lane.b32.xlu0 %v4306_v13, %s4164_s14 }
  0x4d   : > { %977 = vrot.lane.b32.xlu1 %v4295_v10, %s4164_s14 }
  0x4e   : > { %975 = vrot.lane.b32.xlu0 %v4298_v11, %s4164_s14 }
  0x51   : > { %740 = vrot.lane.b32.xlu1 %v4311_v14, %s4164_s14 }
  0x52   : > { %1007 = vrot.lane.b32.xlu0 %v4311_v14, %s4165_s30 }
  0x55   : > { %1039 = vrot.lane.b32.xlu1 %v4295_v10, %s4166_s6 }
  0x56   : > { %1009 = vrot.lane.b32.xlu0 %v4326_v17, %s4165_s30 }
  0x59   : > { %1041 = vrot.lane.b32.xlu1 %v4321_v16, %s4166_s6 }
  0x5a   : > { %742 = vrot.lane.b32.xlu0 %v4326_v17, %s4164_s14 }
  0x5d   : > { %981 = vrot.lane.b32.xlu1 %v4318_v15, %s4164_s14 }
  0x5e   : > { %979 = vrot.lane.b32.xlu0 %v4321_v16, %s4164_s14 }
  0x61   : > { %744 = vrot.lane.b32.xlu1 %v4337_v20, %s4164_s14 }
  0x62   : > { %1011 = vrot.lane.b32.xlu0 %v4337_v20, %s4165_s30 }
  0x65   : > { %1043 = vrot.lane.b32.xlu1 %v4318_v15, %s4166_s6 }
  0x66   : > { %1013 = vrot.lane.b32.xlu0 %v3610_v23, %s4165_s30 }
  0x69   : > { %1045 = vrot.lane.b32.xlu1 %v3618_v24, %s4166_s6 }
  0x6a   : > { %746 = vrot.lane.b32.xlu0 %v3610_v23, %s4164_s14  ;;  %s4173_s14 = smov 48  }
  0x6e   : > { %1337 = vrot.lane.b32.xlu0 %v1265_v25, %s4165_s30 }
  0x72   : > { %1369 = vrot.lane.b32.xlu0 %v1273_v26, %s4168_s7 }
  0x76   : > { %1903 = vrot.lane.b32.xlu0 %v1273_v26, %s4165_s30 }
  0x7a   : > { %1935 = vrot.lane.b32.xlu0 %v1839_v27, %s4168_s7 }
  0x8f   : > { %v517_v28 = vpop.permute.xlu1 %516 }
  0x90   : > { %v513_v29 = vpop.permute.xlu0 %512  ;;  %v538_v31 = vsel %vm321_vm1, %v4285_v8, %v517_v28 }
  0x91   : > { %v536_v30 = vsel %vm321_vm1, %v4271_v4, %v513_v29 }
  0x92   : > { %3811 = vmatprep.mubr.msk.f32.mxu1 %vm223_vm2, %v536_v30 }
  0x93   : > { %v519_v32 = vpop.permute.xlu1 %518 }
  0x94   : > { %v515_v33 = vpop.permute.xlu0 %514  ;;  %v539_v35 = vsel %vm321_vm1, %v4290_v9, %v519_v32 }
  0x95   : > { %v537_v34 = vsel %vm321_vm1, %v4276_v5, %v515_v33 }
  0x96   : > { %3812 = vmatmul.mubr.msk.f32.vlgmr.msra.gmra.mrb[0].mxu1 %vm223_vm2, %v537_v34 }
  0x97   : > { %3814 = vmatprep.mubr.msk.f32.mxu1 %vm223_vm2, %v538_v31  ;;  %3976 = vmatpush3.bf16.msra.mxu1 %v4339_v21  ;;  %v523_v36 = vpop.permute.xlu1 %522 }
  0x98   : > { %v521_v37 = vpop.permute.xlu0 %520  ;;  %v541_v39 = vsel %vm321_vm1, %v4311_v14, %v523_v36 }
  0x99   : > { %v540_v38 = vsel %vm321_vm1, %v4306_v13, %v521_v37 }
  0x9a   : > { %3815 = vmatmul.mubr.msk.f32.gmra.mrb[2].mxu1 %vm223_vm2, %v539_v35 }
  0x9b   : > { %3817 = vmatprep.mubr.msk.f32.mxu1 %vm223_vm2, %v540_v38  ;;  %v527_v40 = vpop.permute.xlu1 %526 }
  0x9c   : > { %v525_v41 = vpop.permute.xlu0 %524  ;;  %v543_v43 = vsel %vm321_vm1, %v4337_v20, %v527_v40 }
  0x9d   : > { %v542_v42 = vsel %vm321_vm1, %v4326_v17, %v525_v41 }
  0x9e   : > { %3818 = vmatmul.mubr.msk.f32.gmra.mrb[4].mxu1 %vm223_vm2, %v541_v39 }
  0x9f   : > { %3820 = vmatprep.mubr.msk.f32.mxu1 %vm223_vm2, %v542_v42  ;;  %v970_v44 = vpop.permute.xlu1 %969 }
  0xa0   : > { %v968_v45 = vpop.permute.xlu0 %967  ;;  %v1056_v53 = vsel %vm321_vm1, %v4276_v5, %v970_v44 }
  0xa1   : > { %v1055_v49 = vsel %vm321_vm1, %v4271_v4, %v968_v45  ;;  %v4644_v45 = vld [vmem:[%s6222_s2] ss:$0 sm:$0xff] }
  0xa2   : > { %3821 = vmatmul.mubr.msk.f32.gmra.mrb[6].mxu1 %vm223_vm2, %v543_v43 }
  0xa3   : > { %v733_v46 = vpop.permute.xlu1 %732 }
  0xa4   : > { %v1000_v47 = vpop.permute.xlu0 %999  ;;  %v756_v48 = vsel %vm321_vm1, %v4271_v4, %v733_v46 }
  0xa5   : > { %3825 = vmatprep.mubr.msk.f32.mxu0 %vm223_vm2, %v756_v48  ;;  %v1063_v50 = vsel %vm223_vm2, %v1055_v49, %v1000_v47 }
  0xa7   : > { %v1032_v51 = vpop.permute.xlu1 %1031 }
  0xa8   : > { %v1002_v52 = vpop.permute.xlu0 %1001  ;;  %v1072_v54 = vsel %vm1071_vm4, %v1063_v50, %v1032_v51 }
  0xa9   : > { %3841 = vmatprep.mubr.msk.f32.mxu1 %vm1082_vm5, %v1072_v54  ;;  %v1064_v55 = vsel %vm223_vm2, %v1056_v53, %v1002_v52 }
  0xab   : > { %v1034_v56 = vpop.permute.xlu1 %1033 }
  0xac   : > { %v735_v57 = vpop.permute.xlu0 %734  ;;  %v1073_v58 = vsel %vm1071_vm4, %v1064_v55, %v1034_v56 }
  0xad   : > { %v757_v59 = vsel %vm321_vm1, %v4276_v5, %v735_v57  ;;  %3842 = vmatmul.mubr.msk.f32.vlgmr.msra.gmra.mrb[8].mxu1 %vm1082_vm5, %v1073_v58 }
  0xae   : > { %3826 = vmatmul.mubr.msk.f32.vlgmr.msra.gmra.mrb[8].mxu0 %vm223_vm2, %v757_v59 }
  0xaf   : > { %v974_v60 = vpop.permute.xlu1 %973 }
  0xb0   : > { %v972_v61 = vpop.permute.xlu0 %971  ;;  %v1058_v3 = vsel %vm321_vm1, %v4290_v9, %v974_v60 }
  0xb1   : > { %v1057_v62 = vsel %vm321_vm1, %v4285_v8, %v972_v61 }
  0xb3   : > { %v737_v63 = vpop.permute.xlu1 %736 }
  0xb4   : > { %v1004_v0 = vpop.permute.xlu0 %1003  ;;  %v758_v1 = vsel %vm321_vm1, %v4285_v8, %v737_v63 }
  0xb5   : > { %v1065_v2 = vsel %vm223_vm2, %v1057_v62, %v1004_v0  ;;  %3828 = vmatprep.mubr.msk.f32.mxu0 %vm223_vm2, %v758_v1 }
  0xb7   : > { %v1036_v4 = vpop.permute.xlu1 %1035 }
  0xb8   : > { %v1006_v5 = vpop.permute.xlu0 %1005  ;;  %v1074_v6 = vsel %vm1071_vm4, %v1065_v2, %v1036_v4 }
  0xb9   : > { %3844 = vmatprep.mubr.msk.f32.mxu1 %vm1082_vm5, %v1074_v6  ;;  %v1066_v7 = vsel %vm223_vm2, %v1058_v3, %v1006_v5 }
  0xbb   : > { %v1038_v10 = vpop.permute.xlu1 %1037 }
  0xbc   : > { %v739_v11 = vpop.permute.xlu0 %738  ;;  %v1075_v12 = vsel %vm1071_vm4, %v1066_v7, %v1038_v10 }
  0xbd   : > { %v759_v8 = vsel %vm321_vm1, %v4290_v9, %v739_v11  ;;  %3845 = vmatmul.mubr.msk.f32.gmra.mrb[10].mxu1 %vm1082_vm5, %v1075_v12 }
  0xbe   : > { %3829 = vmatmul.mubr.msk.f32.gmra.mrb[10].mxu0 %vm223_vm2, %v759_v8 }
  0xbf   : > { %v978_v15 = vpop.permute.xlu1 %977 }
  0xc0   : > { %v976_v16 = vpop.permute.xlu0 %975  ;;  %v1060_v9 = vsel %vm321_vm1, %v4311_v14, %v978_v15 }
  0xc1   : > { %v1059_v18 = vsel %vm321_vm1, %v4306_v13, %v976_v16 }
  0xc3   : > { %v741_v19 = vpop.permute.xlu1 %740 }
  0xc4   : > { %v1008_v21 = vpop.permute.xlu0 %1007  ;;  %v760_v22 = vsel %vm321_vm1, %v4306_v13, %v741_v19 }
  0xc5   : > { %v1067_v23 = vsel %vm223_vm2, %v1059_v18, %v1008_v21  ;;  %3831 = vmatprep.mubr.msk.f32.mxu0 %vm223_vm2, %v760_v22 }
  0xc7   : > { %v1040_v24 = vpop.permute.xlu1 %1039 }
  0xc8   : > { %v1010_v25 = vpop.permute.xlu0 %1009  ;;  %v1076_v26 = vsel %vm1071_vm4, %v1067_v23, %v1040_v24 }
  0xc9   : > { %3847 = vmatprep.mubr.msk.f32.mxu1 %vm1082_vm5, %v1076_v26  ;;  %v1068_v27 = vsel %vm223_vm2, %v1060_v9, %v1010_v25 }
  0xcb   : > { %v1042_v28 = vpop.permute.xlu1 %1041 }
  0xcc   : > { %v743_v29 = vpop.permute.xlu0 %742  ;;  %v1077_v30 = vsel %vm1071_vm4, %v1068_v27, %v1042_v28 }
  0xcd   : > { %v761_v13 = vsel %vm321_vm1, %v4311_v14, %v743_v29  ;;  %3848 = vmatmul.mubr.msk.f32.gmra.mrb[12].mxu1 %vm1082_vm5, %v1077_v30 }
  0xce   : > { %3832 = vmatmul.mubr.msk.f32.gmra.mrb[12].mxu0 %vm223_vm2, %v761_v13 }
  0xcf   : > { %v982_v31 = vpop.permute.xlu1 %981 }
  0xd0   : > { %v980_v32 = vpop.permute.xlu0 %979  ;;  %v1062_v14 = vsel %vm321_vm1, %v4337_v20, %v982_v31 }
  0xd1   : > { %v1061_v33 = vsel %vm321_vm1, %v4326_v17, %v980_v32 }
  0xd3   : > { %v745_v34 = vpop.permute.xlu1 %744 }
  0xd4   : > { %v1012_v35 = vpop.permute.xlu0 %1011  ;;  %v762_v36 = vsel %vm321_vm1, %v4326_v17, %v745_v34 }
  0xd5   : > { %v1069_v37 = vsel %vm223_vm2, %v1061_v33, %v1012_v35  ;;  %3834 = vmatprep.mubr.msk.f32.mxu0 %vm223_vm2, %v762_v36 }
  0xd7   : > { %v1044_v38 = vpop.permute.xlu1 %1043 }
  0xd8   : > { %v1014_v39 = vpop.permute.xlu0 %1013  ;;  %v1078_v40 = vsel %vm1071_vm4, %v1069_v37, %v1044_v38 }
  0xd9   : > { %3850 = vmatprep.mubr.msk.f32.mxu1 %vm1082_vm5, %v1078_v40  ;;  %v1070_v41 = vsel %vm223_vm2, %v1062_v14, %v1014_v39 }
  0xdb   : > { %v1046_v42 = vpop.permute.xlu1 %1045 }
  0xdc   : > { %v747_v43 = vpop.permute.xlu0 %746  ;;  %v1079_v44 = vsel %vm1071_vm4, %v1070_v41, %v1046_v42 }
  0xdd   : > { %v763_v17 = vsel %vm321_vm1, %v4337_v20, %v747_v43  ;;  %3851 = vmatmul.mubr.msk.f32.gmra.mrb[14].mxu1 %vm1082_vm5, %v1079_v44 }
  0xde   : > { %3835 = vmatmul.mubr.msk.f32.gmra.mrb[14].mxu0 %vm223_vm2, %v763_v17 }
  0xf3   : > { %v3799_v46 = vpop.f32.mrb[0].mxu0 }
  0xf4   : > { %v422_v47 = vadd.f32 %v3799_v46, %v4644_v45  ;;  %v416_v48 = vpop.f32.mrb[1].mxu0 }
  0xf5   : > { %v417_v49 = vadd.f32 %v4644_v45, %v416_v48 }
  0xf6   : > { %vm456_vm6 = vcmp.gt.f32.partialorder %v422_v47, 0.0  ;;  %v464_v50 = vmul.f32 0.2, %v422_v47 }
  0xf7   : > { %vm455_vm7 = vcmp.gt.f32.partialorder %v417_v49, 0.0  ;;  %v463_v51 = vmul.f32 0.2, %v417_v49  ;;  %v3802_v20 = vpop.f32.mrb[2].mxu0 }
  0xf8   : > { %v472_v52 = vsel %vm456_vm6, %v422_v47, %v464_v50  ;;  %v432_v53 = vadd.f32 %v3802_v20, %v4644_v45  ;;  %v426_v54 = vpop.f32.mrb[3].mxu0 }
  0xf9   : > { %481 = vst.msk [vmem:[#allocation2 + $0x21] sm:$0xff] %vm223_vm2, %v472_v52  ;;  %v471_v55 = vsel %vm455_vm7, %v417_v49, %v463_v51  ;;  %v427_v56 = vadd.f32 %v4644_v45, %v426_v54 }
  0xfa   : > { %480 = vst.msk [vmem:[#allocation2 + $0x11] sm:$0xff] %vm223_vm2, %v471_v55  ;;  %vm458_vm8 = vcmp.gt.f32.partialorder %v432_v53, 0.0  ;;  %v466_v57 = vmul.f32 0.2, %v432_v53 }
  0xfb   : > { %vm457_vm9 = vcmp.gt.f32.partialorder %v427_v56, 0.0  ;;  %v465_v58 = vmul.f32 0.2, %v427_v56  ;;  %v3805_v59 = vpop.f32.mrb[4].mxu0 }
  0xfc   : > { %v474_v60 = vsel %vm458_vm8, %v432_v53, %v466_v57  ;;  %v442_v61 = vadd.f32 %v3805_v59, %v4644_v45  ;;  %v436_v62 = vpop.f32.mrb[5].mxu0 }
  0xfd   : > { %483 = vst.msk [vmem:[#allocation2 + $0x41] sm:$0xff] %vm223_vm2, %v474_v60  ;;  %v473_v63 = vsel %vm457_vm9, %v427_v56, %v465_v58  ;;  %v437_v0 = vadd.f32 %v4644_v45, %v436_v62 }
  0xfe   : > { %482 = vst.msk [vmem:[#allocation2 + $0x31] sm:$0xff] %vm223_vm2, %v473_v63  ;;  %vm460_vm10 = vcmp.gt.f32.partialorder %v442_v61, 0.0  ;;  %v468_v1 = vmul.f32 0.2, %v442_v61 }
  0xff   : > { %vm459_vm11 = vcmp.gt.f32.partialorder %v437_v0, 0.0  ;;  %v467_v2 = vmul.f32 0.2, %v437_v0  ;;  %v3808_v3 = vpop.f32.mrb[6].mxu0 }
 0x100   : > { %v1290_v4 = vld [vmem:[#allocation2 + $0x21] sm:$0xff]  ;;  %v476_v5 = vsel %vm460_vm10, %v442_v61, %v468_v1  ;;  %v452_v6 = vadd.f32 %v3808_v3, %v4644_v45  ;;  %v446_v7 = vpop.f32.mrb[7].mxu0 }
 0x101   : > { %1435 = vrot.lane.b32.xlu1 %v1290_v4, %s4169_s10  ;;  %v1289_v10 = vld [vmem:[#allocation2 + $0x11] sm:$0xff]  ;;  %485 = vst.msk [vmem:[#allocation2 + $0x61] sm:$0xff] %vm223_vm2, %v476_v5  ;;  %v475_v11 = vsel %vm459_vm11, %v437_v0, %v467_v2  ;;  %v447_v12 = vadd.f32 %v4644_v45, %v446_v7  ;;  %v1864_v19 = vld [vmem:[#allocation2 + $0x22] sm:$0xff] }
 0x102   : > { %1433 = vrot.lane.b32.xlu0 %v1289_v10, %s4169_s10  ;;  %484 = vst.msk [vmem:[#allocation2 + $0x51] sm:$0xff] %vm223_vm2, %v475_v11  ;;  %vm462_vm12 = vcmp.gt.f32.partialorder %v452_v6, 0.0  ;;  %v470_v8 = vmul.f32 0.2, %v452_v6  ;;  %v1863_v21 = vld [vmem:[#allocation2 + $0x12] sm:$0xff] }
 0x103   : > { %vm461_vm13 = vcmp.gt.f32.partialorder %v447_v12, 0.0  ;;  %v469_v15 = vmul.f32 0.2, %v447_v12 }
 0x104   : > { %v478_v16 = vsel %vm462_vm12, %v452_v6, %v470_v8  ;;  %v2388_v22 = vld [vmem:[#allocation2 + $0x41] sm:$0xff] }
 0x105   : > { %1969 = vrot.lane.b32.xlu1 %v1290_v4, %s4170_s11  ;;  %487 = vst.msk [vmem:[#allocation2 + $0x81] sm:$0xff] %vm223_vm2, %v478_v16  ;;  %v477_v18 = vsel %vm461_vm13, %v447_v12, %v469_v15  ;;  %v1291_v23 = vld [vmem:[#allocation2 + $0x31] sm:$0xff]  ;;  %v1866_v24 = vld [vmem:[#allocation2 + $0x42] sm:$0xff] }
 0x106   : > { %1967 = vrot.lane.b32.xlu0 %v1289_v10, %s4170_s11  ;;  %486 = vst.msk [vmem:[#allocation2 + $0x71] sm:$0xff] %vm223_vm2, %v477_v18  ;;  %v1865_v9 = vld [vmem:[#allocation2 + $0x32] sm:$0xff] }
 0x108   : > { %v1294_v25 = vld [vmem:[#allocation2 + $0x61] sm:$0xff] }
 0x109   : > { %2033 = vrot.lane.b32.xlu1 %v1864_v19, %s4171_s12  ;;  %v1293_v26 = vld [vmem:[#allocation2 + $0x51] sm:$0xff]  ;;  %v1868_v27 = vld [vmem:[#allocation2 + $0x62] sm:$0xff] }
 0x10a   : > { %2031 = vrot.lane.b32.xlu0 %v1863_v21, %s4171_s12  ;;  %v1867_v28 = vld [vmem:[#allocation2 + $0x52] sm:$0xff] }
 0x10c   : > { %v1296_v29 = vld [vmem:[#allocation2 + $0x81] sm:$0xff] }
 0x10d   : > { %2461 = vrot.lane.b32.xlu1 %v1290_v4, %s4165_s30  ;;  %v1295_v30 = vld [vmem:[#allocation2 + $0x71] sm:$0xff]  ;;  %v1870_v13 = vld [vmem:[#allocation2 + $0x82] sm:$0xff] }
 0x10e   : > { %3045 = vrot.lane.b32.xlu0 %v1863_v21, %s4168_s7  ;;  %v1869_v31 = vld [vmem:[#allocation2 + $0x72] sm:$0xff] }
 0x111   : > { %3047 = vrot.lane.b32.xlu1 %v1864_v19, %s4168_s7 }
 0x112   : > { %2465 = vrot.lane.b32.xlu0 %v2388_v22, %s4165_s30 }
 0x115   : > { %2459 = vrot.lane.b32.xlu1 %v1289_v10, %s4165_s30 }
 0x116   : > { %1437 = vrot.lane.b32.xlu0 %v1291_v23, %s4169_s10 }
 0x119   : > { %1439 = vrot.lane.b32.xlu1 %v2388_v22, %s4169_s10 }
 0x11a   : > { %1971 = vrot.lane.b32.xlu0 %v1291_v23, %s4170_s11 }
 0x11d   : > { %1973 = vrot.lane.b32.xlu1 %v2388_v22, %s4170_s11 }
 0x11e   : > { %2035 = vrot.lane.b32.xlu0 %v1865_v9, %s4171_s12 }
 0x121   : > { %2037 = vrot.lane.b32.xlu1 %v1866_v24, %s4171_s12 }
 0x122   : > { %2463 = vrot.lane.b32.xlu0 %v1291_v23, %s4165_s30 }
 0x125   : > { %1443 = vrot.lane.b32.xlu1 %v1294_v25, %s4169_s10 }
 0x126   : > { %1441 = vrot.lane.b32.xlu0 %v1293_v26, %s4169_s10 }
 0x129   : > { %1977 = vrot.lane.b32.xlu1 %v1294_v25, %s4170_s11 }
 0x12a   : > { %1975 = vrot.lane.b32.xlu0 %v1293_v26, %s4170_s11 }
 0x12d   : > { %2041 = vrot.lane.b32.xlu1 %v1868_v27, %s4171_s12 }
 0x12e   : > { %2039 = vrot.lane.b32.xlu0 %v1867_v28, %s4171_s12 }
 0x131   : > { %1447 = vrot.lane.b32.xlu1 %v1296_v29, %s4169_s10 }
 0x132   : > { %1445 = vrot.lane.b32.xlu0 %v1295_v30, %s4169_s10 }
 0x135   : > { %1981 = vrot.lane.b32.xlu1 %v1296_v29, %s4170_s11 }
 0x136   : > { %1979 = vrot.lane.b32.xlu0 %v1295_v30, %s4170_s11 }
 0x139   : > { %2045 = vrot.lane.b32.xlu1 %v1870_v13, %s4171_s12 }
 0x13d   : > { %2043 = vrot.lane.b32.xlu1 %v1869_v31, %s4171_s12 }
 0x169   : > { %v3813_v32 = vpop.f32.mrb[0].mxu1 }
 0x16a   : > { %v641_v33 = vadd.f32 %v3813_v32, %v4644_v45  ;;  %v635_v34 = vpop.f32.mrb[1].mxu1 }
 0x16b   : > { %v636_v35 = vadd.f32 %v4644_v45, %v635_v34 }
 0x16c   : > { %vm675_vm14 = vcmp.gt.f32.partialorder %v641_v33, 0.0  ;;  %v683_v36 = vmul.f32 0.2, %v641_v33 }
 0x16d   : > { %vm674_vm15 = vcmp.gt.f32.partialorder %v636_v35, 0.0  ;;  %v682_v37 = vmul.f32 0.2, %v636_v35  ;;  %v3816_v14 = vpop.f32.mrb[2].mxu1 }
 0x16e   : > { %v691_v38 = vsel %vm675_vm14, %v641_v33, %v683_v36  ;;  %v651_v39 = vadd.f32 %v3816_v14, %v4644_v45  ;;  %v645_v40 = vpop.f32.mrb[3].mxu1  ;;  %v4750_v14 = vpop.permute.xlu0 %1337 }
 0x16f   : > { %700 = vst.msk [vmem:[#allocation2 + $0xc1] sm:$0xff] %vm223_vm2, %v691_v38  ;;  %v690_v41 = vsel %vm674_vm15, %v636_v35, %v682_v37  ;;  %v646_v42 = vadd.f32 %v4644_v45, %v645_v40 }
 0x170   : > { %699 = vst.msk [vmem:[#allocation2 + $0xb1] sm:$0xff] %vm223_vm2, %v690_v41  ;;  %vm677_vm0 = vcmp.gt.f32.partialorder %v651_v39, 0.0  ;;  %v685_v43 = vmul.f32 0.2, %v651_v39 }
 0x171   : > { %vm676_vm1 = vcmp.gt.f32.partialorder %v646_v42, 0.0  ;;  %v684_v44 = vmul.f32 0.2, %v646_v42  ;;  %v3819_v17 = vpop.f32.mrb[4].mxu1 }
 0x172   : > { %v693_v46 = vsel %vm677_vm0, %v651_v39, %v685_v43  ;;  %v661_v47 = vadd.f32 %v3819_v17, %v4644_v45  ;;  %v655_v48 = vpop.f32.mrb[5].mxu1  ;;  %v4761_v40 = vpop.permute.xlu0 %1369 }
 0x173   : > { %702 = vst.msk [vmem:[#allocation2 + $0xe1] sm:$0xff] %vm223_vm2, %v693_v46  ;;  %v692_v49 = vsel %vm676_vm1, %v646_v42, %v684_v44  ;;  %v656_v50 = vadd.f32 %v4644_v45, %v655_v48  ;;  %v4746_v36 = vpop.permute.xlu1 %1435 }
 0x174   : > { %701 = vst.msk [vmem:[#allocation2 + $0xd1] sm:$0xff] %vm223_vm2, %v692_v49  ;;  %vm679_vm3 = vcmp.gt.f32.partialorder %v661_v47, 0.0  ;;  %v687_v51 = vmul.f32 0.2, %v661_v47 }
 0x175   : > { %vm678_vm4 = vcmp.gt.f32.partialorder %v656_v50, 0.0  ;;  %v686_v20 = vmul.f32 0.2, %v656_v50  ;;  %v3822_v52 = vpop.f32.mrb[6].mxu1 }
 0x176   : > { %v695_v53 = vsel %vm679_vm3, %v661_v47, %v687_v51  ;;  %v671_v54 = vadd.f32 %v3822_v52, %v4644_v45  ;;  %v665_v55 = vpop.f32.mrb[7].mxu1  ;;  %v4703_v56 = vld [vmem:[#allocation2 + $0xc0] sm:$0xff] }
 0x177   : > { %704 = vst.msk [vmem:[#allocation2 + $0x101] sm:$0xff] %vm223_vm2, %v695_v53  ;;  %v694_v57 = vsel %vm678_vm4, %v656_v50, %v686_v20  ;;  %v666_v58 = vadd.f32 %v4644_v45, %v665_v55  ;;  %1403 = vrot.lane.b32.xlu1 %v4703_v56, %s4170_s11  ;;  %v4710_v62 = vld [vmem:[#allocation2 + $0xc1] sm:$0xff]  ;;  %v4756_v38 = vpop.permute.xlu1 %1969  ;;  %v2377_v39 = vld [vmem:[#allocation2 + $0xb0] sm:$0xff] }
 0x178   : > { %703 = vst.msk [vmem:[#allocation2 + $0xf1] sm:$0xff] %vm223_vm2, %v694_v57  ;;  %vm681_vm6 = vcmp.gt.f32.partialorder %v671_v54, 0.0  ;;  %v689_v59 = vmul.f32 0.2, %v671_v54  ;;  %v1297_v43 = vld [vmem:[#allocation2 + $0xb1] sm:$0xff] }
 0x179   : > { %vm680_vm7 = vcmp.gt.f32.partialorder %v666_v58, 0.0  ;;  %v688_v60 = vmul.f32 0.2, %v666_v58 }
 0x17a   : > { %v697_v61 = vsel %vm681_vm6, %v671_v54, %v689_v59 }
 0x17b   : > { %706 = vst.msk [vmem:[#allocation2 + $0x121] sm:$0xff] %vm223_vm2, %v697_v61  ;;  %v696_v63 = vsel %vm680_vm7, %v666_v58, %v688_v60  ;;  %1467 = vrot.lane.b32.xlu1 %v4710_v62, %s4171_s12  ;;  %v4770_v50 = vpop.permute.xlu1 %2033  ;;  %v4774_v58 = vpop.permute.xlu0 %1903 }
 0x17c   : > { %705 = vst.msk [vmem:[#allocation2 + $0x111] sm:$0xff] %vm223_vm2, %v696_v63 }
 0x17f   : > { %v4784_v61 = vpop.permute.xlu1 %2461 }
 0x180   : > { %v3843_v1 = vpop.f32.mrb[8].mxu1  ;;  %6249 = vst [vmem:[#allocation6_spill] sm:$0xff] %v4784_v61  ;;  %v1249_v61 = vld [vmem:[%s6223_s3 + $0x18] sm:$0xff] }
 0x181   : > { %v3827_v0 = vpop.f32.mrb[8].mxu0  ;;  %v1179_v3 = vadd.f32 %v3843_v1, %v4644_v45  ;;  %v1173_v4 = vpop.f32.mrb[9].mxu1 }
 0x182   : > { %v861_v2 = vadd.f32 %v3827_v0, %v4644_v45  ;;  %v855_v5 = vpop.f32.mrb[9].mxu0  ;;  %v1174_v6 = vadd.f32 %v4644_v45, %v1173_v4  ;;  %v4788_v0 = vpop.permute.xlu0 %1935 }
 0x183   : > { %v856_v7 = vadd.f32 %v4644_v45, %v855_v5  ;;  %vm1213_vm9 = vcmp.gt.f32.partialorder %v1179_v3, 0.0  ;;  %v1221_v11 = vmul.f32 0.2, %v1179_v3  ;;  %v4793_v1 = vpop.permute.xlu1 %3047 }
 0x184   : > { %vm895_vm8 = vcmp.gt.f32.partialorder %v861_v2, 0.0  ;;  %v903_v10 = vmul.f32 0.2, %v861_v2  ;;  %vm1212_vm10 = vcmp.gt.f32.partialorder %v1174_v6, 0.0  ;;  %v1220_v12 = vmul.f32 0.2, %v1174_v6 }
 0x185   : > { %vm894_vm11 = vcmp.gt.f32.partialorder %v856_v7, 0.0  ;;  %v902_v8 = vmul.f32 0.2, %v856_v7  ;;  %v1229_v16 = vsel %vm1213_vm9, %v1179_v3, %v1221_v11  ;;  %6250 = vst [vmem:[#allocation7_spill] sm:$0xff] %v4793_v1 }
 0x186   : > { %v911_v15 = vsel %vm895_vm8, %v861_v2, %v903_v10  ;;  %1238 = vst.msk [vmem:[#allocation2 + $0x201] sm:$0xff] %vm223_vm2, %v1229_v16  ;;  %v1228_v18 = vsel %vm1212_vm10, %v1174_v6, %v1220_v12  ;;  %v4797_v10 = vpop.permute.xlu0 %1433  ;;  %vm1601_vm10 = vcmask 195584  }
 0x187   : > { %920 = vst.msk [vmem:[#allocation2 + $0x161] sm:$0xff] %vm223_vm2, %v911_v15  ;;  %v910_v19 = vsel %vm894_vm11, %v856_v7, %v902_v8  ;;  %1237 = vst.msk [vmem:[#allocation2 + $0x1f1] sm:$0xff] %vm223_vm2, %v1228_v18  ;;  %vm1610_vm11 = vcmask 261120  }
 0x188   : > { %919 = vst.msk [vmem:[#allocation2 + $0x151] sm:$0xff] %vm223_vm2, %v910_v19 }
 0x18e   : > { %v4724_v21 = vld [vmem:[#allocation2 + $0x161] sm:$0xff] }
 0x18f   : > { %1531 = vrot.lane.b32.xlu1 %v4724_v21, %s4172_s13  ;;  %1341 = vrot.lane.b32.xlu0 %v4724_v21, %s4165_s30  ;;  %v4730_v9 = vld [vmem:[#allocation2 + $0x162] sm:$0xff]  ;;  %v4772_v54 = vld [vmem:[#allocation2 + $0x151] sm:$0xff] }
 0x190   : > { %v3846_v22 = vpop.f32.mrb[10].mxu1  ;;  %v1840_v63 = vld [vmem:[#allocation2 + $0x152] sm:$0xff] }
 0x191   : > { %v3830_v23 = vpop.f32.mrb[10].mxu0  ;;  %v1189_v24 = vadd.f32 %v3846_v22, %v4644_v45  ;;  %v1183_v25 = vpop.f32.mrb[11].mxu1 }
 0x192   : > { %v871_v26 = vadd.f32 %v3830_v23, %v4644_v45  ;;  %v865_v27 = vpop.f32.mrb[11].mxu0  ;;  %v1184_v28 = vadd.f32 %v4644_v45, %v1183_v25  ;;  %v4803_v23 = vpop.permute.xlu1 %2459 }
 0x193   : > { %2001 = vrot.lane.b32.xlu1 %v4710_v62, %s4169_s10  ;;  %1939 = vrot.lane.b32.xlu0 %v4730_v9, %s4168_s7  ;;  %v866_v29 = vadd.f32 %v4644_v45, %v865_v27  ;;  %vm1215_vm12 = vcmp.gt.f32.partialorder %v1189_v24, 0.0  ;;  %v1223_v30 = vmul.f32 0.2, %v1189_v24  ;;  %6251 = vst [vmem:[#allocation8_spill] sm:$0xff] %v4803_v23  ;;  %v4812_v25 = vpop.permute.xlu0 %1967 }
 0x194   : > { %vm897_vm13 = vcmp.gt.f32.partialorder %v871_v26, 0.0  ;;  %v905_v13 = vmul.f32 0.2, %v871_v26  ;;  %vm1214_vm14 = vcmp.gt.f32.partialorder %v1184_v28, 0.0  ;;  %v1222_v31 = vmul.f32 0.2, %v1184_v28 }
 0x195   : > { %vm896_vm15 = vcmp.gt.f32.partialorder %v866_v29, 0.0  ;;  %v1231_v32 = vsel %vm1215_vm12, %v1189_v24, %v1223_v30  ;;  %v904_v34 = vmul.f32 0.2, %v866_v29  ;;  %vm1619_vm12 = vcmask 326656  }
 0x196   : > { %v913_v33 = vsel %vm897_vm13, %v871_v26, %v905_v13  ;;  %1240 = vst.msk [vmem:[#allocation2 + $0x221] sm:$0xff] %vm223_vm2, %v1231_v32  ;;  %v1230_v35 = vsel %vm1214_vm14, %v1184_v28, %v1222_v31  ;;  %v2380_v26 = vld [vmem:[#allocation2 + $0xe0] sm:$0xff]  ;;  %v4817_v27 = vpop.permute.xlu1 %1439  ;;  %vm1628_vm13 = vcmask 392192   ;;  %vm1637_vm14 = vcmask 457728  }
 0x197   : > { %3015 = vrot.lane.b32.xlu1 %v4710_v62, %s4165_s30  ;;  %2065 = vrot.lane.b32.xlu0 %v4724_v21, %s4173_s14  ;;  %922 = vst.msk [vmem:[#allocation2 + $0x181] sm:$0xff] %vm223_vm2, %v913_v33  ;;  %1239 = vst.msk [vmem:[#allocation2 + $0x211] sm:$0xff] %vm223_vm2, %v1230_v35  ;;  %v912_v37 = vsel %vm896_vm15, %v866_v29, %v904_v34  ;;  %v4819_v28 = vld [vmem:[#allocation2 + $0xe1] sm:$0xff]  ;;  %v4823_v30 = vpop.permute.xlu0 %2031  ;;  %vm1646_vm15 = vcmask 523264  }
 0x198   : > { %921 = vst.msk [vmem:[#allocation2 + $0x171] sm:$0xff] %vm223_vm2, %v912_v37  ;;  %6252 = vst [vmem:[#allocation9_spill] sm:$0xff] %v4817_v27 }
 0x19a   : > { %v4829_v13 = vpop.permute.xlu1 %1973 }
 0x19b   : > { %2493 = vrot.lane.b32.xlu1 %v4710_v62, %s4168_s7  ;;  %2129 = vrot.lane.b32.xlu0 %v4730_v9, %s4174_s15  ;;  %6253 = vst [vmem:[#allocation10_spill] sm:$0xff] %v4829_v13  ;;  %v4834_v32 = vpop.permute.xlu0 %3045 }
 0x19c   : > { %6254 = vst [vmem:[#allocation11_spill] sm:$0xff] %v4834_v32  ;;  %v5009_v32 = vld [vmem:[#allocation2 + $0x201] sm:$0xff] }
 0x19e   : > { %v4821_v29 = vld [vmem:[#allocation2 + $0x181] sm:$0xff]  ;;  %v4840_v33 = vpop.permute.xlu1 %2037 }
 0x19f   : > { %3079 = vrot.lane.b32.xlu1 %v4724_v21, %s4170_s11  ;;  %1401 = vrot.lane.b32.xlu0 %v2377_v39, %s4170_s11  ;;  %v1843_v31 = vld [vmem:[#allocation2 + $0x182] sm:$0xff]  ;;  %6255 = vst [vmem:[#allocation12_spill] sm:$0xff] %v4840_v33  ;;  %v4842_v34 = vld [vmem:[#allocation2 + $0x171] sm:$0xff]  ;;  %v4844_v35 = vpop.permute.xlu0 %2465 }
 0x1a0   : > { %v3849_v41 = vpop.f32.mrb[12].mxu1  ;;  %6256 = vst [vmem:[#allocation13_spill] sm:$0xff] %v4844_v35  ;;  %v4851_v39 = vld [vmem:[#allocation2 + $0xd0] sm:$0xff] }
 0x1a1   : > { %v3833_v42 = vpop.f32.mrb[12].mxu0  ;;  %v1199_v44 = vadd.f32 %v3849_v41, %v4644_v45  ;;  %v1193_v17 = vpop.f32.mrb[13].mxu1  ;;  %v4853_v41 = vld [vmem:[#allocation2 + $0x172] sm:$0xff] }
 0x1a2   : > { %v881_v46 = vadd.f32 %v3833_v42, %v4644_v45  ;;  %v875_v47 = vpop.f32.mrb[13].mxu0  ;;  %v1194_v48 = vadd.f32 %v4644_v45, %v1193_v17  ;;  %v4849_v37 = vpop.permute.xlu1 %1443  ;;  %v5147_v33 = vld [vmem:[#allocation2 + $0x210] sm:$0xff] }
 0x1a3   : > { %2557 = vrot.lane.b32.xlu1 %v4724_v21, %s4169_s10  ;;  %1465 = vrot.lane.b32.xlu0 %v1297_v43, %s4171_s12  ;;  %v876_v49 = vadd.f32 %v4644_v45, %v875_v47  ;;  %vm1217_vm0 = vcmp.gt.f32.partialorder %v1199_v44, 0.0  ;;  %v1225_v51 = vmul.f32 0.2, %v1199_v44  ;;  %6257 = vst [vmem:[#allocation14_spill] sm:$0xff] %v4849_v37  ;;  %v4859_v42 = vpop.permute.xlu0 %1437 }
 0x1a4   : > { %vm899_vm1 = vcmp.gt.f32.partialorder %v881_v46, 0.0  ;;  %v907_v20 = vmul.f32 0.2, %v881_v46  ;;  %vm1216_vm3 = vcmp.gt.f32.partialorder %v1194_v48, 0.0  ;;  %v1224_v52 = vmul.f32 0.2, %v1194_v48 }
 0x1a5   : > { %vm898_vm4 = vcmp.gt.f32.partialorder %v876_v49, 0.0  ;;  %v906_v53 = vmul.f32 0.2, %v876_v49  ;;  %v1233_v55 = vsel %vm1217_vm0, %v1199_v44, %v1225_v51  ;;  %6258 = vst [vmem:[#allocation15_spill] sm:$0xff] %v4859_v42  ;;  %v1286_v51 = vld [vmem:[#allocation2 + $0x100] sm:$0xff]  ;;  %vm1661_vm0 = vcmask 588800  }
 0x1a6   : > { %v915_v57 = vsel %vm899_vm1, %v881_v46, %v907_v20  ;;  %1242 = vst.msk [vmem:[#allocation2 + $0x241] sm:$0xff] %vm223_vm2, %v1233_v55  ;;  %v1232_v59 = vsel %vm1216_vm3, %v1194_v48, %v1224_v52  ;;  %v4863_v44 = vpop.permute.xlu1 %1977  ;;  %v4894_v55 = vld [vmem:[#allocation2 + $0x101] sm:$0xff] }
 0x1a7   : > { %1339 = vrot.lane.b32.xlu1 %v4772_v54, %s4165_s30  ;;  %1529 = vrot.lane.b32.xlu0 %v4772_v54, %s4172_s13  ;;  %924 = vst.msk [vmem:[#allocation2 + $0x1a1] sm:$0xff] %vm223_vm2, %v915_v57  ;;  %v914_v60 = vsel %vm898_vm4, %v876_v49, %v906_v53  ;;  %1241 = vst.msk [vmem:[#allocation2 + $0x231] sm:$0xff] %vm223_vm2, %v1232_v59  ;;  %v4869_v17 = vpop.permute.xlu0 %1971  ;;  %v4901_v59 = vld [vmem:[#allocation2 + $0xf0] sm:$0xff] }
 0x1a8   : > { %923 = vst.msk [vmem:[#allocation2 + $0x191] sm:$0xff] %vm223_vm2, %v914_v60  ;;  %6259 = vst [vmem:[#allocation16_spill] sm:$0xff] %v4863_v44 }
 0x1a9   : > { %6264 = vst [vmem:[#allocation21_spill] sm:$0xff] %v4894_v55  ;;  %6266 = vst [vmem:[#allocation23_spill] sm:$0xff] %v4901_v59 }
 0x1aa   : > { %v4875_v46 = vpop.permute.xlu1 %2041 }
 0x1ab   : > { %1937 = vrot.lane.b32.xlu1 %v1840_v63, %s4168_s7  ;;  %1999 = vrot.lane.b32.xlu0 %v1297_v43, %s4169_s10  ;;  %6260 = vst [vmem:[#allocation17_spill] sm:$0xff] %v4875_v46  ;;  %v4881_v47 = vpop.permute.xlu0 %2035 }
 0x1ad   : > { %v5159_v13 = vld [vmem:[#allocation2 + $0x241] sm:$0xff] }
 0x1ae   : > { %v1271_v48 = vld [vmem:[#allocation2 + $0x1a1] sm:$0xff]  ;;  %v4883_v49 = vpop.permute.xlu1 %1447  ;;  %6298 = vst [vmem:[#allocation55_spill] sm:$0xff] %v5159_v13  ;;  %v5177_v27 = vld [vmem:[#allocation2 + $0x231] sm:$0xff] }
 0x1af   : > { %2063 = vrot.lane.b32.xlu1 %v4772_v54, %s4173_s14  ;;  %3013 = vrot.lane.b32.xlu0 %v1297_v43, %s4165_s30  ;;  %6261 = vst [vmem:[#allocation18_spill] sm:$0xff] %v4883_v49  ;;  %v1845_v20 = vld [vmem:[#allocation2 + $0x1a2] sm:$0xff]  ;;  %v4888_v52 = vpop.permute.xlu0 %2463  ;;  %6303 = vst [vmem:[#allocation60_spill] sm:$0xff] %v5177_v27 }
 0x1b0   : > { %v3852_v2 = vpop.f32.mrb[14].mxu1  ;;  %6262 = vst [vmem:[#allocation19_spill] sm:$0xff] %v4888_v52 }
 0x1b1   : > { %v3836_v3 = vpop.f32.mrb[14].mxu0  ;;  %v1209_v4 = vadd.f32 %v3852_v2, %v4644_v45  ;;  %v1203_v5 = vpop.f32.mrb[15].mxu1  ;;  %v4910_v2 = vld [vmem:[#allocation2 + $0xf1] sm:$0xff] }
 0x1b2   : > { %v891_v6 = vadd.f32 %v3836_v3, %v4644_v45  ;;  %v885_v7 = vpop.f32.mrb[15].mxu0  ;;  %v1204_v11 = vadd.f32 %v4644_v45, %v1203_v5  ;;  %v4892_v53 = vpop.permute.xlu1 %1981 }
 0x1b3   : > { %2127 = vrot.lane.b32.xlu1 %v1840_v63, %s4174_s15  ;;  %2491 = vrot.lane.b32.xlu0 %v1297_v43, %s4168_s7  ;;  %v886_v12 = vadd.f32 %v4644_v45, %v885_v7  ;;  %vm1219_vm6 = vcmp.gt.f32.partialorder %v1209_v4, 0.0  ;;  %v1227_v8 = vmul.f32 0.2, %v1209_v4  ;;  %v4861_v43 = vld [vmem:[#allocation2 + $0xd1] sm:$0xff]  ;;  %6263 = vst [vmem:[#allocation20_spill] sm:$0xff] %v4892_v53  ;;  %v4896_v57 = vpop.permute.xlu0 %1441  ;;  %v5030_v53 = vld [vmem:[#allocation2 + $0x200] sm:$0xff] }
 0x1b4   : > { %vm901_vm7 = vcmp.gt.f32.partialorder %v891_v6, 0.0  ;;  %v909_v15 = vmul.f32 0.2, %v891_v6  ;;  %vm1218_vm8 = vcmp.gt.f32.partialorder %v1204_v11, 0.0  ;;  %v1226_v16 = vmul.f32 0.2, %v1204_v11 }
 0x1b5   : > { %vm900_vm9 = vcmp.gt.f32.partialorder %v886_v12, 0.0  ;;  %v908_v18 = vmul.f32 0.2, %v886_v12  ;;  %v1235_v19 = vsel %vm1219_vm6, %v1209_v4, %v1227_v8  ;;  %6265 = vst [vmem:[#allocation22_spill] sm:$0xff] %v4896_v57  ;;  %v4918_v4 = vld [vmem:[#allocation2 + $0x191] sm:$0xff] }
 0x1b6   : > { %v917_v22 = vsel %vm901_vm7, %v891_v6, %v909_v15  ;;  %1244 = vst.msk [vmem:[#allocation2 + $0x261] sm:$0xff] %vm223_vm2, %v1235_v19  ;;  %v1234_v45 = vsel %vm1218_vm8, %v1204_v11, %v1226_v16  ;;  %v4903_v60 = vpop.permute.xlu1 %2045  ;;  %6270 = vst [vmem:[#allocation27_spill] sm:$0xff] %v4918_v4  ;;  %v1844_v11 = vld [vmem:[#allocation2 + $0x192] sm:$0xff]  ;;  %v1288_v15 = vld [vmem:[#allocation2 + $0x120] sm:$0xff] }
 0x1b7   : > { %3141 = vrot.lane.b32.xlu1 %v1840_v63, %s4171_s12  ;;  %3077 = vrot.lane.b32.xlu0 %v4772_v54, %s4170_s11  ;;  %926 = vst.msk [vmem:[#allocation2 + $0x1c1] sm:$0xff] %vm223_vm2, %v917_v22  ;;  %v916_v24 = vsel %vm900_vm9, %v886_v12, %v908_v18  ;;  %1243 = vst.msk [vmem:[#allocation2 + $0x251] sm:$0xff] %vm223_vm2, %v1234_v45  ;;  %v4908_v63 = vpop.permute.xlu0 %1975  ;;  %v1304_v19 = vld [vmem:[#allocation2 + $0x121] sm:$0xff]  ;;  %v1287_v22 = vld [vmem:[#allocation2 + $0x110] sm:$0xff] }
 0x1b8   : > { %925 = vst.msk [vmem:[#allocation2 + $0x1b1] sm:$0xff] %vm223_vm2, %v916_v24  ;;  %6267 = vst [vmem:[#allocation24_spill] sm:$0xff] %v4903_v60 }
 0x1b9   : > { %6268 = vst [vmem:[#allocation25_spill] sm:$0xff] %v4908_v63  ;;  %v5103_v63 = vld [vmem:[#allocation2 + $0x220] sm:$0xff] }
 0x1ba   : > { %v4916_v3 = vpop.permute.xlu1 %2043 }
 0x1bb   : > { %1407 = vrot.lane.b32.xlu1 %v2380_v26, %s4170_s11  ;;  %2555 = vrot.lane.b32.xlu0 %v4772_v54, %s4169_s10  ;;  %6269 = vst [vmem:[#allocation26_spill] sm:$0xff] %v4916_v3  ;;  %v4920_v5 = vpop.permute.xlu0 %2039 }
 0x1bc   : > { %6271 = vst [vmem:[#allocation28_spill] sm:$0xff] %v4920_v5 }
 0x1be   : > { %v1320_v26 = vld [vmem:[#allocation2 + $0x1c1] sm:$0xff] }
 0x1bf   : > { %1471 = vrot.lane.b32.xlu1 %v4819_v28, %s4171_s12  ;;  %1345 = vrot.lane.b32.xlu0 %v4821_v29, %s4165_s30  ;;  %v4925_v6 = vpop.permute.xlu0 %1445  ;;  %v1894_v1 = vld [vmem:[#allocation2 + $0x1c2] sm:$0xff] }
 0x1c0   : > { %6272 = vst [vmem:[#allocation29_spill] sm:$0xff] %v4925_v6  ;;  %v1274_v6 = vld [vmem:[#allocation2 + $0x1f1] sm:$0xff] }
 0x1c3   : > { %1535 = vrot.lane.b32.xlu1 %v4821_v29, %s4172_s13  ;;  %1943 = vrot.lane.b32.xlu0 %v1843_v31, %s4168_s7  ;;  %v4936_v12 = vpop.permute.xlu0 %1979 }
 0x1c4   : > { %6273 = vst [vmem:[#allocation30_spill] sm:$0xff] %v4936_v12  ;;  %v5081_v12 = vld [vmem:[#allocation2 + $0x1f0] sm:$0xff] }
 0x1c7   : > { %2005 = vrot.lane.b32.xlu1 %v4819_v28, %s4169_s10  ;;  %2069 = vrot.lane.b32.xlu0 %v4821_v29, %s4173_s14 }
 0x1cb   : > { %1343 = vrot.lane.b32.xlu1 %v4842_v34, %s4165_s30  ;;  %2133 = vrot.lane.b32.xlu0 %v1843_v31, %s4174_s15  ;;  %v1303_v31 = vld [vmem:[#allocation2 + $0x111] sm:$0xff] }
 0x1cf   : > { %1941 = vrot.lane.b32.xlu1 %v4853_v41, %s4168_s7  ;;  %1405 = vrot.lane.b32.xlu0 %v4851_v39, %s4170_s11 }
 0x1d3   : > { %2067 = vrot.lane.b32.xlu1 %v4842_v34, %s4173_s14  ;;  %1469 = vrot.lane.b32.xlu0 %v4861_v43, %s4171_s12 }
 0x1d7   : > { %2131 = vrot.lane.b32.xlu1 %v4853_v41, %s4174_s15  ;;  %1533 = vrot.lane.b32.xlu0 %v4842_v34, %s4172_s13 }
 0x1db   : > { %3017 = vrot.lane.b32.xlu1 %v4861_v43, %s4165_s30  ;;  %2003 = vrot.lane.b32.xlu0 %v4861_v43, %s4169_s10 }
 0x1df   : > { %2495 = vrot.lane.b32.xlu1 %v4861_v43, %s4168_s7  ;;  %1349 = vrot.lane.b32.xlu0 %v1271_v48, %s4165_s30 }
 0x1e3   : > { %1411 = vrot.lane.b32.xlu1 %v1286_v51, %s4170_s11  ;;  %1947 = vrot.lane.b32.xlu0 %v1845_v20, %s4168_s7 }
 0x1e7   : > { %1475 = vrot.lane.b32.xlu1 %v4894_v55, %s4171_s12  ;;  %2137 = vrot.lane.b32.xlu0 %v1845_v20, %s4174_s15  ;;  %v4958_v20 = vld [vmem:[#allocation2 + $0x1b1] sm:$0xff] }
 0x1e8   : > { %6275 = vst [vmem:[#allocation32_spill] sm:$0xff] %v4958_v20 }
 0x1e9   : > { %v4927_v7 = vpop.permute.xlu1 %1403 }
 0x1eb   : > { %1539 = vrot.lane.b32.xlu1 %v1271_v48, %s4172_s13  ;;  %1409 = vrot.lane.b32.xlu0 %v4901_v59, %s4170_s11 }
 0x1ed   : > { %v4938_v8 = vpop.permute.xlu1 %1467 }
 0x1ef   : > { %2009 = vrot.lane.b32.xlu1 %v4894_v55, %s4169_s10  ;;  %1473 = vrot.lane.b32.xlu0 %v4910_v2, %s4171_s12  ;;  %v5187_v55 = vld [vmem:[#allocation2 + $0x230] sm:$0xff] }
 0x1f0   : > { %6306 = vst [vmem:[#allocation63_spill] sm:$0xff] %v5187_v55 }
 0x1f3   : > { %2073 = vrot.lane.b32.xlu1 %v1271_v48, %s4173_s14  ;;  %1537 = vrot.lane.b32.xlu0 %v4918_v4, %s4172_s13 }
 0x1f7   : > { %1347 = vrot.lane.b32.xlu1 %v4918_v4, %s4165_s30  ;;  %2007 = vrot.lane.b32.xlu0 %v4910_v2, %s4169_s10 }
 0x1fb   : > { %1945 = vrot.lane.b32.xlu1 %v1844_v11, %s4168_s7  ;;  %2071 = vrot.lane.b32.xlu0 %v4918_v4, %s4173_s14  ;;  %v5112_v4 = vld [vmem:[#allocation2 + $0x221] sm:$0xff] }
 0x1ff   : > { %1415 = vrot.lane.b32.xlu1 %v1288_v15, %s4170_s11  ;;  %2135 = vrot.lane.b32.xlu0 %v1844_v11, %s4174_s15 }
 0x201   : > { %v4942_v16 = vpop.permute.xlu1 %1531  ;;  %v4944_v18 = vpop.permute.xlu0 %1341 }
 0x203   : > { %1479 = vrot.lane.b32.xlu1 %v1304_v19, %s4171_s12  ;;  %1413 = vrot.lane.b32.xlu0 %v1287_v22, %s4170_s11 }
 0x205   : > { %v4948_v45 = vpop.permute.xlu1 %2001  ;;  %v4950_v24 = vpop.permute.xlu0 %1939 }
 0x207   : > { %1543 = vrot.lane.b32.xlu1 %v1320_v26, %s4172_s13  ;;  %1477 = vrot.lane.b32.xlu0 %v1303_v31, %s4171_s12 }
 0x209   : > { %v4954_v48 = vpop.permute.xlu1 %3015  ;;  %v4956_v51 = vpop.permute.xlu0 %2065 }
 0x20a   : > { %6274 = vst [vmem:[#allocation31_spill] sm:$0xff] %v4954_v48  ;;  %v1247_v48 = vld [vmem:[%s6223_s3 + $0x8] sm:$0xff] }
 0x20b   : > { %2013 = vrot.lane.b32.xlu1 %v1304_v19, %s4169_s10  ;;  %1541 = vrot.lane.b32.xlu0 %v4958_v20, %s4172_s13  ;;  %v1246_v19 = vld [vmem:[%s6223_s3] sm:$0xff] }
 0x20d   : > { %v4963_v11 = vpop.permute.xlu1 %2493  ;;  %v4965_v15 = vpop.permute.xlu0 %2129 }
 0x20e   : > { %6276 = vst [vmem:[#allocation33_spill] sm:$0xff] %v4963_v11  ;;  %v1248_v11 = vld [vmem:[%s6223_s3 + $0x10] sm:$0xff] }
 0x20f   : > { %2077 = vrot.lane.b32.xlu1 %v1320_v26, %s4173_s14  ;;  %2011 = vrot.lane.b32.xlu0 %v1303_v31, %s4169_s10  ;;  %v4982_v26 = vpack.c.bf16 %v1247_v48, %v1246_v19  ;;  %v4997_v48 = vpack.c.bf16 %v1249_v61, %v1248_v11  ;;  %v1250_v61 = vld [vmem:[%s6223_s3 + $0x20] sm:$0xff]  ;;  %v1251_v11 = vld [vmem:[%s6223_s3 + $0x28] sm:$0xff] }
 0x210   : > { %v5022_v35 = vpack.c.bf16 %v1251_v11, %v1250_v61  ;;  %v1253_v61 = vld [vmem:[%s6223_s3 + $0x38] sm:$0xff] }
 0x211   : > { %v4969_v22 = vpop.permute.xlu1 %3079  ;;  %v4971_v52 = vpop.permute.xlu0 %1401  ;;  %3978 = vmatprep.subr.bf16.mxu0 %v4982_v26  ;;  %3994 = vmatprep.subr.bf16.mxu1 %v4982_v26 }
 0x212   : > { %6277 = vst [vmem:[#allocation34_spill] sm:$0xff] %v4969_v22  ;;  %3980 = vmatpush3.bf16.msra.mxu0 %v4982_v26  ;;  %3996 = vmatpush3.bf16.msra.mxu1 %v4982_v26 }
 0x213   : > { %2141 = vrot.lane.b32.xlu1 %v1894_v1, %s4174_s15  ;;  %2075 = vrot.lane.b32.xlu0 %v4958_v20, %s4173_s14  ;;  %v1893_v1 = vld [vmem:[#allocation2 + $0x1b2] sm:$0xff] }
 0x214   : > { %3982 = vmatprep.subr.bf16.mxu0 %v4997_v48  ;;  %3998 = vmatprep.subr.bf16.mxu1 %v4997_v48 }
 0x215   : > { %v4984_v31 = vpop.permute.xlu1 %2557  ;;  %v4986_v22 = vpop.permute.xlu0 %1465 }
 0x216   : > { %6278 = vst [vmem:[#allocation35_spill] sm:$0xff] %v4984_v31  ;;  %3984 = vmatpush3.bf16.msra.mxu0 %v4997_v48  ;;  %4000 = vmatpush3.bf16.msra.mxu1 %v4997_v48 }
 0x217   : > { %1351 = vrot.lane.b32.xlu1 %v4958_v20, %s4165_s30  ;;  %2139 = vrot.lane.b32.xlu0 %v1893_v1, %s4174_s15 }
 0x218   : > { %3986 = vmatprep.subr.bf16.mxu0 %v5022_v35  ;;  %4002 = vmatprep.subr.bf16.mxu1 %v5022_v35 }
 0x219   : > { %v5005_v19 = vpop.permute.xlu1 %1339  ;;  %v5007_v31 = vpop.permute.xlu0 %1529 }
 0x21a   : > { %3988 = vmatpush3.bf16.msra.mxu0 %v5022_v35  ;;  %4004 = vmatpush3.bf16.msra.mxu1 %v5022_v35 }
 0x21b   : > { %1949 = vrot.lane.b32.xlu1 %v1893_v1, %s4168_s7  ;;  %1373 = vrot.lane.b32.xlu0 %v5009_v32, %s4168_s7  ;;  %v1252_v1 = vld [vmem:[%s6223_s3 + $0x30] sm:$0xff] }
 0x21c   : > { %v5044_v11 = vpack.c.bf16 %v1253_v61, %v1252_v1  ;;  %v5061_v1 = vld [vmem:[%s6223_s3 + $0x40] sm:$0xff] }
 0x21d   : > { %v5024_v23 = vpop.permute.xlu1 %1937  ;;  %v5026_v60 = vpop.permute.xlu0 %1999 }
 0x21e   : > { %3990 = vmatprep.subr.bf16.mxu0 %v5044_v11  ;;  %4006 = vmatprep.subr.bf16.mxu1 %v5044_v11 }
 0x21f   : > { %1499 = vrot.lane.b32.xlu1 %v5030_v53, %s4173_s14  ;;  %1907 = vrot.lane.b32.xlu0 %v5009_v32, %s4165_s30 }
 0x220   : > { %3992 = vmatpush3.bf16.msra.mxu0 %v5044_v11  ;;  %4008 = vmatpush3.bf16.msra.mxu1 %v5044_v11 }
 0x221   : > { %v5046_v20 = vpop.permute.xlu1 %2063  ;;  %v5048_v49 = vpop.permute.xlu0 %3013  ;;  %3869 = vmatprep.subr.mxu0 %v5061_v1  ;;  %3899 = vmatprep.subr.mxu1 %v5061_v1 }
 0x222   : > { %6279 = vst [vmem:[#allocation36_spill] sm:$0xff] %v5048_v49 }
 0x223   : > { %1563 = vrot.lane.b32.xlu1 %v5009_v32, %s4174_s15  ;;  %2097 = vrot.lane.b32.xlu0 %v5009_v32, %s4172_s13 }
 0x224   : > { %3870 = vmatpush3.msra.mxu0 %v5061_v1  ;;  %3900 = vmatpush3.msra.mxu1 %v5061_v1 }
 0x225   : > { %v5063_v61 = vpop.permute.xlu1 %2127  ;;  %v5065_v49 = vpop.permute.xlu0 %2491  ;;  %4010 = vmatprep.subr.bf16.mxu0 %v4982_v26  ;;  %4026 = vmatprep.subr.bf16.mxu1 %v4982_v26 }
 0x226   : > { %6280 = vst [vmem:[#allocation37_spill] sm:$0xff] %v5065_v49 }
 0x227   : > { %2525 = vrot.lane.b32.xlu1 %v5030_v53, %s4170_s11  ;;  %3111 = vrot.lane.b32.xlu0 %v5009_v32, %s4169_s10 }
 0x229   : > { %v5077_v3 = vpop.permute.xlu1 %3141  ;;  %v5079_v49 = vpop.permute.xlu0 %3077 }
 0x22a   : > { %6281 = vst [vmem:[#allocation38_spill] sm:$0xff] %v5077_v3  ;;  %6282 = vst [vmem:[#allocation39_spill] sm:$0xff] %v5079_v49 }
 0x22b   : > { %1371 = vrot.lane.b32.xlu1 %v1274_v6, %s4168_s7  ;;  %1497 = vrot.lane.b32.xlu0 %v5081_v12, %s4173_s14 }
 0x22d   : > { %v5086_v46 = vpop.permute.xlu1 %1407  ;;  %v5088_v5 = vpop.permute.xlu0 %2555 }
 0x22e   : > { %6283 = vst [vmem:[#allocation40_spill] sm:$0xff] %v5088_v5 }
 0x22f   : > { %1905 = vrot.lane.b32.xlu1 %v1274_v6, %s4165_s30  ;;  %1561 = vrot.lane.b32.xlu0 %v1274_v6, %s4174_s15 }
 0x231   : > { %v5092_v44 = vpop.permute.xlu1 %1471  ;;  %v5094_v3 = vpop.permute.xlu0 %1345 }
 0x232   : > { %6284 = vst [vmem:[#allocation41_spill] sm:$0xff] %v5092_v44  ;;  %6285 = vst [vmem:[#allocation42_spill] sm:$0xff] %v5094_v3  ;;  %v5121_v3 = vld [vmem:[#allocation2 + $0x211] sm:$0xff] }
 0x233   : > { %2095 = vrot.lane.b32.xlu1 %v1274_v6, %s4172_s13  ;;  %2523 = vrot.lane.b32.xlu0 %v5081_v12, %s4170_s11 }
 0x235   : > { %v5099_v49 = vpop.permute.xlu1 %1535  ;;  %v5101_v37 = vpop.permute.xlu0 %1943 }
 0x236   : > { %6286 = vst [vmem:[#allocation43_spill] sm:$0xff] %v5099_v49  ;;  %6287 = vst [vmem:[#allocation44_spill] sm:$0xff] %v5101_v37 }
 0x237   : > { %1503 = vrot.lane.b32.xlu1 %v5103_v63, %s4173_s14  ;;  %3109 = vrot.lane.b32.xlu0 %v1274_v6, %s4169_s10 }
 0x239   : > { %v5108_v5 = vpop.permute.xlu1 %2005  ;;  %v5110_v57 = vpop.permute.xlu0 %2069 }
 0x23a   : > { %6288 = vst [vmem:[#allocation45_spill] sm:$0xff] %v5108_v5  ;;  %6289 = vst [vmem:[#allocation46_spill] sm:$0xff] %v5110_v57  ;;  %v5149_v5 = vld [vmem:[#allocation2 + $0x240] sm:$0xff] }
 0x23b   : > { %1567 = vrot.lane.b32.xlu1 %v5112_v4, %s4174_s15  ;;  %2587 = vrot.lane.b32.xlu0 %v1274_v6, %s4171_s12  ;;  %6296 = vst [vmem:[#allocation53_spill] sm:$0xff] %v5149_v5 }
 0x23d   : > { %v5117_v59 = vpop.permute.xlu1 %1343  ;;  %v5119_v37 = vpop.permute.xlu0 %2133 }
 0x23e   : > { %6290 = vst [vmem:[#allocation47_spill] sm:$0xff] %v5119_v37 }
 0x23f   : > { %1375 = vrot.lane.b32.xlu1 %v5121_v3, %s4168_s7  ;;  %1377 = vrot.lane.b32.xlu0 %v5112_v4, %s4168_s7 }
 0x241   : > { %v5127_v49 = vpop.permute.xlu1 %1941  ;;  %v5129_v57 = vpop.permute.xlu0 %1405 }
 0x242   : > { %6291 = vst [vmem:[#allocation48_spill] sm:$0xff] %v5127_v49  ;;  %v5197_v49 = vld [vmem:[#allocation2 + $0x260] sm:$0xff] }
 0x243   : > { %1909 = vrot.lane.b32.xlu1 %v5121_v3, %s4165_s30  ;;  %1911 = vrot.lane.b32.xlu0 %v5112_v4, %s4165_s30  ;;  %6309 = vst [vmem:[#allocation66_spill] sm:$0xff] %v5197_v49 }
 0x245   : > { %v5135_v6 = vpop.permute.xlu1 %2067  ;;  %v5137_v37 = vpop.permute.xlu0 %1469 }
 0x246   : > { %6292 = vst [vmem:[#allocation49_spill] sm:$0xff] %v5135_v6  ;;  %6293 = vst [vmem:[#allocation50_spill] sm:$0xff] %v5137_v37 }
 0x247   : > { %2099 = vrot.lane.b32.xlu1 %v5121_v3, %s4172_s13  ;;  %2101 = vrot.lane.b32.xlu0 %v5112_v4, %s4172_s13 }
 0x249   : > { %v5143_v44 = vpop.permute.xlu1 %2131  ;;  %v5145_v42 = vpop.permute.xlu0 %1533 }
 0x24a   : > { %6294 = vst [vmem:[#allocation51_spill] sm:$0xff] %v5143_v44  ;;  %6295 = vst [vmem:[#allocation52_spill] sm:$0xff] %v5145_v42 }
 0x24b   : > { %1507 = vrot.lane.b32.xlu1 %v5149_v5, %s4173_s14  ;;  %1501 = vrot.lane.b32.xlu0 %v5147_v33, %s4173_s14 }
 0x24d   : > { %v5155_v37 = vpop.permute.xlu1 %3017  ;;  %v5157_v6 = vpop.permute.xlu0 %2003 }
 0x24e   : > { %6297 = vst [vmem:[#allocation54_spill] sm:$0xff] %v5155_v37 }
 0x24f   : > { %1571 = vrot.lane.b32.xlu1 %v5159_v13, %s4174_s15  ;;  %1565 = vrot.lane.b32.xlu0 %v5121_v3, %s4174_s15 }
 0x251   : > { %v5165_v42 = vpop.permute.xlu1 %2495  ;;  %v5167_v44 = vpop.permute.xlu0 %1349 }
 0x252   : > { %6299 = vst [vmem:[#allocation56_spill] sm:$0xff] %v5165_v42  ;;  %6300 = vst [vmem:[#allocation57_spill] sm:$0xff] %v5167_v44 }
 0x253   : > { %2105 = vrot.lane.b32.xlu1 %v5159_v13, %s4172_s13  ;;  %1381 = vrot.lane.b32.xlu0 %v5159_v13, %s4168_s7 }
 0x255   : > { %v5173_v37 = vpop.permute.xlu1 %1411  ;;  %v5175_v5 = vpop.permute.xlu0 %1947 }
 0x256   : > { %6301 = vst [vmem:[#allocation58_spill] sm:$0xff] %v5173_v37  ;;  %6302 = vst [vmem:[#allocation59_spill] sm:$0xff] %v5175_v5 }
 0x257   : > { %1379 = vrot.lane.b32.xlu1 %v5177_v27, %s4168_s7  ;;  %1915 = vrot.lane.b32.xlu0 %v5159_v13, %s4165_s30 }
 0x259   : > { %v5183_v42 = vpop.permute.xlu1 %1475  ;;  %v5185_v44 = vpop.permute.xlu0 %2137 }
 0x25a   : > { %6304 = vst [vmem:[#allocation61_spill] sm:$0xff] %v5183_v42  ;;  %6305 = vst [vmem:[#allocation62_spill] sm:$0xff] %v5185_v44  ;;  %v1328_v42 = vld [vmem:[#allocation2 + $0x261] sm:$0xff] }
 0x25b   : > { %1913 = vrot.lane.b32.xlu1 %v5177_v27, %s4165_s30  ;;  %1505 = vrot.lane.b32.xlu0 %v5187_v55, %s4173_s14  ;;  %v5214_v55 = vld [vmem:[#allocation2 + $0x250] sm:$0xff] }
 0x25c   : > { %6314 = vst [vmem:[#allocation71_spill] sm:$0xff] %v5214_v55 }
 0x25d   : > { %v5193_v5 = vpop.permute.xlu1 %1539  ;;  %v5195_v37 = vpop.permute.xlu0 %1409 }
 0x25e   : > { %6307 = vst [vmem:[#allocation64_spill] sm:$0xff] %v5193_v5  ;;  %6308 = vst [vmem:[#allocation65_spill] sm:$0xff] %v5195_v37 }
 0x25f   : > { %1511 = vrot.lane.b32.xlu1 %v5197_v49, %s4173_s14  ;;  %1569 = vrot.lane.b32.xlu0 %v5177_v27, %s4174_s15 }
 0x261   : > { %v5203_v13 = vpop.permute.xlu1 %2009  ;;  %v5205_v44 = vpop.permute.xlu0 %1473 }
 0x262   : > { %6310 = vst [vmem:[#allocation67_spill] sm:$0xff] %v5203_v13  ;;  %6311 = vst [vmem:[#allocation68_spill] sm:$0xff] %v5205_v44  ;;  %v5223_v44 = vld [vmem:[#allocation2 + $0x251] sm:$0xff] }
 0x263   : > { %1575 = vrot.lane.b32.xlu1 %v1328_v42, %s4174_s15  ;;  %2103 = vrot.lane.b32.xlu0 %v5177_v27, %s4172_s13  ;;  %6316 = vst [vmem:[#allocation73_spill] sm:$0xff] %v5223_v44 }
 0x265   : > { %v5210_v5 = vpop.permute.xlu1 %2073  ;;  %v5212_v37 = vpop.permute.xlu0 %1537 }
 0x266   : > { %6312 = vst [vmem:[#allocation69_spill] sm:$0xff] %v5210_v5  ;;  %6313 = vst [vmem:[#allocation70_spill] sm:$0xff] %v5212_v37 }
 0x267   : > { %2109 = vrot.lane.b32.xlu1 %v1328_v42, %s4172_s13  ;;  %1509 = vrot.lane.b32.xlu0 %v5214_v55, %s4173_s14 }
 0x269   : > { %v5219_v49 = vpop.permute.xlu1 %1347  ;;  %v5221_v13 = vpop.permute.xlu0 %2007 }
 0x26a   : > { %6315 = vst [vmem:[#allocation72_spill] sm:$0xff] %v5221_v13 }
 0x26b   : > { %1383 = vrot.lane.b32.xlu1 %v5223_v44, %s4168_s7  ;;  %1573 = vrot.lane.b32.xlu0 %v5223_v44, %s4174_s15 }
 0x26d   : > { %v5229_v27 = vpop.permute.xlu1 %1945  ;;  %v5231_v5 = vpop.permute.xlu0 %2071 }
 0x26e   : > { %6317 = vst [vmem:[#allocation74_spill] sm:$0xff] %v5229_v27  ;;  %6318 = vst [vmem:[#allocation75_spill] sm:$0xff] %v5231_v5  ;;  %v5249_v5 = vld [vmem:[#allocation2 + $0x32] sm:$0xff]  ;;  %v2997_v27 = vld [vmem:[#allocation2 + $0x22] sm:$0xff] }
 0x26f   : > { %1917 = vrot.lane.b32.xlu1 %v5223_v44, %s4165_s30  ;;  %2107 = vrot.lane.b32.xlu0 %v5223_v44, %s4172_s13 }
 0x271   : > { %v5237_v42 = vpop.permute.xlu1 %1415  ;;  %v5239_v55 = vpop.permute.xlu0 %2135 }
 0x272   : > { %6319 = vst [vmem:[#allocation76_spill] sm:$0xff] %v5237_v42  ;;  %6320 = vst [vmem:[#allocation77_spill] sm:$0xff] %v5239_v55 }
 0x273   : > { %2619 = vrot.lane.b32.xlu1 %v4703_v56, %s4173_s14  ;;  %2589 = vrot.lane.b32.xlu0 %v5009_v32, %s4171_s12  ;;  %v2981_v56 = vld [vmem:[#allocation2 + $0x21] sm:$0xff] }
 0x275   : > { %v5245_v37 = vpop.permute.xlu1 %1479  ;;  %v5247_v13 = vpop.permute.xlu0 %1413 }
 0x276   : > { %6321 = vst [vmem:[#allocation78_spill] sm:$0xff] %v5245_v37  ;;  %6322 = vst [vmem:[#allocation79_spill] sm:$0xff] %v5247_v13 }
 0x277   : > { %3049 = vrot.lane.b32.xlu1 %v5249_v5, %s4168_s7  ;;  %3019 = vrot.lane.b32.xlu0 %v4819_v28, %s4165_s30 }
 0x279   : > { %v5255_v44 = vpop.permute.xlu1 %1543  ;;  %v5257_v42 = vpop.permute.xlu0 %1477 }
 0x27a   : > { %6323 = vst [vmem:[#allocation80_spill] sm:$0xff] %v5255_v44  ;;  %6324 = vst [vmem:[#allocation81_spill] sm:$0xff] %v5257_v42 }
 0x27b   : > { %3173 = vrot.lane.b32.xlu1 %v2981_v56, %s4173_s14  ;;  %3143 = vrot.lane.b32.xlu0 %v4730_v9, %s4171_s12 }
 0x27d   : > { %v5262_v32 = vpop.permute.xlu1 %2013  ;;  %v5264_v37 = vpop.permute.xlu0 %1541 }
 0x27e   : > { %6325 = vst [vmem:[#allocation82_spill] sm:$0xff] %v5262_v32  ;;  %6326 = vst [vmem:[#allocation83_spill] sm:$0xff] %v5264_v37  ;;  %v5281_v37 = vld [vmem:[#allocation2 + $0x42] sm:$0xff] }
 0x27f   : > { %2527 = vrot.lane.b32.xlu1 %v5147_v33, %s4170_s11  ;;  %2497 = vrot.lane.b32.xlu0 %v4819_v28, %s4168_s7  ;;  %6331 = vst [vmem:[#allocation88_spill] sm:$0xff] %v5281_v37 }
 0x281   : > { %v5270_v55 = vpop.permute.xlu1 %2077  ;;  %v5272_v44 = vpop.permute.xlu0 %2011 }
 0x282   : > { %6327 = vst [vmem:[#allocation84_spill] sm:$0xff] %v5270_v55  ;;  %6328 = vst [vmem:[#allocation85_spill] sm:$0xff] %v5272_v44  ;;  %v2443_v44 = vld [vmem:[#allocation2 + $0xc1] sm:$0xff] }
 0x283   : > { %2651 = vrot.lane.b32.xlu1 %v2981_v56, %s4172_s13  ;;  %2621 = vrot.lane.b32.xlu0 %v4851_v39, %s4173_s14  ;;  %v5291_v56 = vld [vmem:[#allocation2 + $0x31] sm:$0xff] }
 0x284   : > { %6334 = vst [vmem:[#allocation91_spill] sm:$0xff] %v5291_v56 }
 0x285   : > { %v5277_v9 = vpop.permute.xlu1 %2141  ;;  %v5279_v32 = vpop.permute.xlu0 %2075 }
 0x286   : > { %6329 = vst [vmem:[#allocation86_spill] sm:$0xff] %v5277_v9  ;;  %6330 = vst [vmem:[#allocation87_spill] sm:$0xff] %v5279_v32 }
 0x287   : > { %3081 = vrot.lane.b32.xlu1 %v4842_v34, %s4170_s11  ;;  %3051 = vrot.lane.b32.xlu0 %v5281_v37, %s4168_s7 }
 0x289   : > { %v5287_v28 = vpop.permute.xlu1 %1351  ;;  %v5289_v55 = vpop.permute.xlu0 %2139 }
 0x28a   : > { %6332 = vst [vmem:[#allocation89_spill] sm:$0xff] %v5287_v28  ;;  %6333 = vst [vmem:[#allocation90_spill] sm:$0xff] %v5289_v55  ;;  %v1256_v28 = vld [vmem:[#allocation2 + $0x1e0] sm:$0xff] }
 0x28b   : > { %3205 = vrot.lane.b32.xlu1 %v4710_v62, %s4172_s13  ;;  %3175 = vrot.lane.b32.xlu0 %v5291_v56, %s4173_s14  ;;  %v1585_v62 = vsel %vm223_vm2, %v1256_v28, %v4750_v14  ;;  %v4093_v28 = vld [vmem:[#allocation2 + $0x141] sm:$0xff] }
 0x28c   : > { %v1593_v42 = vsel %vm1082_vm5, %v1585_v62, %v4761_v40  ;;  %v2151_v13 = vsel %vm223_vm2, %v4093_v28, %v4774_v58  ;;  %v1586_v58 = vsel %vm223_vm2, %v5081_v12, %v5005_v19 }
 0x28d   : > { %v5297_v39 = vpop.permute.xlu1 %1949  ;;  %v5299_v9 = vpop.permute.xlu0 %1373 }
 0x28e   : > { %6335 = vst [vmem:[#allocation92_spill] sm:$0xff] %v5297_v39 }
 0x28f   : > { %2559 = vrot.lane.b32.xlu1 %v4842_v34, %s4169_s10  ;;  %2529 = vrot.lane.b32.xlu0 %v5103_v63, %s4170_s11 }
 0x291   : > { %v1500_v32 = vpop.permute.xlu1 %1499  ;;  %v5305_v55 = vpop.permute.xlu0 %1907 }
 0x293   : > { %2683 = vrot.lane.b32.xlu1 %v2443_v44, %s4174_s15  ;;  %2653 = vrot.lane.b32.xlu0 %v5291_v56, %s4172_s13  ;;  %v1602_v44 = vsel %vm1601_vm10, %v1593_v42, %v4971_v52  ;;  %v2159_v52 = vsel %vm1082_vm5, %v2151_v13, %v4788_v0 }
 0x294   : > { %v1611_v40 = vsel %vm1610_vm11, %v1602_v44, %v4797_v10  ;;  %v2167_v10 = vsel %vm1601_vm10, %v2159_v52, %v4812_v25 }
 0x295   : > { %v1564_v39 = vpop.permute.xlu1 %1563  ;;  %v5312_v37 = vpop.permute.xlu0 %2097  ;;  %v1620_v42 = vsel %vm1619_vm12, %v1611_v40, %v4986_v22  ;;  %v2175_v12 = vsel %vm1610_vm11, %v2167_v10, %v5026_v60 }
 0x297   : > { %3113 = vrot.lane.b32.xlu1 %v5121_v3, %s4169_s10  ;;  %3083 = vrot.lane.b32.xlu0 %v4821_v29, %s4170_s11 }
 0x299   : > { %v5322_v56 = vpop.permute.xlu1 %2525  ;;  %v5324_v14 = vpop.permute.xlu0 %3111 }
 0x29a   : > { %6336 = vst [vmem:[#allocation93_spill] sm:$0xff] %v5322_v56  ;;  %6337 = vst [vmem:[#allocation94_spill] sm:$0xff] %v5324_v14  ;;  %v5342_v56 = vld [vmem:[#allocation2 + $0x51] sm:$0xff] }
 0x29b   : > { %3237 = vrot.lane.b32.xlu1 %v2997_v27, %s4174_s15  ;;  %3207 = vrot.lane.b32.xlu0 %v4861_v43, %s4172_s13 }
 0x29d   : > { %v1372_v62 = vpop.permute.xlu1 %1371  ;;  %v1498_v28 = vpop.permute.xlu0 %1497 }
 0x29e   : > { %v1594_v27 = vsel %vm1082_vm5, %v1586_v58, %v1372_v62  ;;  %v1629_v14 = vsel %vm1628_vm13, %v1620_v42, %v1498_v28  ;;  %v6339_v42 = vld [vmem:[#allocation21_spill] sm:$0xff]  ;;  %v6341_v62 = vld [vmem:[#allocation10_spill] sm:$0xff] }
 0x29f   : > { %v1603_v0 = vsel %vm1601_vm10, %v1594_v27, %v4927_v7  ;;  %2561 = vrot.lane.b32.xlu1 %v4821_v29, %s4169_s10  ;;  %2467 = vrot.lane.b32.xlu0 %v5342_v56, %s4165_s30  ;;  %v1638_v29 = vsel %vm1637_vm14, %v1629_v14, %v5007_v31  ;;  %v6342_v27 = vld [vmem:[#allocation49_spill] sm:$0xff] }
 0x2a0   : > { %v1612_v13 = vsel %vm1610_vm11, %v1603_v0, %v4746_v36  ;;  %v6343_v0 = vld [vmem:[#allocation45_spill] sm:$0xff] }
 0x2a1   : > { %v1621_v22 = vsel %vm1619_vm12, %v1612_v13, %v4938_v8  ;;  %v1906_v7 = vpop.permute.xlu1 %1905  ;;  %v1562_v19 = vpop.permute.xlu0 %1561  ;;  %v2183_v8 = vsel %vm1619_vm12, %v2175_v12, %v4823_v30 }
 0x2a2   : > { %v1630_v44 = vsel %vm1628_vm13, %v1621_v22, %v1500_v32  ;;  %v2152_v25 = vsel %vm223_vm2, %v4772_v54, %v1906_v7  ;;  %v1647_v40 = vsel %vm1646_vm15, %v1638_v29, %v1562_v19  ;;  %v6344_v22 = vld [vmem:[#allocation12_spill] sm:$0xff]  ;;  %v5487_v29 = vld [vmem:[#allocation2 + $0x41] sm:$0xff] }
 0x2a3   : > { %v2160_v36 = vsel %vm1082_vm5, %v2152_v25, %v5024_v23  ;;  %2685 = vrot.lane.b32.xlu1 %v4861_v43, %s4174_s15  ;;  %2591 = vrot.lane.b32.xlu0 %v5121_v3, %s4171_s12  ;;  %v1639_v60 = vsel %vm1637_vm14, %v1630_v44, %v4942_v16  ;;  %v2191_v23 = vsel %vm1628_vm13, %v2183_v8, %v5046_v20  ;;  %v2976_v19 = vld [vmem:[#allocation2 + $0x182] sm:$0xff]  ;;  %v6346_v25 = vld [vmem:[#allocation41_spill] sm:$0xff] }
 0x2a4   : > { %v2168_v54 = vsel %vm1601_vm10, %v2160_v36, %v4756_v38  ;;  %3871 = vmatprep.mubr.msk.f32.mxu0 %vm1661_vm0, %v1647_v40  ;;  %v1648_v31 = vsel %vm1646_vm15, %v1639_v60, %v1564_v39  ;;  %v6345_v44 = vld [vmem:[#allocation15_spill] sm:$0xff]  ;;  %v6347_v36 = vld [vmem:[#allocation46_spill] sm:$0xff] }
 0x2a5   : > { %v2176_v43 = vsel %vm1610_vm11, %v2168_v54, %v4948_v45  ;;  %v2096_v3 = vpop.permute.xlu1 %2095  ;;  %3872 = vmatmul.mubr.msk.f32.vlgmr.msra.gmra.mrb[16].mxu0 %vm1661_vm0, %v1648_v31  ;;  %v5383_v16 = vpop.permute.xlu0 %2523  ;;  %v6348_v8 = vld [vmem:[#allocation51_spill] sm:$0xff] }
 0x2a6   : > { %v2184_v30 = vsel %vm1619_vm12, %v2176_v43, %v4770_v50  ;;  %v2199_v38 = vsel %vm1637_vm14, %v2191_v23, %v2096_v3  ;;  %4012 = vmatpush3.bf16.msra.mxu0 %v4982_v26  ;;  %v6349_v43 = vld [vmem:[#allocation50_spill] sm:$0xff] }
 0x2a7   : > { %3115 = vrot.lane.b32.xlu1 %v5112_v4, %s4169_s10  ;;  %3021 = vrot.lane.b32.xlu0 %v4910_v2, %s4165_s30  ;;  %v2207_v45 = vsel %vm1646_vm15, %v2199_v38, %v5063_v61  ;;  %v2192_v20 = vsel %vm1628_vm13, %v2184_v30, %v4956_v51  ;;  %v2153_v61 = vsel %vm223_vm2, %v4724_v21, %v5305_v55  ;;  %v5425_v55 = vld [vmem:[#allocation2 + $0x61] sm:$0xff] }
 0x2a8   : > { %3901 = vmatprep.mubr.msk.f32.mxu1 %vm1661_vm0, %v2207_v45  ;;  %v2200_v50 = vsel %vm1637_vm14, %v2192_v20, %v5312_v37  ;;  %4014 = vmatprep.subr.bf16.mxu0 %v4997_v48  ;;  %v2161_v37 = vsel %vm1082_vm5, %v2153_v61, %v4950_v24  ;;  %v6350_v38 = vld [vmem:[#allocation47_spill] sm:$0xff]  ;;  %v6352_v61 = vld [vmem:[#allocation52_spill] sm:$0xff] }
 0x2a9   : > { %v5401_v32 = vpop.permute.xlu1 %1503  ;;  %v5403_v39 = vpop.permute.xlu0 %3109  ;;  %v2208_v14 = vsel %vm1646_vm15, %v2200_v50, %v4965_v15 }
 0x2aa   : > { %3902 = vmatmul.mubr.msk.f32.vlgmr.msra.gmra.mrb[16].mxu1 %vm1661_vm0, %v2208_v14  ;;  %4016 = vmatpush3.bf16.msra.mxu0 %v4997_v48  ;;  %v6351_v14 = vld [vmem:[#allocation63_spill] sm:$0xff] }
 0x2ab   : > { %3239 = vrot.lane.b32.xlu1 %v5249_v5, %s4174_s15  ;;  %3145 = vrot.lane.b32.xlu0 %v4853_v41, %s4171_s12  ;;  %v2169_v41 = vsel %vm1601_vm10, %v2161_v37, %v4869_v17  ;;  %v1588_v5 = vsel %vm223_vm2, %v5147_v33, %v5117_v59  ;;  %v1587_v17 = vsel %vm223_vm2, %v5030_v53, %v4944_v18  ;;  %v5461_v18 = vld [vmem:[#allocation2 + $0x52] sm:$0xff] }
 0x2ac   : > { %4018 = vmatprep.subr.bf16.mxu0 %v5022_v35  ;;  %4028 = vmatpush3.bf16.msra.mxu1 %v4982_v26  ;;  %v2428_v26 = vld [vmem:[#allocation2 + $0xe0] sm:$0xff]  ;;  %v2177_v33 = vsel %vm1610_vm11, %v2169_v41, %v5157_v6  ;;  %v1595_v59 = vsel %vm1082_vm5, %v1587_v17, %v5299_v9  ;;  %v6338_v9 = vld [vmem:[#allocation48_spill] sm:$0xff]  ;;  %v6355_v17 = vld [vmem:[#allocation23_spill] sm:$0xff] }
 0x2ad   : > { %v5420_v51 = vpop.permute.xlu1 %1567  ;;  %v5422_v21 = vpop.permute.xlu0 %2587  ;;  %4030 = vmatprep.subr.bf16.mxu1 %v4997_v48  ;;  %v2185_v6 = vsel %vm1619_vm12, %v2177_v33, %v4881_v47 }
 0x2ae   : > { %4020 = vmatpush3.bf16.msra.mxu0 %v5022_v35 }
 0x2af   : > { %2499 = vrot.lane.b32.xlu1 %v4910_v2, %s4168_s7  ;;  %2469 = vrot.lane.b32.xlu0 %v5425_v55, %s4165_s30 }
 0x2b0   : > { %4022 = vmatprep.subr.bf16.mxu0 %v5044_v11  ;;  %4032 = vmatpush3.bf16.msra.mxu1 %v4997_v48 }
 0x2b1   : > { %v1376_v24 = vpop.permute.xlu1 %1375  ;;  %v5439_v15 = vpop.permute.xlu0 %1377  ;;  %4034 = vmatprep.subr.bf16.mxu1 %v5022_v35 }
 0x2b2   : > { %v1596_v2 = vsel %vm1082_vm5, %v1588_v5, %v1376_v24  ;;  %4024 = vmatpush3.bf16.msra.mxu0 %v5044_v11  ;;  %v6353_v5 = vld [vmem:[#allocation43_spill] sm:$0xff] }
 0x2b3   : > { %2623 = vrot.lane.b32.xlu1 %v2428_v26, %s4173_s14  ;;  %2593 = vrot.lane.b32.xlu0 %v5112_v4, %s4171_s12  ;;  %v1605_v48 = vsel %vm1601_vm10, %v1596_v2, %v5086_v46  ;;  %v6354_v26 = vld [vmem:[#allocation42_spill] sm:$0xff] }
 0x2b4   : > { %3929 = vmatprep.subr.mxu0 %v5061_v1  ;;  %4036 = vmatpush3.bf16.msra.mxu1 %v5022_v35  ;;  %v1604_v35 = vsel %vm1601_vm10, %v1595_v59, %v5129_v57  ;;  %v2193_v57 = vsel %vm1628_vm13, %v2185_v6, %v6342_v27  ;;  %v5534_v6 = vld [vmem:[#allocation2 + $0x62] sm:$0xff] }
 0x2b5   : > { %v1910_v52 = vpop.permute.xlu1 %1909  ;;  %v1912_v53 = vpop.permute.xlu0 %1911  ;;  %4038 = vmatprep.subr.bf16.mxu1 %v5044_v11  ;;  %v6360_v27 = vld [vmem:[#allocation58_spill] sm:$0xff] }
 0x2b6   : > { %v2154_v4 = vsel %vm223_vm2, %v4842_v34, %v1910_v52  ;;  %3930 = vmatpush3.msra.mxu0 %v5061_v1  ;;  %v6340_v34 = vld [vmem:[#allocation9_spill] sm:$0xff] }
 0x2b7   : > { %v2162_v46 = vsel %vm1082_vm5, %v2154_v4, %v6338_v9  ;;  %3053 = vrot.lane.b32.xlu1 %v5461_v18, %s4168_s7  ;;  %3023 = vrot.lane.b32.xlu0 %v6339_v42, %s4165_s30  ;;  %v1614_v58 = vsel %vm1610_vm11, %v1605_v48, %v6340_v34  ;;  %v1827_v48 = vld [vmem:[#allocation2 + $0x181] sm:$0xff] }
 0x2b8   : > { %v2170_v47 = vsel %vm1601_vm10, %v2162_v46, %v6341_v62  ;;  %4040 = vmatpush3.bf16.msra.mxu1 %v5044_v11  ;;  %v1613_v11 = vsel %vm1610_vm11, %v1604_v35, %v6345_v44  ;;  %v1623_v40 = vsel %vm1619_vm12, %v1614_v58, %v6346_v25  ;;  %v6356_v35 = vld [vmem:[#allocation65_spill] sm:$0xff]  ;;  %v6357_v46 = vld [vmem:[#allocation27_spill] sm:$0xff] }
 0x2b9   : > { %v2100_v28 = vpop.permute.xlu1 %2099  ;;  %v2178_v10 = vsel %vm1610_vm11, %v2170_v47, %v6343_v0  ;;  %v2102_v13 = vpop.permute.xlu0 %2101  ;;  %3959 = vmatprep.subr.mxu1 %v5061_v1  ;;  %v1622_v3 = vsel %vm1619_vm12, %v1613_v11, %v6349_v43  ;;  %v1632_v50 = vsel %vm1628_vm13, %v1623_v40, %v5401_v32  ;;  %v1589_v32 = vsel %vm223_vm2, %v5103_v63, %v6354_v26  ;;  %v2991_v62 = vld [vmem:[#allocation2 + $0xe1] sm:$0xff] }
 0x2ba   : > { %v2201_v12 = vsel %vm1637_vm14, %v2193_v57, %v2100_v28  ;;  %v2186_v7 = vsel %vm1619_vm12, %v2178_v10, %v6344_v22  ;;  %v1641_v24 = vsel %vm1637_vm14, %v1632_v50, %v6353_v5  ;;  %v1597_v33 = vsel %vm1082_vm5, %v1589_v32, %v5439_v15  ;;  %v6358_v15 = vld [vmem:[#allocation44_spill] sm:$0xff]  ;;  %v6359_v47 = vld [vmem:[#allocation22_spill] sm:$0xff]  ;;  %v6370_v50 = vld [vmem:[#allocation67_spill] sm:$0xff] }
 0x2bb   : > { %v2194_v60 = vsel %vm1628_vm13, %v2186_v7, %v6347_v36  ;;  %3177 = vrot.lane.b32.xlu1 %v5487_v29, %s4173_s14  ;;  %3147 = vrot.lane.b32.xlu0 %v2976_v19, %s4171_s12  ;;  %v2209_v54 = vsel %vm1646_vm15, %v2201_v12, %v6348_v8  ;;  %v1650_v59 = vsel %vm1646_vm15, %v1641_v24, %v5420_v51  ;;  %v6362_v10 = vld [vmem:[#allocation14_spill] sm:$0xff]  ;;  %v6363_v12 = vld [vmem:[#allocation61_spill] sm:$0xff]  ;;  %v6364_v19 = vld [vmem:[#allocation68_spill] sm:$0xff] }
 0x2bc   : > { %v2202_v31 = vsel %vm1637_vm14, %v2194_v60, %v2102_v13  ;;  %3904 = vmatprep.mubr.msk.f32.mxu1 %vm1661_vm0, %v2209_v54  ;;  %3960 = vmatpush3.msra.mxu1 %v5061_v1  ;;  %v2155_v63 = vsel %vm223_vm2, %v1827_v48, %v1912_v53  ;;  %v1606_v9 = vsel %vm1601_vm10, %v1597_v33, %v6356_v35  ;;  %v6365_v60 = vld [vmem:[#allocation57_spill] sm:$0xff]  ;;  %v6372_v24 = vld [vmem:[#allocation64_spill] sm:$0xff] }
 0x2bd   : > { %v1508_v23 = vpop.permute.xlu1 %1507  ;;  %v1502_v30 = vpop.permute.xlu0 %1501  ;;  %v2210_v45 = vsel %vm1646_vm15, %v2202_v31, %v6350_v38  ;;  %v1590_v51 = vsel %vm223_vm2, %v6351_v14, %v5219_v49  ;;  %v1615_v28 = vsel %vm1610_vm11, %v1606_v9, %v6359_v47  ;;  %v6361_v49 = vld [vmem:[#allocation25_spill] sm:$0xff]  ;;  %v6367_v31 = vld [vmem:[#allocation74_spill] sm:$0xff] }
 0x2be   : > { %v1631_v20 = vsel %vm1628_vm13, %v1622_v3, %v1502_v30  ;;  %3905 = vmatmul.mubr.msk.f32.gmra.mrb[18].mxu1 %vm1661_vm0, %v2210_v45  ;;  %v1624_v44 = vsel %vm1619_vm12, %v1615_v28, %v6364_v19  ;;  %v6366_v8 = vld [vmem:[#allocation53_spill] sm:$0xff]  ;;  %v6368_v3 = vld [vmem:[#allocation72_spill] sm:$0xff] }
 0x2bf   : > { %2531 = vrot.lane.b32.xlu1 %v6351_v14, %s4170_s11  ;;  %2501 = vrot.lane.b32.xlu0 %v6339_v42, %s4168_s7  ;;  %v1640_v37 = vsel %vm1637_vm14, %v1631_v20, %v6352_v61  ;;  %v2163_v42 = vsel %vm1082_vm5, %v2155_v63, %v6358_v15  ;;  %v1591_v54 = vsel %vm223_vm2, %v6366_v8, %v6365_v60  ;;  %v6369_v45 = vld [vmem:[#allocation16_spill] sm:$0xff]  ;;  %v1829_v20 = vld [vmem:[#allocation2 + $0x1a1] sm:$0xff]  ;;  %v6376_v35 = vld [vmem:[#allocation69_spill] sm:$0xff] }
 0x2c0   : > { %v2171_v0 = vsel %vm1601_vm10, %v2163_v42, %v6361_v49  ;;  %v6379_v28 = vld [vmem:[#allocation29_spill] sm:$0xff] }
 0x2c1   : > { %v1572_v1 = vpop.permute.xlu1 %1571  ;;  %v1566_v41 = vpop.permute.xlu0 %1565  ;;  %v2179_v30 = vsel %vm1610_vm11, %v2171_v0, %v6368_v3  ;;  %v6382_v0 = vld [vmem:[#allocation30_spill] sm:$0xff]  ;;  %v6387_v60 = vld [vmem:[#allocation89_spill] sm:$0xff] }
 0x2c2   : > { %v1649_v2 = vsel %vm1646_vm15, %v1640_v37, %v1566_v41  ;;  %v6371_v37 = vld [vmem:[#allocation70_spill] sm:$0xff] }
 0x2c3   : > { %2655 = vrot.lane.b32.xlu1 %v5487_v29, %s4172_s13  ;;  %2625 = vrot.lane.b32.xlu0 %v6355_v17, %s4173_s14  ;;  %v6373_v17 = vld [vmem:[#allocation28_spill] sm:$0xff] }
 0x2c4   : > { %3874 = vmatprep.mubr.msk.f32.mxu0 %vm1661_vm0, %v1649_v2  ;;  %v2187_v33 = vsel %vm1619_vm12, %v2179_v30, %v6373_v17  ;;  %v6394_v17 = vld [vmem:[#allocation87_spill] sm:$0xff] }
 0x2c5   : > { %3875 = vmatmul.mubr.msk.f32.gmra.mrb[18].mxu0 %vm1661_vm0, %v1650_v59  ;;  %v2106_v52 = vpop.permute.xlu1 %2105  ;;  %v1382_v4 = vpop.permute.xlu0 %1381  ;;  %v6374_v59 = vld [vmem:[#allocation17_spill] sm:$0xff] }
 0x2c6   : > { %v1599_v38 = vsel %vm1082_vm5, %v1591_v54, %v1382_v4  ;;  %v6375_v4 = vld [vmem:[#allocation79_spill] sm:$0xff] }
 0x2c7   : > { %3085 = vrot.lane.b32.xlu1 %v6357_v46, %s4170_s11  ;;  %3055 = vrot.lane.b32.xlu0 %v5534_v6, %s4168_s7  ;;  %v1608_v63 = vsel %vm1601_vm10, %v1599_v38, %v6375_v4 }
 0x2c9   : > { %v1380_v34 = vpop.permute.xlu1 %1379  ;;  %v1916_v53 = vpop.permute.xlu0 %1915 }
 0x2ca   : > { %v1598_v58 = vsel %vm1082_vm5, %v1590_v51, %v1380_v34  ;;  %v2157_v26 = vsel %vm223_vm2, %v1829_v20, %v1916_v53  ;;  %v6377_v51 = vld [vmem:[#allocation59_spill] sm:$0xff] }
 0x2cb   : > { %v1607_v57 = vsel %vm1601_vm10, %v1598_v58, %v6360_v27  ;;  %3209 = vrot.lane.b32.xlu1 %v2991_v62, %s4172_s13  ;;  %3179 = vrot.lane.b32.xlu0 %v5342_v56, %s4173_s14  ;;  %v2165_v15 = vsel %vm1082_vm5, %v2157_v26, %v6377_v51  ;;  %v6378_v34 = vld [vmem:[#allocation75_spill] sm:$0xff]  ;;  %v1617_v27 = vsel %vm1610_vm11, %v1608_v63, %v6379_v28 }
 0x2cc   : > { %v1616_v13 = vsel %vm1610_vm11, %v1607_v57, %v6362_v10  ;;  %v2195_v53 = vsel %vm1628_vm13, %v2187_v33, %v6378_v34  ;;  %v6380_v57 = vld [vmem:[#allocation60_spill] sm:$0xff]  ;;  %v2173_v10 = vsel %vm1601_vm10, %v2165_v15, %v6382_v0  ;;  %v6402_v0 = vld [vmem:[#allocation55_spill] sm:$0xff] }
 0x2cd   : > { %v1625_v22 = vsel %vm1619_vm12, %v1616_v13, %v6363_v12  ;;  %v1914_v7 = vpop.permute.xlu1 %1913  ;;  %v1506_v11 = vpop.permute.xlu0 %1505  ;;  %v6383_v13 = vld [vmem:[#allocation62_spill] sm:$0xff]  ;;  %v6398_v15 = vld [vmem:[#allocation80_spill] sm:$0xff] }
 0x2ce   : > { %v2156_v25 = vsel %vm223_vm2, %v6357_v46, %v1914_v7  ;;  %v1633_v40 = vsel %vm1628_vm13, %v1624_v44, %v1506_v11  ;;  %v1634_v36 = vsel %vm1628_vm13, %v1625_v22, %v1508_v23  ;;  %v6384_v22 = vld [vmem:[#allocation81_spill] sm:$0xff] }
 0x2cf   : > { %v2164_v43 = vsel %vm1082_vm5, %v2156_v25, %v6367_v31  ;;  %2563 = vrot.lane.b32.xlu1 %v6357_v46, %s4169_s10  ;;  %2533 = vrot.lane.b32.xlu0 %v6366_v8, %s4170_s11  ;;  %v1642_v41 = vsel %vm1637_vm14, %v1633_v40, %v6371_v37  ;;  %v1643_v2 = vsel %vm1637_vm14, %v1634_v36, %v6372_v24  ;;  %v2992_v11 = vld [vmem:[#allocation2 + $0xf1] sm:$0xff]  ;;  %v6388_v8 = vld [vmem:[#allocation71_spill] sm:$0xff] }
 0x2d0   : > { %v2172_v23 = vsel %vm1601_vm10, %v2164_v43, %v6369_v45  ;;  %v1652_v46 = vsel %vm1646_vm15, %v1643_v2, %v1572_v1  ;;  %v6381_v1 = vld [vmem:[#allocation77_spill] sm:$0xff]  ;;  %v1626_v7 = vsel %vm1619_vm12, %v1617_v27, %v6384_v22  ;;  %v6385_v25 = vld [vmem:[#allocation88_spill] sm:$0xff]  ;;  %v1592_v54 = vsel %vm223_vm2, %v6388_v8, %v6387_v60  ;;  %v6389_v43 = vld [vmem:[#allocation83_spill] sm:$0xff] }
 0x2d1   : > { %v2180_v14 = vsel %vm1610_vm11, %v2172_v23, %v6370_v50  ;;  %v1512_v61 = vpop.permute.xlu1 %1511  ;;  %v1570_v5 = vpop.permute.xlu0 %1569  ;;  %v6386_v40 = vld [vmem:[#allocation85_spill] sm:$0xff]  ;;  %v6390_v50 = vld [vmem:[#allocation26_spill] sm:$0xff]  ;;  %v6391_v37 = vld [vmem:[#allocation76_spill] sm:$0xff] }
 0x2d2   : > { %v1651_v32 = vsel %vm1646_vm15, %v1642_v41, %v1570_v5  ;;  %v2188_v48 = vsel %vm1619_vm12, %v2180_v14, %v6374_v59  ;;  %v2181_v36 = vsel %vm1610_vm11, %v2173_v10, %v6386_v40  ;;  %v5637_v23 = vld [vmem:[#allocation2 + $0x71] sm:$0xff]  ;;  %v6392_v5 = vld [vmem:[#allocation18_spill] sm:$0xff] }
 0x2d3   : > { %2687 = vrot.lane.b32.xlu1 %v2991_v62, %s4174_s15  ;;  %2657 = vrot.lane.b32.xlu0 %v5342_v56, %s4172_s13  ;;  %v2196_v9 = vsel %vm1628_vm13, %v2188_v48, %v6376_v35  ;;  %v2189_v14 = vsel %vm1619_vm12, %v2181_v36, %v6390_v50  ;;  %v6393_v2 = vld [vmem:[#allocation78_spill] sm:$0xff]  ;;  %v6395_v48 = vld [vmem:[#allocation32_spill] sm:$0xff] }
 0x2d4   : > { %3877 = vmatprep.mubr.msk.f32.mxu0 %vm1661_vm0, %v1651_v32  ;;  %v2204_v62 = vsel %vm1637_vm14, %v2196_v9, %v2106_v52  ;;  %v2197_v33 = vsel %vm1628_vm13, %v2189_v14, %v6394_v17  ;;  %v6396_v35 = vld [vmem:[#allocation92_spill] sm:$0xff]  ;;  %v5698_v40 = vld [vmem:[#allocation2 + $0x81] sm:$0xff]  ;;  %v6407_v17 = vld [vmem:[#allocation13_spill] sm:$0xff] }
 0x2d5   : > { %3878 = vmatmul.mubr.msk.f32.gmra.mrb[20].mxu0 %vm1661_vm0, %v1652_v46  ;;  %v1576_v42 = vpop.permute.xlu1 %1575  ;;  %v2104_v58 = vpop.permute.xlu0 %2103  ;;  %v2212_v52 = vsel %vm1646_vm15, %v2204_v62, %v6383_v13  ;;  %v6397_v46 = vld [vmem:[#allocation90_spill] sm:$0xff]  ;;  %v4094_v14 = vld [vmem:[#allocation2 + $0xb0] sm:$0xff] }
 0x2d6   : > { %v2203_v47 = vsel %vm1637_vm14, %v2195_v53, %v2104_v58  ;;  %v6399_v53 = vld [vmem:[#allocation20_spill] sm:$0xff]  ;;  %v6400_v62 = vld [vmem:[#allocation82_spill] sm:$0xff] }
 0x2d7   : > { %3117 = vrot.lane.b32.xlu1 %v6380_v57, %s4169_s10  ;;  %3087 = vrot.lane.b32.xlu0 %v1829_v20, %s4170_s11  ;;  %v2211_v49 = vsel %vm1646_vm15, %v2203_v47, %v6381_v1  ;;  %v6401_v1 = vld [vmem:[#allocation24_spill] sm:$0xff]  ;;  %v5706_v60 = vld [vmem:[#allocation2 + $0x100] sm:$0xff] }
 0x2d8   : > { %3907 = vmatprep.mubr.msk.f32.mxu1 %vm1661_vm0, %v2211_v49  ;;  %v2978_v50 = vld [vmem:[#allocation2 + $0x1a2] sm:$0xff] }
 0x2d9   : > { %v2110_v12 = vpop.permute.xlu1 %2109  ;;  %3908 = vmatmul.mubr.msk.f32.gmra.mrb[20].mxu1 %vm1661_vm0, %v2212_v52  ;;  %v1510_v19 = vpop.permute.xlu0 %1509 }
 0x2da   : > { %v1635_v44 = vsel %vm1628_vm13, %v1626_v7, %v1510_v19  ;;  %v6404_v7 = vld [vmem:[#allocation86_spill] sm:$0xff] }
 0x2db   : > { %3241 = vrot.lane.b32.xlu1 %v6385_v25, %s4174_s15  ;;  %3211 = vrot.lane.b32.xlu0 %v2992_v11, %s4172_s13  ;;  %v1644_v3 = vsel %vm1637_vm14, %v1635_v44, %v6389_v43  ;;  %v2977_v44 = vld [vmem:[#allocation2 + $0x192] sm:$0xff]  ;;  %v5716_v43 = vld [vmem:[#allocation2 + $0x121] sm:$0xff] }
 0x2dd   : > { %v1384_v31 = vpop.permute.xlu1 %1383  ;;  %v1574_v30 = vpop.permute.xlu0 %1573 }
 0x2de   : > { %v1600_v38 = vsel %vm1082_vm5, %v1592_v54, %v1384_v31  ;;  %v1653_v45 = vsel %vm1646_vm15, %v1644_v3, %v1574_v30  ;;  %v5714_v31 = vld [vmem:[#allocation2 + $0x72] sm:$0xff] }
 0x2df   : > { %v1609_v41 = vsel %vm1601_vm10, %v1600_v38, %v6391_v37  ;;  %2565 = vrot.lane.b32.xlu1 %v1829_v20, %s4169_s10  ;;  %2471 = vrot.lane.b32.xlu0 %v5637_v23, %s4165_s30  ;;  %v6405_v37 = vld [vmem:[#allocation8_spill] sm:$0xff] }
 0x2e0   : > { %v1618_v24 = vsel %vm1610_vm11, %v1609_v41, %v6392_v5  ;;  %3880 = vmatprep.mubr.msk.f32.mxu0 %vm1661_vm0, %v1653_v45  ;;  %v2707_v41 = vsel %vm223_vm2, %v4094_v14, %v6405_v37 }
 0x2e1   : > { %v1627_v26 = vsel %vm1619_vm12, %v1618_v24, %v6393_v2  ;;  %v1918_v32 = vpop.permute.xlu1 %1917  ;;  %v2108_v59 = vpop.permute.xlu0 %2107  ;;  %v6406_v2 = vld [vmem:[#allocation37_spill] sm:$0xff] }
 0x2e2   : > { %v2158_v4 = vsel %vm223_vm2, %v6395_v48, %v1918_v32  ;;  %v2205_v20 = vsel %vm1637_vm14, %v2197_v33, %v2108_v59  ;;  %v1636_v63 = vsel %vm1628_vm13, %v1627_v26, %v1512_v61  ;;  %v4095_v32 = vld [vmem:[#allocation2 + $0xe0] sm:$0xff] }
 0x2e3   : > { %v2166_v9 = vsel %vm1082_vm5, %v2158_v4, %v6396_v35  ;;  %2689 = vrot.lane.b32.xlu1 %v2992_v11, %s4174_s15  ;;  %2595 = vrot.lane.b32.xlu0 %v6380_v57, %s4171_s12  ;;  %v2213_v51 = vsel %vm1646_vm15, %v2205_v20, %v6397_v46  ;;  %v1645_v34 = vsel %vm1637_vm14, %v1636_v63, %v6398_v15  ;;  %v5675_v57 = vld [vmem:[#allocation2 + $0x111] sm:$0xff] }
 0x2e4   : > { %v2174_v58 = vsel %vm1601_vm10, %v2166_v9, %v6399_v53  ;;  %3910 = vmatprep.mubr.msk.f32.mxu1 %vm1661_vm0, %v2213_v51  ;;  %v1654_v61 = vsel %vm1646_vm15, %v1645_v34, %v1576_v42  ;;  %v6403_v42 = vld [vmem:[#allocation84_spill] sm:$0xff]  ;;  %v2710_v33 = vsel %vm223_vm2, %v4095_v32, %v6407_v17  ;;  %v6417_v32 = vld [vmem:[#allocation93_spill] sm:$0xff] }
 0x2e5   : > { %v2182_v47 = vsel %vm1610_vm11, %v2174_v58, %v6400_v62  ;;  %v2620_v28 = vpop.permute.xlu1 %2619  ;;  %3881 = vmatmul.mubr.msk.f32.gmra.mrb[22].mxu0 %vm1661_vm0, %v1654_v61  ;;  %v5673_v27 = vpop.permute.xlu0 %2589  ;;  %v6408_v20 = vld [vmem:[#allocation40_spill] sm:$0xff]  ;;  %v6410_v61 = vld [vmem:[#allocation11_spill] sm:$0xff] }
 0x2e6   : > { %v2190_v49 = vsel %vm1619_vm12, %v2182_v47, %v6401_v1  ;;  %v5748_v35 = vld [vmem:[#allocation2 + $0x110] sm:$0xff] }
 0x2e7   : > { %3119 = vrot.lane.b32.xlu1 %v6402_v0, %s4169_s10  ;;  %3025 = vrot.lane.b32.xlu0 %v5675_v57, %s4165_s30  ;;  %v2198_v10 = vsel %vm1628_vm13, %v2190_v49, %v6403_v42  ;;  %v6409_v9 = vld [vmem:[#allocation36_spill] sm:$0xff]  ;;  %v5763_v49 = vld [vmem:[#allocation2 + $0x82] sm:$0xff] }
 0x2e8   : > { %v2206_v13 = vsel %vm1637_vm14, %v2198_v10, %v2110_v12  ;;  %v2963_v1 = vld [vmem:[#allocation2 + $0x1b1] sm:$0xff]  ;;  %v6412_v42 = vld [vmem:[#allocation54_spill] sm:$0xff]  ;;  %v6413_v10 = vld [vmem:[#allocation91_spill] sm:$0xff] }
 0x2e9   : > { %v5686_v52 = vpop.permute.xlu1 %3049  ;;  %v3020_v22 = vpop.permute.xlu0 %3019  ;;  %v2214_v19 = vsel %vm1646_vm15, %v2206_v13, %v6404_v7  ;;  %v3263_v13 = vsel %vm223_vm2, %v6413_v10, %v6412_v42 }
 0x2ea   : > { %3911 = vmatmul.mubr.msk.f32.gmra.mrb[22].mxu1 %vm1661_vm0, %v2214_v19  ;;  %v3264_v3 = vsel %vm223_vm2, %v5487_v29, %v3020_v22  ;;  %v2715_v29 = vsel %vm1082_vm5, %v2707_v41, %v6406_v2  ;;  %v3271_v22 = vsel %vm1082_vm5, %v3263_v13, %v5686_v52  ;;  %v4097_v52 = vld [vmem:[#allocation2 + $0xc0] sm:$0xff]  ;;  %v6416_v2 = vld [vmem:[#allocation33_spill] sm:$0xff] }
 0x2eb   : > { %3243 = vrot.lane.b32.xlu1 %v5461_v18, %s4174_s15  ;;  %3149 = vrot.lane.b32.xlu0 %v2977_v44, %s4171_s12  ;;  %v2723_v26 = vsel %vm1601_vm10, %v2715_v29, %v5383_v16 }
 0x2ec   : > { %v2731_v63 = vsel %vm1610_vm11, %v2723_v26, %v6408_v20 }
 0x2ed   : > { %v5694_v11 = vpop.permute.xlu1 %3173  ;;  %v5696_v25 = vpop.permute.xlu0 %3143  ;;  %v2739_v51 = vsel %vm1619_vm12, %v2731_v63, %v5422_v21  ;;  %v6411_v21 = vld [vmem:[#allocation39_spill] sm:$0xff] }
 0x2ee   : > { %v2747_v15 = vsel %vm1628_vm13, %v2739_v51, %v2620_v28 }
 0x2ef   : > { %2503 = vrot.lane.b32.xlu1 %v5675_v57, %s4168_s7  ;;  %2473 = vrot.lane.b32.xlu0 %v5698_v40, %s4165_s30 }
 0x2f1   : > { %v5704_v12 = vpop.permute.xlu1 %2527  ;;  %v2498_v36 = vpop.permute.xlu0 %2497 }
 0x2f2   : > { %v2718_v59 = vsel %vm1082_vm5, %v2710_v33, %v2498_v36 }
 0x2f3   : > { %2627 = vrot.lane.b32.xlu1 %v5706_v60, %s4173_s14  ;;  %2597 = vrot.lane.b32.xlu0 %v6402_v0, %s4171_s12 }
 0x2f5   : > { %v2652_v18 = vpop.permute.xlu1 %2651  ;;  %v5712_v54 = vpop.permute.xlu0 %2621 }
 0x2f6   : > { %v2755_v34 = vsel %vm1637_vm14, %v2747_v15, %v2652_v18 }
 0x2f7   : > { %3057 = vrot.lane.b32.xlu1 %v5714_v31, %s4168_s7  ;;  %3027 = vrot.lane.b32.xlu0 %v5716_v43, %s4165_s30 }
 0x2f9   : > { %v3082_v30 = vpop.permute.xlu1 %3081  ;;  %v3052_v38 = vpop.permute.xlu0 %3051 }
 0x2fa   : > { %v3272_v45 = vsel %vm1082_vm5, %v3264_v3, %v3052_v38  ;;  %v3279_v7 = vsel %vm1601_vm10, %v3271_v22, %v3082_v30  ;;  %v2993_v3 = vld [vmem:[#allocation2 + $0x101] sm:$0xff] }
 0x2fb   : > { %3181 = vrot.lane.b32.xlu1 %v5425_v55, %s4173_s14  ;;  %3151 = vrot.lane.b32.xlu0 %v2978_v50, %s4171_s12  ;;  %v6414_v38 = vld [vmem:[#allocation38_spill] sm:$0xff] }
 0x2fc   : > { %v6415_v30 = vld [vmem:[#allocation6_spill] sm:$0xff] }
 0x2fd   : > { %v3206_v5 = vpop.permute.xlu1 %3205  ;;  %v5730_v24 = vpop.permute.xlu0 %3175  ;;  %v2708_v14 = vsel %vm223_vm2, %v4097_v52, %v6415_v30  ;;  %v2979_v30 = vld [vmem:[#allocation2 + $0x1b2] sm:$0xff] }
 0x2fe   : > { %v2716_v29 = vsel %vm1082_vm5, %v2708_v14, %v6416_v2 }
 0x2ff   : > { %2535 = vrot.lane.b32.xlu1 %v6388_v8, %s4170_s11  ;;  %2505 = vrot.lane.b32.xlu0 %v5716_v43, %s4168_s7  ;;  %v4096_v8 = vld [vmem:[#allocation2 + $0x11] sm:$0xff]  ;;  %v2724_v17 = vsel %vm1601_vm10, %v2716_v29, %v6417_v32 }
 0x300   : > { %v3261_v46 = vsel %vm223_vm2, %v4096_v8, %v6409_v9  ;;  %v4098_v9 = vld [vmem:[#allocation2 + $0x21] sm:$0xff] }
 0x301   : > { %v5743_v48 = vpop.permute.xlu1 %2559  ;;  %v2530_v4 = vpop.permute.xlu0 %2529  ;;  %v3269_v62 = vsel %vm1082_vm5, %v3261_v46, %v6410_v61  ;;  %v6420_v46 = vld [vmem:[#allocation31_spill] sm:$0xff]  ;;  %v6421_v61 = vld [vmem:[#allocation73_spill] sm:$0xff] }
 0x302   : > { %v2726_v16 = vsel %vm1601_vm10, %v2718_v59, %v2530_v4  ;;  %v3277_v0 = vsel %vm1601_vm10, %v3269_v62, %v6411_v21  ;;  %v3262_v51 = vsel %vm223_vm2, %v4098_v9, %v6420_v46  ;;  %v6422_v62 = vld [vmem:[#allocation7_spill] sm:$0xff]  ;;  %v2996_v46 = vld [vmem:[#allocation2 + $0x131] sm:$0xff] }
 0x303   : > { %2659 = vrot.lane.b32.xlu1 %v5425_v55, %s4172_s13  ;;  %2629 = vrot.lane.b32.xlu0 %v5748_v35, %s4173_s14  ;;  %v3285_v28 = vsel %vm1610_vm11, %v3277_v0, %v5403_v39  ;;  %v6424_v0 = vld [vmem:[#allocation94_spill] sm:$0xff] }
 0x304   : > { %v3293_v50 = vsel %vm1619_vm12, %v3285_v28, %v6414_v38 }
 0x305   : > { %v2684_v53 = vpop.permute.xlu1 %2683  ;;  %v2654_v58 = vpop.permute.xlu0 %2653  ;;  %v3301_v39 = vsel %vm1628_vm13, %v3293_v50, %v5694_v11  ;;  %v6418_v11 = vld [vmem:[#allocation66_spill] sm:$0xff] }
 0x306   : > { %v2763_v47 = vsel %vm1646_vm15, %v2755_v34, %v2684_v53  ;;  %v3309_v37 = vsel %vm1637_vm14, %v3301_v39, %v3206_v5  ;;  %v6419_v5 = vld [vmem:[#allocation35_spill] sm:$0xff] }
 0x307   : > { %3089 = vrot.lane.b32.xlu1 %v2963_v1, %s4170_s11  ;;  %3059 = vrot.lane.b32.xlu0 %v5763_v49, %s4168_s7  ;;  %v2732_v4 = vsel %vm1610_vm11, %v2724_v17, %v6419_v5  ;;  %v2972_v50 = vld [vmem:[#allocation2 + $0x261] sm:$0xff]  ;;  %s215_s7 = sand.u32 1, %s4154_s19  }
 0x308   : > { %3931 = vmatprep.mubr.msk.f32.mxu0 %vm1661_vm0, %v2763_v47  ;;  %v2740_v63 = vsel %vm1619_vm12, %v2732_v4, %v5673_v27  ;;  %v2964_v27 = vld [vmem:[#allocation2 + $0x1c1] sm:$0xff]  ;;  %s6178_s26 = scalar_lea.sflag [#allocation4], %s215_s7 }
 0x309   : > { %v3114_v19 = vpop.permute.xlu1 %3113  ;;  %v3084_v44 = vpop.permute.xlu0 %3083  ;;  %v2748_v8 = vsel %vm1628_vm13, %v2740_v63, %v5712_v54  ;;  %v3270_v54 = vsel %vm1082_vm5, %v3262_v51, %v6422_v62  ;;  %v6423_v47 = vld [vmem:[#allocation34_spill] sm:$0xff]  ;;  %v3004_v62 = vld [vmem:[#allocation2 + $0x92] sm:$0xff] }
 0x30a   : > { %v5780_v36 = vsel %vm1610_vm11, %v3279_v7, %v3114_v19  ;;  %v3280_v18 = vsel %vm1601_vm10, %v3272_v45, %v3084_v44  ;;  %v2756_v15 = vsel %vm1637_vm14, %v2748_v8, %v2654_v58 }
 0x30b   : > { %3213 = vrot.lane.b32.xlu1 %v2993_v3, %s4172_s13  ;;  %3183 = vrot.lane.b32.xlu0 %v5637_v23, %s4173_s14 }
 0x30d   : > { %v3238_v41 = vpop.permute.xlu1 %3237  ;;  %v3208_v45 = vpop.permute.xlu0 %3207 }
 0x30e   : > { %v3317_v26 = vsel %vm1646_vm15, %v3309_v37, %v3238_v41 }
 0x30f   : > { %2567 = vrot.lane.b32.xlu1 %v2963_v1, %s4169_s10  ;;  %2537 = vrot.lane.b32.xlu0 %v6418_v11, %s4170_s11  ;;  %v3278_v1 = vsel %vm1601_vm10, %v3270_v54, %v6423_v47  ;;  %v2988_v11 = vld [vmem:[#allocation2 + $0x91] sm:$0xff] }
 0x310   : > { %3961 = vmatprep.mubr.msk.f32.mxu1 %vm1661_vm0, %v3317_v26  ;;  %v3286_v42 = vsel %vm1610_vm11, %v3278_v1, %v6424_v0 }
 0x311   : > { %v2562_v33 = vpop.permute.xlu1 %2561  ;;  %v2468_v59 = vpop.permute.xlu0 %2467  ;;  %v3294_v13 = vsel %vm1619_vm12, %v3286_v42, %v5696_v25  ;;  %v2381_v25 = vld [vmem:[#allocation2 + $0xf0] sm:$0xff] }
 0x312   : > { %v5805_v20 = vsel %vm1610_vm11, %v2726_v16, %v2562_v33  ;;  %v3302_v28 = vsel %vm1628_vm13, %v3294_v13, %v5730_v24 }
 0x313   : > { %2691 = vrot.lane.b32.xlu1 %v2993_v3, %s4174_s15  ;;  %2661 = vrot.lane.b32.xlu0 %v5637_v23, %s4172_s13  ;;  %v3310_v22 = vsel %vm1637_vm14, %v3302_v28, %v3208_v45  ;;  %v5864_v45 = vld [vmem:[#allocation2 + $0x120] sm:$0xff] }
 0x315   : > { %v2686_v34 = vpop.permute.xlu1 %2685  ;;  %v5817_v16 = vpop.permute.xlu0 %2591 }
 0x316   : > { %v2764_v53 = vsel %vm1646_vm15, %v2756_v15, %v2686_v34  ;;  %v4099_v34 = vld [vmem:[#allocation2 + $0xd0] sm:$0xff] }
 0x317   : > { %3121 = vrot.lane.b32.xlu1 %v6421_v61, %s4169_s10  ;;  %3091 = vrot.lane.b32.xlu0 %v2964_v27, %s4170_s11 }
 0x318   : > { %3932 = vmatmul.mubr.msk.f32.vlgmr.msra.gmra.mrb[24].mxu0 %vm1661_vm0, %v2764_v53  ;;  %v6425_v53 = vld [vmem:[#allocation19_spill] sm:$0xff] }
 0x319   : > { %v3116_v58 = vpop.permute.xlu1 %3115  ;;  %v3022_v21 = vpop.permute.xlu0 %3021 }
 0x31a   : > { %v5831_v10 = vsel %vm1610_vm11, %v3280_v18, %v3116_v58  ;;  %v3265_v14 = vsel %vm223_vm2, %v5342_v56, %v3022_v21  ;;  %v2433_v56 = vld [vmem:[#allocation2 + $0x130] sm:$0xff] }
 0x31b   : > { %3245 = vrot.lane.b32.xlu1 %v5534_v6, %s4174_s15  ;;  %3215 = vrot.lane.b32.xlu0 %v5675_v57, %s4172_s13  ;;  %v2711_v6 = vsel %vm223_vm2, %v2381_v25, %v2468_v59 }
 0x31d   : > { %v3240_v7 = vpop.permute.xlu1 %3239  ;;  %v5842_v19 = vpop.permute.xlu0 %3145 }
 0x31e   : > { %v3318_v44 = vsel %vm1646_vm15, %v3310_v22, %v3240_v7 }
 0x31f   : > { %2599 = vrot.lane.b32.xlu1 %v6421_v61, %s4171_s12  ;;  %2569 = vrot.lane.b32.xlu0 %v2964_v27, %s4169_s10  ;;  %v2709_v27 = vsel %vm223_vm2, %v4099_v34, %v6425_v53 }
 0x320   : > { %3962 = vmatmul.mubr.msk.f32.vlgmr.msra.gmra.mrb[24].mxu1 %vm1661_vm0, %v3318_v44  ;;  %v3295_v44 = vsel %vm1619_vm12, %v5780_v36, %v5842_v19 }
 0x321   : > { %v2500_v18 = vpop.permute.xlu1 %2499  ;;  %v2470_v3 = vpop.permute.xlu0 %2469 }
 0x322   : > { %v2719_v24 = vsel %vm1082_vm5, %v2711_v6, %v2500_v18  ;;  %v2712_v38 = vsel %vm223_vm2, %v5706_v60, %v2470_v3 }
 0x323   : > { %3123 = vrot.lane.b32.xlu1 %v2972_v50, %s4169_s10  ;;  %2693 = vrot.lane.b32.xlu0 %v5675_v57, %s4174_s15 }
 0x325   : > { %v2624_v39 = vpop.permute.xlu1 %2623  ;;  %v5856_v52 = vpop.permute.xlu0 %2593 }
 0x327   : > { %3247 = vrot.lane.b32.xlu1 %v5714_v31, %s4174_s15  ;;  %3153 = vrot.lane.b32.xlu0 %v2979_v30, %s4171_s12  ;;  %v2980_v31 = vld [vmem:[#allocation2 + $0x1c2] sm:$0xff]  ;;  %v2742_v30 = vsel %vm1619_vm12, %v5805_v20, %v5856_v52 }
 0x329   : > { %v3054_v37 = vpop.permute.xlu1 %3053  ;;  %v3024_v60 = vpop.permute.xlu0 %3023 }
 0x32a   : > { %v3273_v41 = vsel %vm1082_vm5, %v3265_v14, %v3054_v37  ;;  %v3266_v5 = vsel %vm223_vm2, %v5425_v55, %v3024_v60  ;;  %v6426_v55 = vld [vmem:[#allocation56_spill] sm:$0xff] }
 0x32b   : > { %2631 = vrot.lane.b32.xlu1 %v5864_v45, %s4173_s14  ;;  %2601 = vrot.lane.b32.xlu0 %v2972_v50, %s4171_s12  ;;  %v2717_v61 = vsel %vm1082_vm5, %v2709_v27, %v6426_v55 }
 0x32d   : > { %v3178_v57 = vpop.permute.xlu1 %3177  ;;  %v5869_v2 = vpop.permute.xlu0 %3147 }
 0x32e   : > { %v3303_v25 = vsel %vm1628_vm13, %v3295_v44, %v3178_v57 }
 0x32f   : > { %3185 = vrot.lane.b32.xlu1 %v5698_v40, %s4173_s14  ;;  %3155 = vrot.lane.b32.xlu0 %v2980_v31, %s4171_s12  ;;  %v3296_v31 = vsel %vm1619_vm12, %v5831_v10, %v5869_v2  ;;  %s3567_s12 = sshll.u32 %s215_s7, 8 }
 0x331   : > { %v2532_v29 = vpop.permute.xlu1 %2531  ;;  %v2502_v26 = vpop.permute.xlu0 %2501 }
 0x332   : > { %v2727_v32 = vsel %vm1601_vm10, %v2719_v24, %v2532_v29  ;;  %v2720_v17 = vsel %vm1082_vm5, %v2712_v38, %v2502_v26 }
 0x333   : > { %2663 = vrot.lane.b32.xlu1 %v5698_v40, %s4172_s13  ;;  %2633 = vrot.lane.b32.xlu0 %v2433_v56, %s4173_s14 }
 0x335   : > { %v2656_v33 = vpop.permute.xlu1 %2655  ;;  %v2626_v59 = vpop.permute.xlu0 %2625 }
 0x336   : > { %v2750_v36 = vsel %vm1628_vm13, %v2742_v30, %v2626_v59 }
 0x337   : > { %3217 = vrot.lane.b32.xlu1 %v5716_v43, %s4172_s13  ;;  %3187 = vrot.lane.b32.xlu0 %v2988_v11, %s4173_s14  ;;  %s3689_s14 = sshll.u32 %s4228_s22, 12 }
 0x338   : > { %s6164_s22 = scalar_lea.hbm %s6225_s5, %s3689_s14 }
 0x339   : > { %v3086_v4 = vpop.permute.xlu1 %3085  ;;  %v3056_v63 = vpop.permute.xlu0 %3055 }
 0x33a   : > { %v3281_v8 = vsel %vm1601_vm10, %v3273_v41, %v3086_v4  ;;  %v3274_v9 = vsel %vm1082_vm5, %v3266_v5, %v3056_v63 }
 0x33b   : > { %2695 = vrot.lane.b32.xlu1 %v5716_v43, %s4174_s15  ;;  %2665 = vrot.lane.b32.xlu0 %v2988_v11, %s4172_s13  ;;  %v2725_v43 = vsel %vm1601_vm10, %v2717_v61, %v5704_v12 }
 0x33c   : > { %v2733_v1 = vsel %vm1610_vm11, %v2725_v43, %v5743_v48 }
 0x33d   : > { %v3210_v51 = vpop.permute.xlu1 %3209  ;;  %v3180_v15 = vpop.permute.xlu0 %3179 }
 0x33e   : > { %v3311_v6 = vsel %vm1637_vm14, %v3303_v25, %v3210_v51  ;;  %v3304_v56 = vsel %vm1628_vm13, %v3296_v31, %v3180_v15 }
 0x33f   : > { %3249 = vrot.lane.b32.xlu1 %v5763_v49, %s4174_s15  ;;  %3219 = vrot.lane.b32.xlu0 %v2996_v46, %s4172_s13  ;;  %v2741_v49 = vsel %vm1619_vm12, %v2733_v1, %v5817_v16  ;;  %s5984_s13 = scalar_lea.vmem [#allocation3], %s3567_s12 }
 0x340   : > { %v2749_v0 = vsel %vm1628_vm13, %v2741_v49, %v2624_v39 }
 0x341   : > { %v2564_v54 = vpop.permute.xlu1 %2563  ;;  %v2534_v47 = vpop.permute.xlu0 %2533  ;;  %v2757_v12 = vsel %vm1637_vm14, %v2749_v0, %v2656_v33 }
 0x342   : > { %v5901_v58 = vsel %vm1610_vm11, %v2727_v32, %v2564_v54  ;;  %v2728_v21 = vsel %vm1601_vm10, %v2720_v17, %v2534_v47 }
 0x343   : > { %3251 = vrot.lane.b32.xlu1 %v3004_v62, %s4174_s15  ;;  %2697 = vrot.lane.b32.xlu0 %v2996_v46, %s4174_s15  ;;  %s3501_s15 = sshll.u32 %s5984_s13, 4  ;;  %s6168_s15 = int_to_ptr.vmem [resolvable:$true] %s3501_s15 }
 0x344   : > { %s4100_s6 = scalar_lea.vmem %s6168_s15, 4096  ;;  %p4107_p0 = scmp.lt.s32.totalorder %s6168_s15, %s4105_s9 }
 0x345   : > { %v2688_v42 = vpop.permute.xlu1 %2687  ;;  %v2658_v13 = vpop.permute.xlu0 %2657  ;;  %p4101_p11 = scmp.ne.s32.totalorder %s6168_s15, %s4100_s6  ;;  %p4108_p1 = scmp.lt.s32.totalorder %s4106_s16, %s4100_s6 }
 0x346   : > { %v2765_v48 = vsel %vm1646_vm15, %v2757_v12, %v2688_v42  ;;  %v2758_v19 = vsel %vm1637_vm14, %v2750_v36, %v2658_v13 }
 0x347   : > { %3934 = vmatprep.mubr.msk.f32.mxu0 %vm1661_vm0, %v2765_v48  ;;  %p4102_p12 = pnand %p4101_p11, %p4245_p5  ;;  %p4109_p2 = por %p4108_p1, %p4107_p0 }
 0x349   : > { %v3118_v28 = vpop.permute.xlu1 %3117  ;;  %v3088_v22 = vpop.permute.xlu0 %3087  ;;  %p4103_p13 = pneg %p4102_p12 }
 0x34a   : > { %v5913_v7 = vsel %vm1610_vm11, %v3281_v8, %v3118_v28  ;;  %v5916_v16 = vsel %vm1601_vm10, %v3274_v9, %v3088_v22 }
 0x34b   : > { %p4110_p3 = pnand %p4109_p2, %p4103_p13 }
 0x34d   : > { %v3242_v18 = vpop.permute.xlu1 %3241  ;;  %v3212_v3 = vpop.permute.xlu0 %3211 }
 0x34e   : > { %v3319_v24 = vsel %vm1646_vm15, %v3311_v6, %v3242_v18  ;;  %v3312_v20 = vsel %vm1637_vm14, %v3304_v56, %v3212_v3 }
 0x34f   : > { %3964 = vmatprep.mubr.msk.f32.mxu1 %vm1661_vm0, %v3319_v24 }
 0x351   : > { %v2566_v38 = vpop.permute.xlu1 %2565  ;;  %v2472_v50 = vpop.permute.xlu0 %2471 }
 0x352   : > { %v5926_v39 = vsel %vm1610_vm11, %v2728_v21, %v2566_v38  ;;  %v2713_v32 = vsel %vm223_vm2, %v5748_v35, %v2472_v50 }
 0x355   : > { %v2690_v14 = vpop.permute.xlu1 %2689  ;;  %v2596_v37 = vpop.permute.xlu0 %2595 }
 0x356   : > { %v2766_v60 = vsel %vm1646_vm15, %v2758_v19, %v2690_v14  ;;  %v2743_v6 = vsel %vm1619_vm12, %v5901_v58, %v2596_v37 }
 0x357   : > { %3935 = vmatmul.mubr.msk.f32.gmra.mrb[26].mxu0 %vm1661_vm0, %v2766_v60 }
 0x359   : > { %v5935_v41 = vpop.permute.xlu1 %3119  ;;  %v3026_v57 = vpop.permute.xlu0 %3025 }
 0x35a   : > { %v3267_v5 = vsel %vm223_vm2, %v5637_v23, %v3026_v57  ;;  %v5974_v23 = vld [vmem:[%s6224_s4] ss:$0 sm:$0xff] }
 0x35d   : > { %v3244_v52 = vpop.permute.xlu1 %3243  ;;  %v5942_v29 = vpop.permute.xlu0 %3149 }
 0x35e   : > { %v3320_v26 = vsel %vm1646_vm15, %v3312_v20, %v3244_v52  ;;  %v3297_v58 = vsel %vm1619_vm12, %v5913_v7, %v5942_v29 }
 0x35f   : > { %3965 = vmatmul.mubr.msk.f32.gmra.mrb[26].mxu1 %vm1661_vm0, %v3320_v26 }
 0x361   : > { %v2504_v17 = vpop.permute.xlu1 %2503  ;;  %v2474_v11 = vpop.permute.xlu0 %2473 }
 0x362   : > { %v5949_v33 = vsel %vm1082_vm5, %v2713_v32, %v2504_v17  ;;  %v5953_v10 = vsel %vm223_vm2, %v5864_v45, %v2474_v11 }
 0x365   : > { %v2628_v2 = vpop.permute.xlu1 %2627  ;;  %v5955_v59 = vpop.permute.xlu0 %2597 }
 0x366   : > { %v2751_v3 = vsel %vm1628_vm13, %v2743_v6, %v2628_v2  ;;  %v2744_v29 = vsel %vm1619_vm12, %v5926_v39, %v5955_v59 }
 0x369   : > { %v3058_v4 = vpop.permute.xlu1 %3057  ;;  %v5959_v63 = vpop.permute.xlu0 %3027 }
 0x36a   : > { %v5962_v35 = vsel %vm1082_vm5, %v3267_v5, %v3058_v4  ;;  %v3290_v4 = vsel %vm1610_vm11, %v5916_v16, %v5935_v41 }
 0x36d   : > { %v3182_v8 = vpop.permute.xlu1 %3181  ;;  %v5964_v9 = vpop.permute.xlu0 %3151 }
 0x36e   : > { %v3305_v14 = vsel %vm1628_vm13, %v3297_v58, %v3182_v8  ;;  %v3298_v39 = vsel %vm1619_vm12, %v3290_v4, %v5964_v9 }
 0x371   : > { %v5966_v46 = vpop.permute.xlu1 %2535  ;;  %v5968_v51 = vpop.permute.xlu0 %2505 }
 0x375   : > { %v2660_v45 = vpop.permute.xlu1 %2659  ;;  %v2630_v15 = vpop.permute.xlu0 %2629 }
 0x376   : > { %v2759_v24 = vsel %vm1637_vm14, %v2751_v3, %v2660_v45  ;;  %v2752_v11 = vsel %vm1628_vm13, %v2744_v29, %v2630_v15 }
 0x378   : > { %v3873_v34 = vpop.f32.mrb[16].mxu0 }
 0x379   : > { %v1758_v53 = vadd.f32 %v3873_v34, %v5974_v23  ;;  %v5979_v27 = vpop.permute.xlu1 %3089  ;;  %v1752_v55 = vpop.f32.mrb[17].mxu0 }
 0x37a   : > { %v1753_v61 = vadd.f32 %v5974_v23, %v1752_v55  ;;  %v5982_v62 = vpop.permute.xlu0 %3059 }
 0x37b   : > { %vm1792_vm1 = vcmp.gt.f32.partialorder %v1758_v53, 0.0  ;;  %v1800_v43 = vmul.f32 0.2, %v1758_v53 }
 0x37c   : > { %vm1791_vm3 = vcmp.gt.f32.partialorder %v1753_v61, 0.0  ;;  %v1799_v54 = vmul.f32 0.2, %v1753_v61 }
 0x37d   : > { %v1808_v47 = vsel %vm1792_vm1, %v1758_v53, %v1800_v43  ;;  %v3214_v1 = vpop.permute.xlu1 %3213  ;;  %v3903_v21 = vpop.f32.mrb[16].mxu1 }
 0x37e   : > { %1816 = vst.msk [vmem:[%s5984_s13 + $0x8] sm:$0xff] %vm223_vm2, %v1808_v47  ;;  %v1807_v49 = vsel %vm1791_vm3, %v1753_v61, %v1799_v54  ;;  %v2311_v0 = vadd.f32 %v3903_v21, %v5974_v23  ;;  %v3184_v12 = vpop.permute.xlu0 %3183  ;;  %v2305_v42 = vpop.f32.mrb[17].mxu1  ;;  %v3313_v37 = vsel %vm1637_vm14, %v3305_v14, %v3214_v1 }
 0x37f   : > { %1815 = vst.msk [vmem:[%s5984_s13] sm:$0xff] %vm223_vm2, %v1807_v49  ;;  %v2306_v13 = vadd.f32 %v5974_v23, %v2305_v42  ;;  %v3306_v53 = vsel %vm1628_vm13, %v3298_v39, %v3184_v12 }
 0x380   : > { %vm2345_vm4 = vcmp.gt.f32.partialorder %v2311_v0, 0.0  ;;  %v2353_v48 = vmul.f32 0.2, %v2311_v0 }
 0x381   : > { %vm2344_vm6 = vcmp.gt.f32.partialorder %v2306_v13, 0.0  ;;  %v2352_v28 = vmul.f32 0.2, %v2306_v13  ;;  %v5992_v22 = vpop.permute.xlu1 %2567 }
 0x382   : > { %v2361_v44 = vsel %vm2345_vm4, %v2311_v0, %v2353_v48  ;;  %v5994_v25 = vpop.permute.xlu0 %2537 }
 0x383   : > { %3645 = vst.msk [vmem:[%s5984_s13 + $0x48] sm:$0xff] %vm223_vm2, %v2361_v44  ;;  %v2360_v18 = vsel %vm2344_vm6, %v2306_v13, %v2352_v28 }
 0x384   : > { %3644 = vst.msk [vmem:[%s5984_s13 + $0x40] sm:$0xff] %vm223_vm2, %v2360_v18  ;;  %v2729_v18 = vsel %vm1601_vm10, %v5949_v33, %v5966_v46  ;;  %v3283_v46 = vsel %vm1601_vm10, %v5962_v35, %v5979_v27  ;;  %v3268_v35 = vsel %vm223_vm2, %v5698_v40, %v5959_v63  ;;  %v2722_v40 = vsel %vm1082_vm5, %v5953_v10, %v5968_v51 }
 0x385   : > { %v2692_v38 = vpop.permute.xlu1 %2691 }
 0x386   : > { %v2767_v50 = vsel %vm1646_vm15, %v2759_v24, %v2692_v38  ;;  %v2662_v30 = vpop.permute.xlu0 %2661 }
 0x387   : > { %3937 = vmatprep.mubr.msk.f32.mxu0 %vm1661_vm0, %v2767_v50  ;;  %v2760_v8 = vsel %vm1637_vm14, %v2752_v11, %v2662_v30  ;;  %v2737_v50 = vsel %vm1610_vm11, %v2729_v18, %v5992_v22 }
 0x389   : > { %v6006_v36 = vpop.permute.xlu1 %3121 }
 0x38a   : > { %v6008_v19 = vpop.permute.xlu0 %3091 }
 0x38d   : > { %v3246_v60 = vpop.permute.xlu1 %3245 }
 0x38e   : > { %v3321_v57 = vsel %vm1646_vm15, %v3313_v37, %v3246_v60  ;;  %v3216_v31 = vpop.permute.xlu0 %3215 }
 0x38f   : > { %3967 = vmatprep.mubr.msk.f32.mxu1 %vm1661_vm0, %v3321_v57  ;;  %v3314_v16 = vsel %vm1637_vm14, %v3306_v53, %v3216_v31 }
 0x391   : > { %v2600_v56 = vpop.permute.xlu1 %2599  ;;  %v3906_v20 = vpop.f32.mrb[18].mxu1 }
 0x392   : > { %v2321_v52 = vadd.f32 %v3906_v20, %v5974_v23  ;;  %v6018_v26 = vpop.permute.xlu0 %2569  ;;  %v2315_v32 = vpop.f32.mrb[19].mxu1  ;;  %v2745_v14 = vsel %vm1619_vm12, %v2737_v50, %v2600_v56  ;;  %v3291_v56 = vsel %vm1610_vm11, %v3283_v46, %v6006_v36  ;;  %v3276_v36 = vsel %vm1082_vm5, %v3268_v35, %v5982_v62 }
 0x393   : > { %v2316_v7 = vadd.f32 %v5974_v23, %v2315_v32  ;;  %v3284_v63 = vsel %vm1601_vm10, %v3276_v36, %v6008_v19 }
 0x394   : > { %vm2347_vm7 = vcmp.gt.f32.partialorder %v2321_v52, 0.0  ;;  %v2355_v17 = vmul.f32 0.2, %v2321_v52 }
 0x395   : > { %vm2346_vm8 = vcmp.gt.f32.partialorder %v2316_v7, 0.0  ;;  %v2354_v2 = vmul.f32 0.2, %v2316_v7  ;;  %v6025_v5 = vpop.permute.xlu1 %3123 }
 0x396   : > { %v2363_v45 = vsel %vm2347_vm7, %v2321_v52, %v2355_v17  ;;  %v2694_v34 = vpop.permute.xlu0 %2693  ;;  %v3292_v62 = vsel %vm1610_vm11, %v3284_v63, %v6025_v5 }
 0x397   : > { %3647 = vst.msk [vmem:[%s5984_s13 + $0x58] sm:$0xff] %vm223_vm2, %v2363_v45  ;;  %v2362_v59 = vsel %vm2346_vm8, %v2316_v7, %v2354_v2  ;;  %v2768_v15 = vsel %vm1646_vm15, %v2760_v8, %v2694_v34 }
 0x398   : > { %3646 = vst.msk [vmem:[%s5984_s13 + $0x50] sm:$0xff] %vm223_vm2, %v2362_v59  ;;  %v3876_v55 = vpop.f32.mrb[18].mxu0  ;;  %3938 = vmatmul.mubr.msk.f32.gmra.mrb[28].mxu0 %vm1661_vm0, %v2768_v15  ;;  %v2730_v59 = vsel %vm1601_vm10, %v2722_v40, %v5994_v25 }
 0x399   : > { %v1768_v41 = vadd.f32 %v3876_v55, %v5974_v23  ;;  %v1762_v61 = vpop.f32.mrb[19].mxu0  ;;  %v3248_v9 = vpop.permute.xlu1 %3247  ;;  %v2738_v10 = vsel %vm1610_vm11, %v2730_v59, %v6018_v26 }
 0x39a   : > { %v1763_v43 = vadd.f32 %v5974_v23, %v1762_v61  ;;  %v3322_v54 = vsel %vm1646_vm15, %v3314_v16, %v3248_v9  ;;  %v3154_v47 = vpop.permute.xlu0 %3153 }
 0x39b   : > { %vm1794_vm9 = vcmp.gt.f32.partialorder %v1768_v41, 0.0  ;;  %v1802_v1 = vmul.f32 0.2, %v1768_v41  ;;  %3968 = vmatmul.mubr.msk.f32.gmra.mrb[28].mxu1 %vm1661_vm0, %v3322_v54  ;;  %v3299_v27 = vsel %vm1619_vm12, %v3291_v56, %v3154_v47 }
 0x39c   : > { %vm1793_vm1 = vcmp.gt.f32.partialorder %v1763_v43, 0.0  ;;  %v1801_v21 = vmul.f32 0.2, %v1763_v43 }
 0x39d   : > { %v1810_v49 = vsel %vm1794_vm9, %v1768_v41, %v1802_v1  ;;  %v2632_v0 = vpop.permute.xlu1 %2631 }
 0x39e   : > { %1818 = vst.msk [vmem:[%s5984_s13 + $0x18] sm:$0xff] %vm223_vm2, %v1810_v49  ;;  %v1809_v12 = vsel %vm1793_vm1, %v1763_v43, %v1801_v21  ;;  %v2602_v42 = vpop.permute.xlu0 %2601  ;;  %v2753_v60 = vsel %vm1628_vm13, %v2745_v14, %v2632_v0 }
 0x39f   : > { %1817 = vst.msk [vmem:[%s5984_s13 + $0x10] sm:$0xff] %vm223_vm2, %v1809_v12  ;;  %v2746_v25 = vsel %vm1619_vm12, %v2738_v10, %v2602_v42 }
 0x3a1   : > { %v3186_v13 = vpop.permute.xlu1 %3185 }
 0x3a2   : > { %v3156_v48 = vpop.permute.xlu0 %3155  ;;  %v3307_v4 = vsel %vm1628_vm13, %v3299_v27, %v3186_v13 }
 0x3a3   : > { %v3300_v51 = vsel %vm1619_vm12, %v3292_v62, %v3156_v48 }
 0x3a5   : > { %v2664_v28 = vpop.permute.xlu1 %2663 }
 0x3a6   : > { %v2634_v44 = vpop.permute.xlu0 %2633  ;;  %v2761_v22 = vsel %vm1637_vm14, %v2753_v60, %v2664_v28 }
 0x3a7   : > { %v2754_v5 = vsel %vm1628_vm13, %v2746_v25, %v2634_v44 }
 0x3a8   : > { %v3879_v6 = vpop.f32.mrb[20].mxu0 }
 0x3a9   : > { %v1778_v3 = vadd.f32 %v3879_v6, %v5974_v23  ;;  %v1772_v24 = vpop.f32.mrb[21].mxu0  ;;  %v3218_v38 = vpop.permute.xlu1 %3217 }
 0x3aa   : > { %v1773_v30 = vadd.f32 %v5974_v23, %v1772_v24  ;;  %v3188_v58 = vpop.permute.xlu0 %3187  ;;  %v3315_v45 = vsel %vm1637_vm14, %v3307_v4, %v3218_v38 }
 0x3ab   : > { %vm1796_vm3 = vcmp.gt.f32.partialorder %v1778_v3, 0.0  ;;  %v1804_v37 = vmul.f32 0.2, %v1778_v3  ;;  %v3308_v19 = vsel %vm1628_vm13, %v3300_v51, %v3188_v58 }
 0x3ac   : > { %vm1795_vm4 = vcmp.gt.f32.partialorder %v1773_v30, 0.0  ;;  %v1803_v57 = vmul.f32 0.2, %v1773_v30  ;;  %v3909_v33 = vpop.f32.mrb[20].mxu1 }
 0x3ad   : > { %v1812_v31 = vsel %vm1796_vm3, %v1778_v3, %v1804_v37  ;;  %v2331_v20 = vadd.f32 %v3909_v33, %v5974_v23  ;;  %v2696_v52 = vpop.permute.xlu1 %2695  ;;  %v2325_v32 = vpop.f32.mrb[21].mxu1 }
 0x3ae   : > { %1820 = vst.msk [vmem:[%s5984_s13 + $0x28] sm:$0xff] %vm223_vm2, %v1812_v31  ;;  %v1811_v7 = vsel %vm1795_vm4, %v1773_v30, %v1803_v57  ;;  %v2769_v29 = vsel %vm1646_vm15, %v2761_v22, %v2696_v52  ;;  %v2326_v17 = vadd.f32 %v5974_v23, %v2325_v32  ;;  %v2666_v11 = vpop.permute.xlu0 %2665 }
 0x3af   : > { %1819 = vst.msk [vmem:[%s5984_s13 + $0x20] sm:$0xff] %vm223_vm2, %v1811_v7  ;;  %vm2349_vm6 = vcmp.gt.f32.partialorder %v2331_v20, 0.0  ;;  %v2357_v2 = vmul.f32 0.2, %v2331_v20  ;;  %3940 = vmatprep.mubr.msk.f32.mxu0 %vm1661_vm0, %v2769_v29  ;;  %v2762_v61 = vsel %vm1637_vm14, %v2754_v5, %v2666_v11 }
 0x3b0   : > { %vm2348_vm7 = vcmp.gt.f32.partialorder %v2326_v17, 0.0  ;;  %v2356_v8 = vmul.f32 0.2, %v2326_v17 }
 0x3b1   : > { %v2365_v34 = vsel %vm2349_vm6, %v2331_v20, %v2357_v2  ;;  %v3250_v39 = vpop.permute.xlu1 %3249 }
 0x3b2   : > { %3649 = vst.msk [vmem:[%s5984_s13 + $0x68] sm:$0xff] %vm223_vm2, %v2365_v34  ;;  %v2364_v15 = vsel %vm2348_vm7, %v2326_v17, %v2356_v8  ;;  %v3323_v53 = vsel %vm1646_vm15, %v3315_v45, %v3250_v39  ;;  %v3220_v55 = vpop.permute.xlu0 %3219 }
 0x3b3   : > { %3648 = vst.msk [vmem:[%s5984_s13 + $0x60] sm:$0xff] %vm223_vm2, %v2364_v15  ;;  %3970 = vmatprep.mubr.msk.f32.mxu1 %vm1661_vm0, %v3323_v53  ;;  %v3316_v16 = vsel %vm1637_vm14, %v3308_v19, %v3220_v55 }
 0x3b5   : > { %v3252_v41 = vpop.permute.xlu1 %3251 }
 0x3b6   : > { %v3324_v26 = vsel %vm1646_vm15, %v3316_v16, %v3252_v41  ;;  %v2698_v9 = vpop.permute.xlu0 %2697 }
 0x3b7   : > { %v2770_v43 = vsel %vm1646_vm15, %v2762_v61, %v2698_v9  ;;  %3971 = vmatmul.mubr.msk.f32.gmra.mrb[30].mxu1 %vm1661_vm0, %v3324_v26 }
 0x3b8   : > { %3941 = vmatmul.mubr.msk.f32.gmra.mrb[30].mxu0 %vm1661_vm0, %v2770_v43  ;;  %v3882_v54 = vpop.f32.mrb[22].mxu0 }
 0x3b9   : > { %v1788_v47 = vadd.f32 %v3882_v54, %v5974_v23  ;;  %v1782_v1 = vpop.f32.mrb[23].mxu0 }
 0x3ba   : > { %v1783_v21 = vadd.f32 %v5974_v23, %v1782_v1 }
 0x3bb   : > { %vm1798_vm5 = vcmp.gt.f32.partialorder %v1788_v47, 0.0  ;;  %v1806_v49 = vmul.f32 0.2, %v1788_v47 }
 0x3bc   : > { %vm1797_vm10 = vcmp.gt.f32.partialorder %v1783_v21, 0.0  ;;  %v1805_v0 = vmul.f32 0.2, %v1783_v21 }
 0x3bd   : > { %v1814_v12 = vsel %vm1798_vm5, %v1788_v47, %v1806_v49  ;;  %v3912_v42 = vpop.f32.mrb[22].mxu1 }
 0x3be   : > { %1822 = vst.msk [vmem:[%s5984_s13 + $0x38] sm:$0xff] %vm223_vm2, %v1814_v12  ;;  %v1813_v13 = vsel %vm1797_vm10, %v1783_v21, %v1805_v0  ;;  %v2341_v48 = vadd.f32 %v3912_v42, %v5974_v23  ;;  %v2335_v28 = vpop.f32.mrb[23].mxu1 }
 0x3bf   : > { %1821 = vst.msk [vmem:[%s5984_s13 + $0x30] sm:$0xff] %vm223_vm2, %v1813_v13  ;;  %v2336_v44 = vadd.f32 %v5974_v23, %v2335_v28 }
 0x3c0   : > { %vm2351_vm11 = vcmp.gt.f32.partialorder %v2341_v48, 0.0  ;;  %v2359_v6 = vmul.f32 0.2, %v2341_v48 }
 0x3c1   : > { %vm2350_vm12 = vcmp.gt.f32.partialorder %v2336_v44, 0.0  ;;  %v2358_v18 = vmul.f32 0.2, %v2336_v44 }
 0x3c2   : > { %v2367_v3 = vsel %vm2351_vm11, %v2341_v48, %v2359_v6 }
 0x3c3   : > { %3651 = vst.msk [vmem:[%s5984_s13 + $0x78] sm:$0xff] %vm223_vm2, %v2367_v3  ;;  %v2366_v24 = vsel %vm2350_vm12, %v2336_v44, %v2358_v18 }
 0x3c4   : > { %3650 = vst.msk [vmem:[%s5984_s13 + $0x70] sm:$0xff] %vm223_vm2, %v2366_v24 }
 0x3eb   : > { %v3933_v38 = vpop.f32.mrb[24].mxu0 }
 0x3ec   : > { %v2867_v50 = vadd.f32 %v3933_v38, %v5974_v23  ;;  %v2861_v30 = vpop.f32.mrb[25].mxu0 }
 0x3ed   : > { %v2862_v58 = vadd.f32 %v5974_v23, %v2861_v30 }
 0x3ee   : > { %vm2901_vm13 = vcmp.gt.f32.partialorder %v2867_v50, 0.0  ;;  %v2909_v14 = vmul.f32 0.2, %v2867_v50 }
 0x3ef   : > { %vm2900_vm14 = vcmp.gt.f32.partialorder %v2862_v58, 0.0  ;;  %v2908_v37 = vmul.f32 0.2, %v2862_v58 }
 0x3f0   : > { %v2917_v60 = vsel %vm2901_vm13, %v2867_v50, %v2909_v14 }
 0x3f1   : > { %3661 = vst.msk [vmem:[%s5984_s13 + $0x88] sm:$0xff] %vm223_vm2, %v2917_v60  ;;  %v2916_v57 = vsel %vm2900_vm14, %v2862_v58, %v2908_v37 }
 0x3f2   : > { %3660 = vst.msk [vmem:[%s5984_s13 + $0x80] sm:$0xff] %vm223_vm2, %v2916_v57 }
 0x3f3   : > { %v3963_v33 = vpop.f32.mrb[24].mxu1 }
 0x3f4   : > { %v3421_v46 = vadd.f32 %v3963_v33, %v5974_v23  ;;  %v3415_v22 = vpop.f32.mrb[25].mxu1 }
 0x3f5   : > { %v3416_v31 = vadd.f32 %v5974_v23, %v3415_v22 }
 0x3f6   : > { %vm3455_vm15 = vcmp.gt.f32.partialorder %v3421_v46, 0.0  ;;  %v3463_v20 = vmul.f32 0.2, %v3421_v46 }
 0x3f7   : > { %vm3454_vm0 = vcmp.gt.f32.partialorder %v3416_v31, 0.0  ;;  %v3462_v52 = vmul.f32 0.2, %v3416_v31 }
 0x3f8   : > { %v3471_v32 = vsel %vm3455_vm15, %v3421_v46, %v3463_v20 }
 0x3f9   : > { %3677 = vst.msk [vmem:[%s5984_s13 + $0xc8] sm:$0xff] %vm223_vm2, %v3471_v32  ;;  %v3470_v56 = vsel %vm3454_vm0, %v3416_v31, %v3462_v52 }
 0x3fa   : > { %3676 = vst.msk [vmem:[%s5984_s13 + $0xc0] sm:$0xff] %vm223_vm2, %v3470_v56 }
 0x42a   : > { %v3936_v7 = vpop.f32.mrb[26].mxu0 }
 0x42b   : > { %v2877_v29 = vadd.f32 %v3936_v7, %v5974_v23  ;;  %v2871_v17 = vpop.f32.mrb[27].mxu0 }
 0x42c   : > { %v2872_v11 = vadd.f32 %v5974_v23, %v2871_v17 }
 0x42d   : > { %vm2903_vm8 = vcmp.gt.f32.partialorder %v2877_v29, 0.0  ;;  %v2911_v35 = vmul.f32 0.2, %v2877_v29 }
 0x42e   : > { %vm2902_vm9 = vcmp.gt.f32.partialorder %v2872_v11, 0.0  ;;  %v2910_v27 = vmul.f32 0.2, %v2872_v11 }
 0x42f   : > { %v2919_v2 = vsel %vm2903_vm8, %v2877_v29, %v2911_v35 }
 0x430   : > { %3663 = vst.msk [vmem:[%s5984_s13 + $0x98] sm:$0xff] %vm223_vm2, %v2919_v2  ;;  %v2918_v36 = vsel %vm2902_vm9, %v2872_v11, %v2910_v27 }
 0x431   : > { %3662 = vst.msk [vmem:[%s5984_s13 + $0x90] sm:$0xff] %vm223_vm2, %v2918_v36 }
 0x432   : > { %v3966_v4 = vpop.f32.mrb[26].mxu1 }
 0x433   : > { %v3431_v8 = vadd.f32 %v3966_v4, %v5974_v23  ;;  %v3425_v40 = vpop.f32.mrb[27].mxu1 }
 0x434   : > { %v3426_v63 = vadd.f32 %v5974_v23, %v3425_v40 }
 0x435   : > { %vm3457_vm1 = vcmp.gt.f32.partialorder %v3431_v8, 0.0  ;;  %v3465_v45 = vmul.f32 0.2, %v3431_v8 }
 0x436   : > { %vm3456_vm3 = vcmp.gt.f32.partialorder %v3426_v63, 0.0  ;;  %v3464_v34 = vmul.f32 0.2, %v3426_v63 }
 0x437   : > { %v3473_v39 = vsel %vm3457_vm1, %v3431_v8, %v3465_v45 }
 0x438   : > { %3679 = vst.msk [vmem:[%s5984_s13 + $0xd8] sm:$0xff] %vm223_vm2, %v3473_v39  ;;  %v3472_v59 = vsel %vm3456_vm3, %v3426_v63, %v3464_v34 }
 0x439   : > { %3678 = vst.msk [vmem:[%s5984_s13 + $0xd0] sm:$0xff] %vm223_vm2, %v3472_v59 }
 0x46b   : > { %v3939_v62 = vpop.f32.mrb[28].mxu0 }
 0x46c   : > { %v2887_v15 = vadd.f32 %v3939_v62, %v5974_v23  ;;  %v2881_v53 = vpop.f32.mrb[29].mxu0 }
 0x46d   : > { %v2882_v55 = vadd.f32 %v5974_v23, %v2881_v53 }
 0x46e   : > { %vm2905_vm4 = vcmp.gt.f32.partialorder %v2887_v15, 0.0  ;;  %v2913_v10 = vmul.f32 0.2, %v2887_v15  ;;  %v3969_v51 = vpop.f32.mrb[28].mxu1 }
 0x46f   : > { %vm2904_vm6 = vcmp.gt.f32.partialorder %v2882_v55, 0.0  ;;  %v2912_v25 = vmul.f32 0.2, %v2882_v55  ;;  %v3441_v19 = vadd.f32 %v3969_v51, %v5974_v23  ;;  %v3435_v5 = vpop.f32.mrb[29].mxu1 }
 0x470   : > { %v2921_v16 = vsel %vm2905_vm4, %v2887_v15, %v2913_v10  ;;  %v3436_v41 = vadd.f32 %v5974_v23, %v3435_v5 }
 0x471   : > { %3665 = vst.msk [vmem:[%s5984_s13 + $0xa8] sm:$0xff] %vm223_vm2, %v2921_v16  ;;  %v2920_v61 = vsel %vm2904_vm6, %v2882_v55, %v2912_v25  ;;  %vm3459_vm7 = vcmp.gt.f32.partialorder %v3441_v19, 0.0  ;;  %v3467_v26 = vmul.f32 0.2, %v3441_v19 }
 0x472   : > { %3664 = vst.msk [vmem:[%s5984_s13 + $0xa0] sm:$0xff] %vm223_vm2, %v2920_v61  ;;  %vm3458_vm5 = vcmp.gt.f32.partialorder %v3436_v41, 0.0  ;;  %v3466_v9 = vmul.f32 0.2, %v3436_v41 }
 0x473   : > { %v3475_v43 = vsel %vm3459_vm7, %v3441_v19, %v3467_v26 }
 0x474   : > { %3681 = vst.msk [vmem:[%s5984_s13 + $0xe8] sm:$0xff] %vm223_vm2, %v3475_v43  ;;  %v3474_v54 = vsel %vm3458_vm5, %v3436_v41, %v3466_v9 }
 0x475   : > { %3680 = vst.msk [vmem:[%s5984_s13 + $0xe0] sm:$0xff] %vm223_vm2, %v3474_v54 }
 0x48a   : > { %v3972_v47 = vpop.f32.mrb[30].mxu1 }
 0x48b   : > { %v3942_v1 = vpop.f32.mrb[30].mxu0  ;;  %v3451_v21 = vadd.f32 %v3972_v47, %v5974_v23  ;;  %v3445_v49 = vpop.f32.mrb[31].mxu1 }
 0x48c   : > { %v2897_v0 = vadd.f32 %v3942_v1, %v5974_v23  ;;  %v2891_v12 = vpop.f32.mrb[31].mxu0  ;;  %v3446_v42 = vadd.f32 %v5974_v23, %v3445_v49 }
 0x48d   : > { %vm3461_vm10 = vcmp.gt.f32.partialorder %v3451_v21, 0.0  ;;  %v3469_v13 = vmul.f32 0.2, %v3451_v21  ;;  %v2892_v48 = vadd.f32 %v5974_v23, %v2891_v12 }
 0x48e   : > { %vm2907_vm11 = vcmp.gt.f32.partialorder %v2897_v0, 0.0  ;;  %v2915_v28 = vmul.f32 0.2, %v2897_v0  ;;  %vm3460_vm12 = vcmp.gt.f32.partialorder %v3446_v42, 0.0  ;;  %v3468_v44 = vmul.f32 0.2, %v3446_v42 }
 0x48f   : > { %v3477_v6 = vsel %vm3461_vm10, %v3451_v21, %v3469_v13  ;;  %vm2906_vm13 = vcmp.gt.f32.partialorder %v2892_v48, 0.0  ;;  %v2914_v18 = vmul.f32 0.2, %v2892_v48 }
 0x490   : > { %v2923_v3 = vsel %vm2907_vm11, %v2897_v0, %v2915_v28  ;;  %3683 = vst.msk [vmem:[%s5984_s13 + $0xf8] sm:$0xff] %vm223_vm2, %v3477_v6  ;;  %v3476_v23 = vsel %vm3460_vm12, %v3446_v42, %v3468_v44 }
 0x491   : > { %3667 = vst.msk [vmem:[%s5984_s13 + $0xb8] sm:$0xff] %vm223_vm2, %v2923_v3  ;;  %v2922_v24 = vsel %vm2906_vm13, %v2892_v48, %v2914_v18  ;;  %3682 = vst.msk [vmem:[%s5984_s13 + $0xf0] sm:$0xff] %vm223_vm2, %v3476_v23 }
 0x492   : > { %3666 = vst.msk [vmem:[%s5984_s13 + $0xb0] sm:$0xff] %vm223_vm2, %v2922_v24 }
 0x493   : > { %4113 = shalt.err (!%p4110_p3)
}
 0x494   : > { %s4114_s17 = scalar_lea.hbm %s6164_s22, 4096  ;;  %s4118_s11 = scalar_lea.hbm %s6225_s5, 8192 }
 0x495   : > { %p4115_p4 = scmp.ne.s32.totalorder %s6164_s22, %s4114_s17  ;;  %p4119_p9 = scmp.lt.u32.totalorder %s6164_s22, %s6225_s5 }
 0x496   : > { %p4120_p10 = scmp.lt.u32.totalorder %s4118_s11, %s4114_s17  ;;  %p4122_p12 = scmp.lt.u32.totalorder %s4114_s17, %s6164_s22 }
 0x497   : > { %p4116_p7 = pnand %p4115_p4, %p4245_p5 }
 0x498   : > { %p4121_p11 = por %p4120_p10, %p4119_p9 }
 0x499   : > { %p4117_p8 = pneg %p4116_p7 }
 0x49a   : > { %p4123_p13 = por %p4122_p12, %p4121_p11 }
 0x49c   : > { %p4124_p0 = pnand %p4123_p13, %p4117_p8 }
 0x49e   : > { %4127 = shalt.err (!%p4124_p0)
}
 0x49f   : > { %s4176_s14 = smov 128  }
 0x4a0   : > { %4042 = dma.vmem_to_hbm [thread:$0]  (%p4245_p5), %s6168_s15, 4096, %s6164_s22, %s6178_s26, %s4176_s14, %s4176_s14, %s4165_s30  }
 0x4a1 PF: > { %p4048_p1 = scmp.ge.s32.totalorder %s4162_s21, 2  ;;  %s3516_s23 = sand.u32 1, %s4150_s18  }
 0x4a2   : > { %s3517_s25 = scalar_lea.sflag [#allocation4], %s3516_s23 }
 0x4a3   : > { %p4045_p2 = pnand %p4048_p1, %p4249_p6 }
 0x4a5   : > { %4145 = dma.done.wait (!%p4045_p2), %s3517_s25, 4096  }
 0x4a6   : > { %4147 = vsyncadd (!%p4045_p2), %s3517_s25, 4294963200  ;;  %p15_p3 = scmp.ge.s32.totalorder %s4232_s24, 4   ;;  %s6427_s18 = smov %s4154_s19 }
 0x4a7   : > { %s6428_s19 = smov %s4158_s20  ;;  %s6429_s20 = smov %s4243_s27 }
 0x4a8   : > { %s6430_s21 = smov %s4232_s24  ;;  %17 = sbr.rel (!%p15_p3) target bundleno = 3 (0x3), region = 87 }
 0x4af   :  { %3522 = vsyncpa [#allocation4], 1 }
 0x4b0   :  { %3524 = vsyncpa [#allocation4 + $0x1], 1 }

</bundles_post_ra>
